<compile_context>
chip_gen: v7x
topology: tpu7x:2x2x1
jax: 0.10.0
libtpu: 0.0.40
codegen_flags: <defaults>
</compile_context>

<pallas_src>
from functools import partial

import jax
import jax.numpy as jnp
from jax import lax
from jax.experimental import pallas as pl
from jax.experimental.pallas import tpu as pltpu

# ---- synthetic MoCo hyper-parameters (small shapes) -------------------------
B, C, H, W = 2, 4, 16, 16          # input images
IN_DIM = C * H * W                 # 1024
ENC_HIDDEN = 64                    # hidden width of the synthetic base encoder
MLP_DIM = 32                       # "num_classes=mlp_dim" -> encoder output dim
PRED_HIDDEN = 64                   # predictor hidden width (_build_mlp mlp_dim)
T_SOFTMAX = 1.0                    # MoCo temperature
BN_EPS = 1e-5                      # nn.BatchNorm1d default eps (training mode)
NORM_EPS = 1e-12                   # F.normalize default eps

# rows of the packed (8,128) f32 state tile
ROW_B1, ROW_B2, ROW_BM1, ROW_BM2, ROW_G1, ROW_BT1, ROW_LOSS = 0, 1, 2, 3, 4, 5, 7

# row layout of the static (160, 64) f32 weight slab: [w2t ; wp1t ; wp2t]
SLAB_W2 = 0
SLAB_WP1 = ENC_HIDDEN                       # 64
SLAB_WP2 = ENC_HIDDEN + MLP_DIM             # 96
SLAB_ROWS = ENC_HIDDEN + MLP_DIM + PRED_HIDDEN   # 160


def _moco_kernel(x1_ref, x2_ref, w1_ref, wm1_ref, slab_ref, wm2_ref, packed_ref,
                 m_ref,
                 wm1_out_ref, wm2_out_ref, packed_out_ref,
                 x_scr, w1m_scr, w2m_scr, act_scr,
                 *, batch, temperature):
    m = m_ref[0]                                             # scalar from SMEM
    om = 1.0 - m

    p = packed_ref[...]                                      # (8, 128) f32
    row_b1 = p[ROW_B1:ROW_B1 + 1, :]
    row_b2 = p[ROW_B2:ROW_B2 + 1, :]
    b1 = row_b1[:, :ENC_HIDDEN]
    b2 = row_b2[:, :MLP_DIM]
    g1 = p[ROW_G1:ROW_G1 + 1, :PRED_HIDDEN]
    bt1 = p[ROW_BT1:ROW_BT1 + 1, :PRED_HIDDEN]

    # ---- momentum update: param_m = m*param_m + (1-m)*param_b (f32 masters) --
    bm1_row = p[ROW_BM1:ROW_BM1 + 1, :] * m + row_b1 * om    # (1,128), data in [:64]
    bm2_row = p[ROW_BM2:ROW_BM2 + 1, :] * m + row_b2 * om    # (1,128), data in [:32]
    bm1 = bm1_row[:, :ENC_HIDDEN]
    bm2 = bm2_row[:, :MLP_DIM]

    # Big weight: update and persist immediately (bounds the f32 live range),
    # then stage the fused bf16 [w1 | wm1_new] weight for one stage-1 MXU pass.
    wm1_out_ref[...] = wm1_ref[...] * m + w1_ref[...].astype(jnp.float32) * om
    w1m_scr[:, :ENC_HIDDEN] = w1_ref[...]                            # bf16 copy
    w1m_scr[:, ENC_HIDDEN:] = wm1_out_ref[...].astype(jnp.bfloat16)

    slab = slab_ref[...]                                     # (160, 64) f32
    w2 = slab[SLAB_W2:SLAB_W2 + ENC_HIDDEN, :MLP_DIM]        # (64, 32)
    wp1 = slab[SLAB_WP1:SLAB_WP1 + MLP_DIM, :PRED_HIDDEN]    # (32, 64)
    wp2 = slab[SLAB_WP2:SLAB_WP2 + PRED_HIDDEN, :MLP_DIM]    # (64, 32)

    wm2_new = wm2_ref[...] * m + w2 * om                     # (64, 32) f32
    wm2_out_ref[...] = wm2_new

    # ---- persist packed state (direct row writes; loss row written at end) --
    packed_out_ref[...] = p
    packed_out_ref[ROW_BM1:ROW_BM1 + 1, :] = bm1_row
    packed_out_ref[ROW_BM2:ROW_BM2 + 1, :] = bm2_row

    # ---- stage 1: single MXU pass over base + momentum encoder --------------
    x_scr[0:batch, :] = x1_ref[...]
    x_scr[batch:, :] = x2_ref[...]
    x = x_scr[...].astype(jnp.bfloat16)                      # (2B, IN_DIM) [x1; x2]
    out1 = jnp.dot(x, w1m_scr[...], preferred_element_type=jnp.float32)  # (2B,128)
    h = jnp.maximum(out1[:, :ENC_HIDDEN] + b1, 0.0)          # base path
    hk = jnp.maximum(out1[:, ENC_HIDDEN:] + bm1, 0.0)        # momentum path

    # ---- stage 2: block-diagonal [w2 0; 0 wm2_new] -> one MXU pass ----------
    act_scr[:, :ENC_HIDDEN] = h.astype(jnp.bfloat16)
    act_scr[:, ENC_HIDDEN:] = hk.astype(jnp.bfloat16)
    w2m_scr[...] = jnp.zeros(w2m_scr.shape, w2m_scr.dtype)
    w2m_scr[:ENC_HIDDEN, :MLP_DIM] = w2.astype(jnp.bfloat16)
    w2m_scr[ENC_HIDDEN:, MLP_DIM:] = wm2_new.astype(jnp.bfloat16)
    out2 = jnp.dot(act_scr[...], w2m_scr[...],
                   preferred_element_type=jnp.float32)       # (2B, 64)
    z = out2[:, :MLP_DIM] + b2                               # base features -> predictor
    kfeat = out2[:, MLP_DIM:] + bm2                          # momentum features -> loss

    # ---- predictor: Linear(no bias)->BN1d->ReLU->Linear(no bias)->BN1d(affine=False)
    def bn_per_half(hh, gamma=None, beta=None):
        # training-mode BN1d; statistics per B-row half so it matches two
        # independent PyTorch forward calls (x1 batch, x2 batch).
        def stats(hx):
            mu = jnp.mean(hx, axis=0, keepdims=True)
            d = hx - mu
            return mu, jnp.mean(d * d, axis=0, keepdims=True)

        mu1, var1 = stats(hh[:batch])
        mu2, var2 = stats(hh[batch:])
        first = lax.broadcasted_iota(jnp.int32, hh.shape, 0) < batch
        mu = jnp.where(first, jnp.broadcast_to(mu1, hh.shape),
                       jnp.broadcast_to(mu2, hh.shape))
        var = jnp.where(first, jnp.broadcast_to(var1, hh.shape),
                        jnp.broadcast_to(var2, hh.shape))
        y = (hh - mu) * lax.rsqrt(var + BN_EPS)
        if gamma is not None:
            y = y * gamma + beta
        return y

    hp = jnp.dot(z.astype(jnp.bfloat16), wp1.astype(jnp.bfloat16),
                 preferred_element_type=jnp.float32)         # (2B, 64)
    hp = jnp.maximum(bn_per_half(hp, g1, bt1), 0.0)
    qf = jnp.dot(hp.astype(jnp.bfloat16), wp2.astype(jnp.bfloat16),
                 preferred_element_type=jnp.float32)         # (2B, 32)
    q = bn_per_half(qf)                                      # last BN affine=False

    q1, q2 = q[:batch], q[batch:]
    k1, k2 = kfeat[:batch], kfeat[batch:]

    # ---- symmetric InfoNCE loss (VPU/XLU/EUP; batch tiny -> stay unrolled) --
    def l2_normalize(v):
        sq = jnp.sum(v * v, axis=1, keepdims=True)
        return v * lax.rsqrt(jnp.maximum(sq, NORM_EPS * NORM_EPS))

    def contrastive_loss(qv, kv):
        qn = l2_normalize(qv)
        kn = l2_normalize(kv)
        inv_t = 1.0 / temperature
        n = qn.shape[0]
        # logits columns: logits[:, j] = <qn[i], kn[j]> / T
        cols = [jnp.sum(qn * kn[j:j + 1, :], axis=1, keepdims=True) * inv_t
                for j in range(n)]                           # each (n, 1)
        mx = cols[0]
        for c in cols[1:]:
            mx = jnp.maximum(mx, c)
        sum_exp = jnp.exp(cols[0] - mx)
        for c in cols[1:]:
            sum_exp = sum_exp + jnp.exp(c - mx)
        lse = mx + jnp.log(sum_exp)                          # (n, 1)
        # labels = arange(n) -> the "correct" logit is the diagonal
        correct = jnp.sum(qn * kn, axis=1, keepdims=True) * inv_t
        per_row = lse - correct
        return jnp.sum(per_row, axis=0, keepdims=True) * (2.0 * temperature / n)

    loss = contrastive_loss(q1, k2) + contrastive_loss(q2, k1)       # (1, 1)
    packed_out_ref[ROW_LOSS:ROW_LOSS + 1, :] = jnp.broadcast_to(loss, (1, 128))


def init_params(key):
    ks = jax.random.split(key, 6)
    scale = 0.05
    w1t = scale * jax.random.normal(ks[0], (IN_DIM, ENC_HIDDEN), jnp.float32)
    b1 = scale * jax.random.normal(ks[1], (1, ENC_HIDDEN), jnp.float32)
    w2t = scale * jax.random.normal(ks[2], (ENC_HIDDEN, MLP_DIM), jnp.float32)
    b2 = scale * jax.random.normal(ks[3], (1, MLP_DIM), jnp.float32)
    wp1t = scale * jax.random.normal(ks[4], (MLP_DIM, PRED_HIDDEN), jnp.float32)
    wp2t = scale * jax.random.normal(ks[5], (PRED_HIDDEN, MLP_DIM), jnp.float32)
    g1 = jnp.ones((1, PRED_HIDDEN), jnp.float32)
    bt1 = jnp.zeros((1, PRED_HIDDEN), jnp.float32)

    # static (never-updated) params, stored once in kernel-ready layout
    slab = jnp.zeros((SLAB_ROWS, PRED_HIDDEN), jnp.float32)
    slab = slab.at[SLAB_W2:SLAB_W2 + ENC_HIDDEN, :MLP_DIM].set(w2t)
    slab = slab.at[SLAB_WP1:SLAB_WP1 + MLP_DIM, :PRED_HIDDEN].set(wp1t)
    slab = slab.at[SLAB_WP2:SLAB_WP2 + PRED_HIDDEN, :MLP_DIM].set(wp2t)
    static = {"w1t": w1t.astype(jnp.bfloat16), "slab": slab}

    # mutable state: momentum encoder (exact copy of the base encoder at init,
    # as in MoCo.__init__) with f32 masters + the packed small-vector tile.
    packed = jnp.zeros((8, 128), jnp.float32)
    packed = packed.at[ROW_B1, :ENC_HIDDEN].set(b1[0])
    packed = packed.at[ROW_B2, :MLP_DIM].set(b2[0])
    packed = packed.at[ROW_BM1, :ENC_HIDDEN].set(b1[0])     # bm1 := b1
    packed = packed.at[ROW_BM2, :MLP_DIM].set(b2[0])        # bm2 := b2
    packed = packed.at[ROW_G1, :PRED_HIDDEN].set(g1[0])
    packed = packed.at[ROW_BT1, :PRED_HIDDEN].set(bt1[0])
    state = {
        "wm1t": static["w1t"].astype(jnp.float32),           # f32 EMA master
        "wm2t": w2t,
        "packed": packed,
    }
    return static, state


@partial(jax.jit, donate_argnums=(3,))
def moco_forward(x1, x2, m, state, static):
    batch = x1.shape[0]
    x1f = x1.reshape(batch, -1)                     # free reshape (no HBM copy)
    x2f = x2.reshape(batch, -1)
    in_dim = x1f.shape[1]
    m_arr = jnp.reshape(m, (1,)).astype(jnp.float32)

    vmem = pl.BlockSpec(memory_space=pltpu.MemorySpace.VMEM)
    smem = pl.BlockSpec(memory_space=pltpu.MemorySpace.SMEM)

    wm1_new, wm2_new, packed_new = pl.pallas_call(
        partial(_moco_kernel, batch=batch, temperature=T_SOFTMAX),
        out_shape=(
            jax.ShapeDtypeStruct((in_dim, ENC_HIDDEN), jnp.float32),   # wm1t'
            jax.ShapeDtypeStruct((ENC_HIDDEN, MLP_DIM), jnp.float32),  # wm2t'
            jax.ShapeDtypeStruct((8, 128), jnp.float32),               # packed' (+loss)
        ),
        in_specs=[vmem] * 7 + [smem],
        out_specs=(vmem, vmem, vmem),
        scratch_shapes=[
            pltpu.VMEM((2 * batch, in_dim), jnp.float32),              # [x1; x2]
            pltpu.VMEM((in_dim, 2 * ENC_HIDDEN), jnp.bfloat16),        # [w1 | wm1']
            pltpu.VMEM((2 * ENC_HIDDEN, 2 * MLP_DIM), jnp.bfloat16),   # diag(w2, wm2')
            pltpu.VMEM((2 * batch, 2 * ENC_HIDDEN), jnp.bfloat16),     # [h | hk]
        ],
        input_output_aliases={3: 0, 5: 1, 6: 2},    # in-place momentum update
    )(x1f, x2f, static["w1t"], state["wm1t"], static["slab"],
      state["wm2t"], state["packed"], m_arr)

    loss = packed_new[ROW_LOSS, 0]
    new_state = {"wm1t": wm1_new, "wm2t": wm2_new, "packed": packed_new}
    return loss, new_state


if __name__ == "__main__":
    key = jax.random.PRNGKey(0)
    k_x1, k_x2, k_p = jax.random.split(key, 3)
    x1 = jax.random.normal(k_x1, (B, C, H, W), jnp.float32)
    x2 = jax.random.normal(k_x2, (B, C, H, W), jnp.float32)
    static, state = init_params(k_p)
    m = jnp.float32(0.99)

    # two steps to exercise the donated / aliased in-place momentum update
    for _ in range(2):
        loss, state = moco_forward(x1, x2, m, state, static)
        jax.block_until_ready((loss, state))
        assert loss.shape == () and bool(jnp.isfinite(loss))
    print("KERNEL_OK")
</pallas_src>

<mosaic_0001>
module attributes {stable_mosaic.version = 11 : i64} {
  func.func @_moco_kernel(%arg0: memref<2x1024xf32, #tpu.memory_space<vmem>>, %arg1: memref<2x1024xf32, #tpu.memory_space<vmem>>, %arg2: memref<1024x64xbf16, #tpu.memory_space<vmem>>, %arg3: memref<1024x64xf32, #tpu.memory_space<vmem>>, %arg4: memref<160x64xf32, #tpu.memory_space<vmem>>, %arg5: memref<64x32xf32, #tpu.memory_space<vmem>>, %arg6: memref<8x128xf32, #tpu.memory_space<vmem>>, %arg7: memref<1xf32, #tpu.memory_space<smem>>, %arg8: memref<1024x64xf32, #tpu.memory_space<vmem>>, %arg9: memref<64x32xf32, #tpu.memory_space<vmem>>, %arg10: memref<8x128xf32, #tpu.memory_space<vmem>>, %arg11: memref<4x1024xf32, #tpu.memory_space<vmem>>, %arg12: memref<1024x128xbf16, #tpu.memory_space<vmem>>, %arg13: memref<128x64xbf16, #tpu.memory_space<vmem>>, %arg14: memref<4x128xbf16, #tpu.memory_space<vmem>>) attributes {dimension_semantics = [], scalar_prefetch = 0 : i64, scratch_operands = 4 : i64, tpu.core_type = #tpu.core_type<tc>} {
    %c0 = arith.constant 0 : index
    %0 = memref.load %arg7[%c0] : memref<1xf32, #tpu.memory_space<smem>>
    %cst = arith.constant 1.000000e+00 : f32
    %1 = arith.subf %cst, %0 : f32
    %c0_0 = arith.constant 0 : index
    %c0_1 = arith.constant 0 : index
    %2 = vector.load %arg6[%c0_0, %c0_1] : memref<8x128xf32, #tpu.memory_space<vmem>>, vector<8x128xf32>
    %3 = vector.extract_strided_slice %2 {offsets = [0, 0], sizes = [1, 128], strides = [1, 1]} : vector<8x128xf32> to vector<1x128xf32>
    %4 = vector.extract_strided_slice %2 {offsets = [1, 0], sizes = [1, 128], strides = [1, 1]} : vector<8x128xf32> to vector<1x128xf32>
    %5 = vector.extract_strided_slice %3 {offsets = [0, 0], sizes = [1, 64], strides = [1, 1]} : vector<1x128xf32> to vector<1x64xf32>
    %6 = vector.extract_strided_slice %4 {offsets = [0, 0], sizes = [1, 32], strides = [1, 1]} : vector<1x128xf32> to vector<1x32xf32>
    %7 = vector.extract_strided_slice %2 {offsets = [4, 0], sizes = [1, 64], strides = [1, 1]} : vector<8x128xf32> to vector<1x64xf32>
    %8 = vector.extract_strided_slice %2 {offsets = [5, 0], sizes = [1, 64], strides = [1, 1]} : vector<8x128xf32> to vector<1x64xf32>
    %9 = vector.extract_strided_slice %2 {offsets = [2, 0], sizes = [1, 128], strides = [1, 1]} : vector<8x128xf32> to vector<1x128xf32>
    %10 = vector.broadcast %0 : f32 to vector<1x128xf32>
    %11 = arith.mulf %9, %10 : vector<1x128xf32>
    %12 = vector.broadcast %1 : f32 to vector<1x128xf32>
    %13 = arith.mulf %3, %12 : vector<1x128xf32>
    %14 = arith.addf %11, %13 : vector<1x128xf32>
    %15 = vector.extract_strided_slice %2 {offsets = [3, 0], sizes = [1, 128], strides = [1, 1]} : vector<8x128xf32> to vector<1x128xf32>
    %16 = vector.broadcast %0 : f32 to vector<1x128xf32>
    %17 = arith.mulf %15, %16 : vector<1x128xf32>
    %18 = vector.broadcast %1 : f32 to vector<1x128xf32>
    %19 = arith.mulf %4, %18 : vector<1x128xf32>
    %20 = arith.addf %17, %19 : vector<1x128xf32>
    %21 = vector.extract_strided_slice %14 {offsets = [0, 0], sizes = [1, 64], strides = [1, 1]} : vector<1x128xf32> to vector<1x64xf32>
    %22 = vector.extract_strided_slice %20 {offsets = [0, 0], sizes = [1, 32], strides = [1, 1]} : vector<1x128xf32> to vector<1x32xf32>
    %c0_2 = arith.constant 0 : index
    %c0_3 = arith.constant 0 : index
    %23 = vector.load %arg3[%c0_2, %c0_3] : memref<1024x64xf32, #tpu.memory_space<vmem>>, vector<1024x64xf32>
    %24 = vector.broadcast %0 : f32 to vector<1024x64xf32>
    %25 = arith.mulf %23, %24 : vector<1024x64xf32>
    %c0_4 = arith.constant 0 : index
    %c0_5 = arith.constant 0 : index
    %26 = vector.load %arg2[%c0_4, %c0_5] : memref<1024x64xbf16, #tpu.memory_space<vmem>>, vector<1024x64xbf16>
    %27 = arith.extf %26 : vector<1024x64xbf16> to vector<1024x64xf32>
    %28 = vector.broadcast %1 : f32 to vector<1024x64xf32>
    %29 = arith.mulf %27, %28 : vector<1024x64xf32>
    %30 = arith.addf %25, %29 : vector<1024x64xf32>
    %c0_6 = arith.constant 0 : index
    %c0_7 = arith.constant 0 : index
    %31 = vector.load %arg8[%c0_6, %c0_7] : memref<1024x64xf32, #tpu.memory_space<vmem>>, vector<1024x64xf32>
    tpu.vector_store %arg8[%c0_6, %c0_7], %30 {strides = array<i32>} : memref<1024x64xf32, #tpu.memory_space<vmem>>, vector<1024x64xf32>,
    %c0_8 = arith.constant 0 : index
    %c0_9 = arith.constant 0 : index
    %32 = vector.load %arg2[%c0_8, %c0_9] : memref<1024x64xbf16, #tpu.memory_space<vmem>>, vector<1024x64xbf16>
    %c0_10 = arith.constant 0 : index
    %c0_11 = arith.constant 0 : index
    %33 = vector.load %arg12[%c0_10, %c0_11] : memref<1024x128xbf16, #tpu.memory_space<vmem>>, vector<1024x64xbf16>
    tpu.vector_store %arg12[%c0_10, %c0_11], %32 {strides = array<i32>} : memref<1024x128xbf16, #tpu.memory_space<vmem>>, vector<1024x64xbf16>,
    %c0_12 = arith.constant 0 : index
    %c0_13 = arith.constant 0 : index
    %34 = vector.load %arg8[%c0_12, %c0_13] : memref<1024x64xf32, #tpu.memory_space<vmem>>, vector<1024x64xf32>
    %35 = arith.truncf %34 : vector<1024x64xf32> to vector<1024x64xbf16>
    %c0_14 = arith.constant 0 : index
    %c64 = arith.constant 64 : index
    %36 = vector.load %arg12[%c0_14, %c64] : memref<1024x128xbf16, #tpu.memory_space<vmem>>, vector<1024x64xbf16>
    tpu.vector_store %arg12[%c0_14, %c64], %35 {strides = array<i32>} : memref<1024x128xbf16, #tpu.memory_space<vmem>>, vector<1024x64xbf16>,
    %c0_15 = arith.constant 0 : index
    %c0_16 = arith.constant 0 : index
    %37 = vector.load %arg4[%c0_15, %c0_16] : memref<160x64xf32, #tpu.memory_space<vmem>>, vector<160x64xf32>
    %38 = vector.extract_strided_slice %37 {offsets = [0, 0], sizes = [64, 32], strides = [1, 1]} : vector<160x64xf32> to vector<64x32xf32>
    %39 = vector.extract_strided_slice %37 {offsets = [64, 0], sizes = [32, 64], strides = [1, 1]} : vector<160x64xf32> to vector<32x64xf32>
    %40 = vector.extract_strided_slice %37 {offsets = [96, 0], sizes = [64, 32], strides = [1, 1]} : vector<160x64xf32> to vector<64x32xf32>
    %c0_17 = arith.constant 0 : index
    %c0_18 = arith.constant 0 : index
    %41 = vector.load %arg5[%c0_17, %c0_18] : memref<64x32xf32, #tpu.memory_space<vmem>>, vector<64x32xf32>
    %42 = vector.broadcast %0 : f32 to vector<64x32xf32>
    %43 = arith.mulf %41, %42 : vector<64x32xf32>
    %44 = vector.broadcast %1 : f32 to vector<64x32xf32>
    %45 = arith.mulf %38, %44 : vector<64x32xf32>
    %46 = arith.addf %43, %45 : vector<64x32xf32>
    %c0_19 = arith.constant 0 : index
    %c0_20 = arith.constant 0 : index
    %47 = vector.load %arg9[%c0_19, %c0_20] : memref<64x32xf32, #tpu.memory_space<vmem>>, vector<64x32xf32>
    tpu.vector_store %arg9[%c0_19, %c0_20], %46 {strides = array<i32>} : memref<64x32xf32, #tpu.memory_space<vmem>>, vector<64x32xf32>,
    %c0_21 = arith.constant 0 : index
    %c0_22 = arith.constant 0 : index
    %48 = vector.load %arg10[%c0_21, %c0_22] : memref<8x128xf32, #tpu.memory_space<vmem>>, vector<8x128xf32>
    tpu.vector_store %arg10[%c0_21, %c0_22], %2 {strides = array<i32>} : memref<8x128xf32, #tpu.memory_space<vmem>>, vector<8x128xf32>,
    %c2 = arith.constant 2 : index
    %c0_23 = arith.constant 0 : index
    %49 = vector.load %arg10[%c2, %c0_23] : memref<8x128xf32, #tpu.memory_space<vmem>>, vector<1x128xf32>
    tpu.vector_store %arg10[%c2, %c0_23], %14 {strides = array<i32>} : memref<8x128xf32, #tpu.memory_space<vmem>>, vector<1x128xf32>,
    %c3 = arith.constant 3 : index
    %c0_24 = arith.constant 0 : index
    %50 = vector.load %arg10[%c3, %c0_24] : memref<8x128xf32, #tpu.memory_space<vmem>>, vector<1x128xf32>
    tpu.vector_store %arg10[%c3, %c0_24], %20 {strides = array<i32>} : memref<8x128xf32, #tpu.memory_space<vmem>>, vector<1x128xf32>,
    %c0_25 = arith.constant 0 : index
    %c0_26 = arith.constant 0 : index
    %51 = vector.load %arg0[%c0_25, %c0_26] : memref<2x1024xf32, #tpu.memory_space<vmem>>, vector<2x1024xf32>
    %c0_27 = arith.constant 0 : index
    %c0_28 = arith.constant 0 : index
    %52 = vector.load %arg11[%c0_27, %c0_28] : memref<4x1024xf32, #tpu.memory_space<vmem>>, vector<2x1024xf32>
    tpu.vector_store %arg11[%c0_27, %c0_28], %51 {strides = array<i32>} : memref<4x1024xf32, #tpu.memory_space<vmem>>, vector<2x1024xf32>,
    %c0_29 = arith.constant 0 : index
    %c0_30 = arith.constant 0 : index
    %53 = vector.load %arg1[%c0_29, %c0_30] : memref<2x1024xf32, #tpu.memory_space<vmem>>, vector<2x1024xf32>
    %c2_31 = arith.constant 2 : index
    %c0_32 = arith.constant 0 : index
    %54 = vector.load %arg11[%c2_31, %c0_32] : memref<4x1024xf32, #tpu.memory_space<vmem>>, vector<2x1024xf32>
    tpu.vector_store %arg11[%c2_31, %c0_32], %53 {strides = array<i32>} : memref<4x1024xf32, #tpu.memory_space<vmem>>, vector<2x1024xf32>,
    %c0_33 = arith.constant 0 : index
    %c0_34 = arith.constant 0 : index
    %55 = vector.load %arg11[%c0_33, %c0_34] : memref<4x1024xf32, #tpu.memory_space<vmem>>, vector<4x1024xf32>
    %56 = arith.truncf %55 : vector<4x1024xf32> to vector<4x1024xbf16>
    %c0_35 = arith.constant 0 : index
    %c0_36 = arith.constant 0 : index
    %57 = vector.load %arg12[%c0_35, %c0_36] : memref<1024x128xbf16, #tpu.memory_space<vmem>>, vector<1024x128xbf16>
    %cst_37 = arith.constant dense<0.000000e+00> : vector<4x128xf32>
    %58 = tpu.matmul %56, %57, %cst_37 {dimension_numbers = #tpu.dot_dimension_numbers<[1], [0], [0], [1], [0, 0, 1, 1], [], []>} : vector<4x1024xbf16>, vector<1024x128xbf16>, vector<4x128xf32> -> vector<4x128xf32>
    %59 = vector.extract_strided_slice %58 {offsets = [0, 0], sizes = [4, 64], strides = [1, 1]} : vector<4x128xf32> to vector<4x64xf32>
    %60 = vector.broadcast %5 : vector<1x64xf32> to vector<4x64xf32>
    %61 = arith.addf %59, %60 : vector<4x64xf32>
    %cst_38 = arith.constant 0.000000e+00 : f32
    %62 = vector.broadcast %cst_38 : f32 to vector<4x64xf32>
    %63 = arith.maximumf %61, %62 : vector<4x64xf32>
    %64 = vector.extract_strided_slice %58 {offsets = [0, 64], sizes = [4, 64], strides = [1, 1]} : vector<4x128xf32> to vector<4x64xf32>
    %65 = vector.broadcast %21 : vector<1x64xf32> to vector<4x64xf32>
    %66 = arith.addf %64, %65 : vector<4x64xf32>
    %cst_39 = arith.constant 0.000000e+00 : f32
    %67 = vector.broadcast %cst_39 : f32 to vector<4x64xf32>
    %68 = arith.maximumf %66, %67 : vector<4x64xf32>
    %69 = arith.truncf %63 : vector<4x64xf32> to vector<4x64xbf16>
    %c0_40 = arith.constant 0 : index
    %c0_41 = arith.constant 0 : index
    %70 = vector.load %arg14[%c0_40, %c0_41] : memref<4x128xbf16, #tpu.memory_space<vmem>>, vector<4x64xbf16>
    tpu.vector_store %arg14[%c0_40, %c0_41], %69 {strides = array<i32>} : memref<4x128xbf16, #tpu.memory_space<vmem>>, vector<4x64xbf16>,
    %71 = arith.truncf %68 : vector<4x64xf32> to vector<4x64xbf16>
    %c0_42 = arith.constant 0 : index
    %c64_43 = arith.constant 64 : index
    %72 = vector.load %arg14[%c0_42, %c64_43] : memref<4x128xbf16, #tpu.memory_space<vmem>>, vector<4x64xbf16>
    tpu.vector_store %arg14[%c0_42, %c64_43], %71 {strides = array<i32>} : memref<4x128xbf16, #tpu.memory_space<vmem>>, vector<4x64xbf16>,
    %cst_44 = arith.constant 0.000000e+00 : bf16
    %73 = vector.broadcast %cst_44 : bf16 to vector<128x64xbf16>
    %c0_45 = arith.constant 0 : index
    %c0_46 = arith.constant 0 : index
    %74 = vector.load %arg13[%c0_45, %c0_46] : memref<128x64xbf16, #tpu.memory_space<vmem>>, vector<128x64xbf16>
    tpu.vector_store %arg13[%c0_45, %c0_46], %73 {strides = array<i32>} : memref<128x64xbf16, #tpu.memory_space<vmem>>, vector<128x64xbf16>,
    %75 = arith.truncf %38 : vector<64x32xf32> to vector<64x32xbf16>
    %c0_47 = arith.constant 0 : index
    %c0_48 = arith.constant 0 : index
    %76 = vector.load %arg13[%c0_47, %c0_48] : memref<128x64xbf16, #tpu.memory_space<vmem>>, vector<64x32xbf16>
    tpu.vector_store %arg13[%c0_47, %c0_48], %75 {strides = array<i32>} : memref<128x64xbf16, #tpu.memory_space<vmem>>, vector<64x32xbf16>,
    %77 = arith.truncf %46 : vector<64x32xf32> to vector<64x32xbf16>
    %c64_49 = arith.constant 64 : index
    %c32 = arith.constant 32 : index
    %78 = vector.load %arg13[%c64_49, %c32] : memref<128x64xbf16, #tpu.memory_space<vmem>>, vector<64x32xbf16>
    tpu.vector_store %arg13[%c64_49, %c32], %77 {strides = array<i32>} : memref<128x64xbf16, #tpu.memory_space<vmem>>, vector<64x32xbf16>,
    %c0_50 = arith.constant 0 : index
    %c0_51 = arith.constant 0 : index
    %79 = vector.load %arg14[%c0_50, %c0_51] : memref<4x128xbf16, #tpu.memory_space<vmem>>, vector<4x128xbf16>
    %c0_52 = arith.constant 0 : index
    %c0_53 = arith.constant 0 : index
    %80 = vector.load %arg13[%c0_52, %c0_53] : memref<128x64xbf16, #tpu.memory_space<vmem>>, vector<128x64xbf16>
    %cst_54 = arith.constant dense<0.000000e+00> : vector<4x64xf32>
    %81 = tpu.matmul %79, %80, %cst_54 {dimension_numbers = #tpu.dot_dimension_numbers<[1], [0], [0], [1], [0, 0, 1, 1], [], []>} : vector<4x128xbf16>, vector<128x64xbf16>, vector<4x64xf32> -> vector<4x64xf32>
    %82 = vector.extract_strided_slice %81 {offsets = [0, 0], sizes = [4, 32], strides = [1, 1]} : vector<4x64xf32> to vector<4x32xf32>
    %83 = vector.broadcast %6 : vector<1x32xf32> to vector<4x32xf32>
    %84 = arith.addf %82, %83 : vector<4x32xf32>
    %85 = vector.extract_strided_slice %81 {offsets = [0, 32], sizes = [4, 32], strides = [1, 1]} : vector<4x64xf32> to vector<4x32xf32>
    %86 = vector.broadcast %22 : vector<1x32xf32> to vector<4x32xf32>
    %87 = arith.addf %85, %86 : vector<4x32xf32>
    %88 = arith.truncf %84 : vector<4x32xf32> to vector<4x32xbf16>
    %89 = arith.truncf %39 : vector<32x64xf32> to vector<32x64xbf16>
    %cst_55 = arith.constant dense<0.000000e+00> : vector<4x64xf32>
    %90 = tpu.matmul %88, %89, %cst_55 {dimension_numbers = #tpu.dot_dimension_numbers<[1], [0], [0], [1], [0, 0, 1, 1], [], []>} : vector<4x32xbf16>, vector<32x64xbf16>, vector<4x64xf32> -> vector<4x64xf32>
    %91 = vector.extract_strided_slice %90 {offsets = [0, 0], sizes = [2, 64], strides = [1, 1]} : vector<4x64xf32> to vector<2x64xf32>
    %cst_56 = arith.constant dense<0.000000e+00> : vector<64xf32>
    %92 = vector.multi_reduction <add>, %91, %cst_56 [0] : vector<2x64xf32> to vector<64xf32>
    %93 = vector.shape_cast %92 : vector<64xf32> to vector<1x64xf32>
    %cst_57 = arith.constant 2.000000e+00 : f32
    %94 = vector.broadcast %cst_57 : f32 to vector<1x64xf32>
    %95 = arith.divf %93, %94 : vector<1x64xf32>
    %96 = vector.broadcast %95 : vector<1x64xf32> to vector<2x64xf32>
    %97 = arith.subf %91, %96 : vector<2x64xf32>
    %98 = arith.mulf %97, %97 : vector<2x64xf32>
    %cst_58 = arith.constant dense<0.000000e+00> : vector<64xf32>
    %99 = vector.multi_reduction <add>, %98, %cst_58 [0] : vector<2x64xf32> to vector<64xf32>
    %100 = vector.shape_cast %99 : vector<64xf32> to vector<1x64xf32>
    %cst_59 = arith.constant 2.000000e+00 : f32
    %101 = vector.broadcast %cst_59 : f32 to vector<1x64xf32>
    %102 = arith.divf %100, %101 : vector<1x64xf32>
    %103 = vector.extract_strided_slice %90 {offsets = [2, 0], sizes = [2, 64], strides = [1, 1]} : vector<4x64xf32> to vector<2x64xf32>
    %cst_60 = arith.constant dense<0.000000e+00> : vector<64xf32>
    %104 = vector.multi_reduction <add>, %103, %cst_60 [0] : vector<2x64xf32> to vector<64xf32>
    %105 = vector.shape_cast %104 : vector<64xf32> to vector<1x64xf32>
    %cst_61 = arith.constant 2.000000e+00 : f32
    %106 = vector.broadcast %cst_61 : f32 to vector<1x64xf32>
    %107 = arith.divf %105, %106 : vector<1x64xf32>
    %108 = vector.broadcast %107 : vector<1x64xf32> to vector<2x64xf32>
    %109 = arith.subf %103, %108 : vector<2x64xf32>
    %110 = arith.mulf %109, %109 : vector<2x64xf32>
    %cst_62 = arith.constant dense<0.000000e+00> : vector<64xf32>
    %111 = vector.multi_reduction <add>, %110, %cst_62 [0] : vector<2x64xf32> to vector<64xf32>
    %112 = vector.shape_cast %111 : vector<64xf32> to vector<1x64xf32>
    %cst_63 = arith.constant 2.000000e+00 : f32
    %113 = vector.broadcast %cst_63 : f32 to vector<1x64xf32>
    %114 = arith.divf %112, %113 : vector<1x64xf32>
    %115 = tpu.iota {dimensions = array<i32: 0>} : vector<4x64xi32>
    %c2_i32 = arith.constant 2 : i32
    %116 = vector.broadcast %c2_i32 : i32 to vector<4x64xi32>
    %117 = arith.cmpi slt, %115, %116 : vector<4x64xi32>
    %118 = vector.shape_cast %95 : vector<1x64xf32> to vector<1x64xf32>
    %119 = vector.broadcast %118 : vector<1x64xf32> to vector<4x64xf32>
    %120 = vector.shape_cast %107 : vector<1x64xf32> to vector<1x64xf32>
    %121 = vector.broadcast %120 : vector<1x64xf32> to vector<4x64xf32>
    %122 = arith.select %117, %119, %121 : vector<4x64xi1>, vector<4x64xf32>
    %123 = vector.shape_cast %102 : vector<1x64xf32> to vector<1x64xf32>
    %124 = vector.broadcast %123 : vector<1x64xf32> to vector<4x64xf32>
    %125 = vector.shape_cast %114 : vector<1x64xf32> to vector<1x64xf32>
    %126 = vector.broadcast %125 : vector<1x64xf32> to vector<4x64xf32>
    %127 = arith.select %117, %124, %126 : vector<4x64xi1>, vector<4x64xf32>
    %128 = arith.subf %90, %122 : vector<4x64xf32>
    %cst_64 = arith.constant 9.99999974E-6 : f32
    %129 = vector.broadcast %cst_64 : f32 to vector<4x64xf32>
    %130 = arith.addf %127, %129 : vector<4x64xf32>
    %131 = math.rsqrt %130 : vector<4x64xf32>
    %132 = arith.mulf %128, %131 : vector<4x64xf32>
    %133 = vector.broadcast %7 : vector<1x64xf32> to vector<4x64xf32>
    %134 = arith.mulf %132, %133 : vector<4x64xf32>
    %135 = vector.broadcast %8 : vector<1x64xf32> to vector<4x64xf32>
    %136 = arith.addf %134, %135 : vector<4x64xf32>
    %cst_65 = arith.constant 0.000000e+00 : f32
    %137 = vector.broadcast %cst_65 : f32 to vector<4x64xf32>
    %138 = arith.maximumf %136, %137 : vector<4x64xf32>
    %139 = arith.truncf %138 : vector<4x64xf32> to vector<4x64xbf16>
    %140 = arith.truncf %40 : vector<64x32xf32> to vector<64x32xbf16>
    %cst_66 = arith.constant dense<0.000000e+00> : vector<4x32xf32>
    %141 = tpu.matmul %139, %140, %cst_66 {dimension_numbers = #tpu.dot_dimension_numbers<[1], [0], [0], [1], [0, 0, 1, 1], [], []>} : vector<4x64xbf16>, vector<64x32xbf16>, vector<4x32xf32> -> vector<4x32xf32>
    %142 = vector.extract_strided_slice %141 {offsets = [0, 0], sizes = [2, 32], strides = [1, 1]} : vector<4x32xf32> to vector<2x32xf32>
    %cst_67 = arith.constant dense<0.000000e+00> : vector<32xf32>
    %143 = vector.multi_reduction <add>, %142, %cst_67 [0] : vector<2x32xf32> to vector<32xf32>
    %144 = vector.shape_cast %143 : vector<32xf32> to vector<1x32xf32>
    %cst_68 = arith.constant 2.000000e+00 : f32
    %145 = vector.broadcast %cst_68 : f32 to vector<1x32xf32>
    %146 = arith.divf %144, %145 : vector<1x32xf32>
    %147 = vector.broadcast %146 : vector<1x32xf32> to vector<2x32xf32>
    %148 = arith.subf %142, %147 : vector<2x32xf32>
    %149 = arith.mulf %148, %148 : vector<2x32xf32>
    %cst_69 = arith.constant dense<0.000000e+00> : vector<32xf32>
    %150 = vector.multi_reduction <add>, %149, %cst_69 [0] : vector<2x32xf32> to vector<32xf32>
    %151 = vector.shape_cast %150 : vector<32xf32> to vector<1x32xf32>
    %cst_70 = arith.constant 2.000000e+00 : f32
    %152 = vector.broadcast %cst_70 : f32 to vector<1x32xf32>
    %153 = arith.divf %151, %152 : vector<1x32xf32>
    %154 = vector.extract_strided_slice %141 {offsets = [2, 0], sizes = [2, 32], strides = [1, 1]} : vector<4x32xf32> to vector<2x32xf32>
    %cst_71 = arith.constant dense<0.000000e+00> : vector<32xf32>
    %155 = vector.multi_reduction <add>, %154, %cst_71 [0] : vector<2x32xf32> to vector<32xf32>
    %156 = vector.shape_cast %155 : vector<32xf32> to vector<1x32xf32>
    %cst_72 = arith.constant 2.000000e+00 : f32
    %157 = vector.broadcast %cst_72 : f32 to vector<1x32xf32>
    %158 = arith.divf %156, %157 : vector<1x32xf32>
    %159 = vector.broadcast %158 : vector<1x32xf32> to vector<2x32xf32>
    %160 = arith.subf %154, %159 : vector<2x32xf32>
    %161 = arith.mulf %160, %160 : vector<2x32xf32>
    %cst_73 = arith.constant dense<0.000000e+00> : vector<32xf32>
    %162 = vector.multi_reduction <add>, %161, %cst_73 [0] : vector<2x32xf32> to vector<32xf32>
    %163 = vector.shape_cast %162 : vector<32xf32> to vector<1x32xf32>
    %cst_74 = arith.constant 2.000000e+00 : f32
    %164 = vector.broadcast %cst_74 : f32 to vector<1x32xf32>
    %165 = arith.divf %163, %164 : vector<1x32xf32>
    %166 = tpu.iota {dimensions = array<i32: 0>} : vector<4x32xi32>
    %c2_i32_75 = arith.constant 2 : i32
    %167 = vector.broadcast %c2_i32_75 : i32 to vector<4x32xi32>
    %168 = arith.cmpi slt, %166, %167 : vector<4x32xi32>
    %169 = vector.shape_cast %146 : vector<1x32xf32> to vector<1x32xf32>
    %170 = vector.broadcast %169 : vector<1x32xf32> to vector<4x32xf32>
    %171 = vector.shape_cast %158 : vector<1x32xf32> to vector<1x32xf32>
    %172 = vector.broadcast %171 : vector<1x32xf32> to vector<4x32xf32>
    %173 = arith.select %168, %170, %172 : vector<4x32xi1>, vector<4x32xf32>
    %174 = vector.shape_cast %153 : vector<1x32xf32> to vector<1x32xf32>
    %175 = vector.broadcast %174 : vector<1x32xf32> to vector<4x32xf32>
    %176 = vector.shape_cast %165 : vector<1x32xf32> to vector<1x32xf32>
    %177 = vector.broadcast %176 : vector<1x32xf32> to vector<4x32xf32>
    %178 = arith.select %168, %175, %177 : vector<4x32xi1>, vector<4x32xf32>
    %179 = arith.subf %141, %173 : vector<4x32xf32>
    %cst_76 = arith.constant 9.99999974E-6 : f32
    %180 = vector.broadcast %cst_76 : f32 to vector<4x32xf32>
    %181 = arith.addf %178, %180 : vector<4x32xf32>
    %182 = math.rsqrt %181 : vector<4x32xf32>
    %183 = arith.mulf %179, %182 : vector<4x32xf32>
    %184 = vector.extract_strided_slice %183 {offsets = [0, 0], sizes = [2, 32], strides = [1, 1]} : vector<4x32xf32> to vector<2x32xf32>
    %185 = vector.extract_strided_slice %183 {offsets = [2, 0], sizes = [2, 32], strides = [1, 1]} : vector<4x32xf32> to vector<2x32xf32>
    %186 = vector.extract_strided_slice %87 {offsets = [0, 0], sizes = [2, 32], strides = [1, 1]} : vector<4x32xf32> to vector<2x32xf32>
    %187 = vector.extract_strided_slice %87 {offsets = [2, 0], sizes = [2, 32], strides = [1, 1]} : vector<4x32xf32> to vector<2x32xf32>
    %188 = arith.mulf %184, %184 : vector<2x32xf32>
    %cst_77 = arith.constant dense<0.000000e+00> : vector<2xf32>
    %189 = vector.multi_reduction <add>, %188, %cst_77 [1] : vector<2x32xf32> to vector<2xf32>
    %190 = vector.shape_cast %189 : vector<2xf32> to vector<2x1xf32>
    %cst_78 = arith.constant 1.000000e-24 : f32
    %191 = vector.broadcast %cst_78 : f32 to vector<2x1xf32>
    %192 = arith.maximumf %190, %191 : vector<2x1xf32>
    %193 = math.rsqrt %192 : vector<2x1xf32>
    %194 = vector.broadcast %193 : vector<2x1xf32> to vector<2x32xf32>
    %195 = arith.mulf %184, %194 : vector<2x32xf32>
    %196 = arith.mulf %187, %187 : vector<2x32xf32>
    %cst_79 = arith.constant dense<0.000000e+00> : vector<2xf32>
    %197 = vector.multi_reduction <add>, %196, %cst_79 [1] : vector<2x32xf32> to vector<2xf32>
    %198 = vector.shape_cast %197 : vector<2xf32> to vector<2x1xf32>
    %cst_80 = arith.constant 1.000000e-24 : f32
    %199 = vector.broadcast %cst_80 : f32 to vector<2x1xf32>
    %200 = arith.maximumf %198, %199 : vector<2x1xf32>
    %201 = math.rsqrt %200 : vector<2x1xf32>
    %202 = vector.broadcast %201 : vector<2x1xf32> to vector<2x32xf32>
    %203 = arith.mulf %187, %202 : vector<2x32xf32>
    %204 = vector.extract_strided_slice %203 {offsets = [0, 0], sizes = [1, 32], strides = [1, 1]} : vector<2x32xf32> to vector<1x32xf32>
    %205 = vector.broadcast %204 : vector<1x32xf32> to vector<2x32xf32>
    %206 = arith.mulf %195, %205 : vector<2x32xf32>
    %cst_81 = arith.constant dense<0.000000e+00> : vector<2xf32>
    %207 = vector.multi_reduction <add>, %206, %cst_81 [1] : vector<2x32xf32> to vector<2xf32>
    %208 = vector.shape_cast %207 : vector<2xf32> to vector<2x1xf32>
    %cst_82 = arith.constant 1.000000e+00 : f32
    %209 = vector.broadcast %cst_82 : f32 to vector<2x1xf32>
    %210 = arith.mulf %208, %209 : vector<2x1xf32>
    %211 = vector.extract_strided_slice %203 {offsets = [1, 0], sizes = [1, 32], strides = [1, 1]} : vector<2x32xf32> to vector<1x32xf32>
    %212 = vector.broadcast %211 : vector<1x32xf32> to vector<2x32xf32>
    %213 = arith.mulf %195, %212 : vector<2x32xf32>
    %cst_83 = arith.constant dense<0.000000e+00> : vector<2xf32>
    %214 = vector.multi_reduction <add>, %213, %cst_83 [1] : vector<2x32xf32> to vector<2xf32>
    %215 = vector.shape_cast %214 : vector<2xf32> to vector<2x1xf32>
    %cst_84 = arith.constant 1.000000e+00 : f32
    %216 = vector.broadcast %cst_84 : f32 to vector<2x1xf32>
    %217 = arith.mulf %215, %216 : vector<2x1xf32>
    %218 = arith.maximumf %210, %217 : vector<2x1xf32>
    %219 = arith.subf %210, %218 : vector<2x1xf32>
    %220 = math.exp %219 : vector<2x1xf32>
    %221 = arith.subf %217, %218 : vector<2x1xf32>
    %222 = math.exp %221 : vector<2x1xf32>
    %223 = arith.addf %220, %222 : vector<2x1xf32>
    %224 = math.log %223 : vector<2x1xf32>
    %225 = arith.addf %218, %224 : vector<2x1xf32>
    %226 = arith.mulf %195, %203 : vector<2x32xf32>
    %cst_85 = arith.constant dense<0.000000e+00> : vector<2xf32>
    %227 = vector.multi_reduction <add>, %226, %cst_85 [1] : vector<2x32xf32> to vector<2xf32>
    %228 = vector.shape_cast %227 : vector<2xf32> to vector<2x1xf32>
    %cst_86 = arith.constant 1.000000e+00 : f32
    %229 = vector.broadcast %cst_86 : f32 to vector<2x1xf32>
    %230 = arith.mulf %228, %229 : vector<2x1xf32>
    %231 = arith.subf %225, %230 : vector<2x1xf32>
    %cst_87 = arith.constant dense<0.000000e+00> : vector<1xf32>
    %232 = vector.multi_reduction <add>, %231, %cst_87 [0] : vector<2x1xf32> to vector<1xf32>
    %233 = vector.shape_cast %232 : vector<1xf32> to vector<1x1xf32>
    %cst_88 = arith.constant 1.000000e+00 : f32
    %234 = vector.broadcast %cst_88 : f32 to vector<1x1xf32>
    %235 = arith.mulf %233, %234 : vector<1x1xf32>
    %236 = arith.mulf %185, %185 : vector<2x32xf32>
    %cst_89 = arith.constant dense<0.000000e+00> : vector<2xf32>
    %237 = vector.multi_reduction <add>, %236, %cst_89 [1] : vector<2x32xf32> to vector<2xf32>
    %238 = vector.shape_cast %237 : vector<2xf32> to vector<2x1xf32>
    %cst_90 = arith.constant 1.000000e-24 : f32
    %239 = vector.broadcast %cst_90 : f32 to vector<2x1xf32>
    %240 = arith.maximumf %238, %239 : vector<2x1xf32>
    %241 = math.rsqrt %240 : vector<2x1xf32>
    %242 = vector.broadcast %241 : vector<2x1xf32> to vector<2x32xf32>
    %243 = arith.mulf %185, %242 : vector<2x32xf32>
    %244 = arith.mulf %186, %186 : vector<2x32xf32>
    %cst_91 = arith.constant dense<0.000000e+00> : vector<2xf32>
    %245 = vector.multi_reduction <add>, %244, %cst_91 [1] : vector<2x32xf32> to vector<2xf32>
    %246 = vector.shape_cast %245 : vector<2xf32> to vector<2x1xf32>
    %cst_92 = arith.constant 1.000000e-24 : f32
    %247 = vector.broadcast %cst_92 : f32 to vector<2x1xf32>
    %248 = arith.maximumf %246, %247 : vector<2x1xf32>
    %249 = math.rsqrt %248 : vector<2x1xf32>
    %250 = vector.broadcast %249 : vector<2x1xf32> to vector<2x32xf32>
    %251 = arith.mulf %186, %250 : vector<2x32xf32>
    %252 = vector.extract_strided_slice %251 {offsets = [0, 0], sizes = [1, 32], strides = [1, 1]} : vector<2x32xf32> to vector<1x32xf32>
    %253 = vector.broadcast %252 : vector<1x32xf32> to vector<2x32xf32>
    %254 = arith.mulf %243, %253 : vector<2x32xf32>
    %cst_93 = arith.constant dense<0.000000e+00> : vector<2xf32>
    %255 = vector.multi_reduction <add>, %254, %cst_93 [1] : vector<2x32xf32> to vector<2xf32>
    %256 = vector.shape_cast %255 : vector<2xf32> to vector<2x1xf32>
    %cst_94 = arith.constant 1.000000e+00 : f32
    %257 = vector.broadcast %cst_94 : f32 to vector<2x1xf32>
    %258 = arith.mulf %256, %257 : vector<2x1xf32>
    %259 = vector.extract_strided_slice %251 {offsets = [1, 0], sizes = [1, 32], strides = [1, 1]} : vector<2x32xf32> to vector<1x32xf32>
    %260 = vector.broadcast %259 : vector<1x32xf32> to vector<2x32xf32>
    %261 = arith.mulf %243, %260 : vector<2x32xf32>
    %cst_95 = arith.constant dense<0.000000e+00> : vector<2xf32>
    %262 = vector.multi_reduction <add>, %261, %cst_95 [1] : vector<2x32xf32> to vector<2xf32>
    %263 = vector.shape_cast %262 : vector<2xf32> to vector<2x1xf32>
    %cst_96 = arith.constant 1.000000e+00 : f32
    %264 = vector.broadcast %cst_96 : f32 to vector<2x1xf32>
    %265 = arith.mulf %263, %264 : vector<2x1xf32>
    %266 = arith.maximumf %258, %265 : vector<2x1xf32>
    %267 = arith.subf %258, %266 : vector<2x1xf32>
    %268 = math.exp %267 : vector<2x1xf32>
    %269 = arith.subf %265, %266 : vector<2x1xf32>
    %270 = math.exp %269 : vector<2x1xf32>
    %271 = arith.addf %268, %270 : vector<2x1xf32>
    %272 = math.log %271 : vector<2x1xf32>
    %273 = arith.addf %266, %272 : vector<2x1xf32>
    %274 = arith.mulf %243, %251 : vector<2x32xf32>
    %cst_97 = arith.constant dense<0.000000e+00> : vector<2xf32>
    %275 = vector.multi_reduction <add>, %274, %cst_97 [1] : vector<2x32xf32> to vector<2xf32>
    %276 = vector.shape_cast %275 : vector<2xf32> to vector<2x1xf32>
    %cst_98 = arith.constant 1.000000e+00 : f32
    %277 = vector.broadcast %cst_98 : f32 to vector<2x1xf32>
    %278 = arith.mulf %276, %277 : vector<2x1xf32>
    %279 = arith.subf %273, %278 : vector<2x1xf32>
    %cst_99 = arith.constant dense<0.000000e+00> : vector<1xf32>
    %280 = vector.multi_reduction <add>, %279, %cst_99 [0] : vector<2x1xf32> to vector<1xf32>
    %281 = vector.shape_cast %280 : vector<1xf32> to vector<1x1xf32>
    %cst_100 = arith.constant 1.000000e+00 : f32
    %282 = vector.broadcast %cst_100 : f32 to vector<1x1xf32>
    %283 = arith.mulf %281, %282 : vector<1x1xf32>
    %284 = arith.addf %235, %283 : vector<1x1xf32>
    %285 = vector.shape_cast %284 : vector<1x1xf32> to vector<1x1xf32>
    %286 = vector.broadcast %285 : vector<1x1xf32> to vector<1x128xf32>
    %c7 = arith.constant 7 : index
    %c0_101 = arith.constant 0 : index
    %287 = vector.load %arg10[%c7, %c0_101] : memref<8x128xf32, #tpu.memory_space<vmem>>, vector<1x128xf32>
    tpu.vector_store %arg10[%c7, %c0_101], %286 {strides = array<i32>} : memref<8x128xf32, #tpu.memory_space<vmem>>, vector<1x128xf32>,
    return
  }
}

</mosaic_0001>

<bundles_post_ra>
// kernel: moco_forward.1
= control target key start
LH: loop header
LB: loop body
LE: loop exit
PB: predicated region body
PF: predicated region fallthrough
CT: control target
= control target key end

     0   :  { %vm813_vm0 = vcmask 523264   ;;  %s3550_s25 = smov 64   ;;  %vm1966_vm1 = vcmask 1048064   ;;  %vm2083_vm2 = vcmask 261120   ;;  %vm2485_vm3 = vcmask 523520   ;;  %s6115_s2 = inlined_call_operand.vmem [shape: bf16[1024,64], index: 2, kind: input, shape index: {}]   ;;  %s6116_s3 = inlined_call_operand.vmem [shape: f32[1024,64], index: 3, kind: input, shape index: {}, may-alias: {3,8}]   ;;  %s6117_s7 = inlined_call_operand.<no memory space> [shape: f32[1], index: 7, kind: input, shape index: {}]   ;;  %s6118_s8 = inlined_call_operand.vmem [shape: f32[1024,64], index: 8, kind: output, shape index: {0}, may-alias: {3,8}]   ;;  %s6119_s0 = inlined_call_operand.vmem [shape: f32[2,1024], index: 0, kind: input, shape index: {}]   ;;  %s6120_s1 = inlined_call_operand.vmem [shape: f32[2,1024], index: 1, kind: input, shape index: {}]   ;;  %s6121_s4 = inlined_call_operand.vmem [shape: f32[160,64], index: 4, kind: input, shape index: {}]   ;;  %s6122_s5 = inlined_call_operand.vmem [shape: f32[64,32], index: 5, kind: input, shape index: {}, may-alias: {5,9}]   ;;  %s6123_s6 = inlined_call_operand.vmem [shape: f32[8,128], index: 6, kind: input, shape index: {}, may-alias: {6,10}]   ;;  %s6124_s9 = inlined_call_operand.vmem [shape: f32[64,32], index: 9, kind: output, shape index: {1}, may-alias: {5,9}]   ;;  %s6125_s10 = inlined_call_operand.vmem [shape: f32[8,128], index: 10, kind: output, shape index: {2}, may-alias: {6,10}]  }
   0x1   :  { %s35_s15 = ssub.f32 1.0, %s6117_s7  ;;  %v3617_v0 = vstv %s6117_s7  ;;  %v61_v1 = vld [vmem:[%s6116_s3 + $0x80] sm:$0xff]  ;;  %v62_v2 = vld [vmem:[%s6116_s3 + $0x88] sm:$0xff]  ;;  %v63_v29 = vld [vmem:[%s6116_s3 + $0x90] sm:$0xff]  ;;  %vm3554_vm4 = vmmov 0   ;;  %vm2444_vm5 = vcmask 517120  }
   0x2   :  { %v3249_v3 = vld [vmem:[%s6115_s2 + $0x40] sm:$0xff]   ;;  %v189_v4 = vmul.f32 %v61_v1, %v3617_v0  ;;  %v190_v5 = vmul.f32 %v62_v2, %v3617_v0  ;;  %v94_v9 = vld [vmem:[%s6116_s3 + $0x188] sm:$0xff]  ;;  %v64_v34 = vld [vmem:[%s6116_s3 + $0x98] sm:$0xff]  ;;  %v191_v44 = vmul.f32 %v63_v29, %v3617_v0  ;;  %vm2447_vm6 = vcmask 1041920  }
   0x3   :  { %v3020_v6 = vunpack.c.l.bf16 %v3249_v3  ;;  %v3021_v7 = vunpack.c.h.bf16 %v3249_v3  ;;  %v93_v8 = vld [vmem:[%s6116_s3 + $0x180] sm:$0xff]  ;;  %v3639_v11 = vstv %s35_s15  ;;  %v222_v13 = vmul.f32 %v94_v9, %v3617_v0  ;;  %v46_v16 = vld [vmem:[%s6116_s3 + $0x8] sm:$0xff]  ;;  %v47_v40 = vld [vmem:[%s6116_s3 + $0x10] sm:$0xff] }
   0x4   :  { %v3265_v10 = vld [vmem:[%s6115_s2 + $0xc0] sm:$0xff]   ;;  %v221_v12 = vmul.f32 %v93_v8, %v3617_v0  ;;  %v78_v23 = vld [vmem:[%s6116_s3 + $0x108] sm:$0xff]  ;;  %v174_v25 = vmul.f32 %v46_v16, %v3617_v0  ;;  %v192_v49 = vmul.f32 %v64_v34, %v3617_v0  ;;  %v175_v55 = vmul.f32 %v47_v40, %v3617_v0 }
   0x5   :  { %v3084_v14 = vunpack.c.l.bf16 %v3265_v10  ;;  %v45_v15 = vld [vmem:[%s6116_s3] sm:$0xff]  ;;  %v573_v18 = vmul.f32 %v3020_v6, %v3639_v11  ;;  %v574_v19 = vmul.f32 %v3021_v7, %v3639_v11  ;;  %v3085_v20 = vunpack.c.h.bf16 %v3265_v10  ;;  %v3250_v35 = vld [vmem:[%s6115_s2 + $0x48] sm:$0xff]  }
   0x6   :  { %v2987_v17 = vld [vmem:[%s6115_s2] sm:$0xff]   ;;  %v173_v21 = vmul.f32 %v45_v15, %v3617_v0  ;;  %v206_v39 = vmul.f32 %v78_v23, %v3617_v0  ;;  %v3242_v46 = vld [vmem:[%s6115_s2 + $0x8] sm:$0xff]   ;;  %v3024_v50 = vunpack.c.l.bf16 %v3250_v35  ;;  %v3025_v54 = vunpack.c.h.bf16 %v3250_v35 }
   0x7   :  { %v77_v22 = vld [vmem:[%s6116_s3 + $0x100] sm:$0xff]  ;;  %v605_v24 = vmul.f32 %v3084_v14, %v3639_v11  ;;  %v2988_v26 = vunpack.c.l.bf16 %v2987_v17  ;;  %v2989_v27 = vunpack.c.h.bf16 %v2987_v17  ;;  %v701_v30 = vadd.f32 %v573_v18, %v189_v4  ;;  %v3266_v61 = vld [vmem:[%s6115_s2 + $0xc8] sm:$0xff]   ;;  %v3251_v17 = vld [vmem:[%s6115_s2 + $0x50] sm:$0xff]  }
   0x8   :  { %v3257_v28 = vld [vmem:[%s6115_s2 + $0x80] sm:$0xff]   ;;  %v702_v31 = vadd.f32 %v574_v19, %v190_v5  ;;  %v606_v32 = vmul.f32 %v3085_v20, %v3639_v11  ;;  %v205_v33 = vmul.f32 %v77_v22, %v3617_v0  ;;  %v575_v57 = vmul.f32 %v3024_v50, %v3639_v11  ;;  %v3258_v5 = vld [vmem:[%s6115_s2 + $0x88] sm:$0xff]  }
   0x9   :  { %v733_v36 = vadd.f32 %v605_v24, %v221_v12  ;;  %v557_v37 = vmul.f32 %v2988_v26, %v3639_v11  ;;  %v558_v38 = vmul.f32 %v2989_v27, %v3639_v11  ;;  %830 = vst.msk [vmem:[%s6118_s8 + $0x80] sm:$0xff] %vm813_vm0, %v701_v30  ;;  %v3052_v42 = vunpack.c.l.bf16 %v3257_v28 }
   0xa   :  { %831 = vst.msk [vmem:[%s6118_s8 + $0x88] sm:$0xff] %vm813_vm0, %v702_v31  ;;  %v734_v41 = vadd.f32 %v606_v32, %v222_v13  ;;  %v3053_v43 = vunpack.c.h.bf16 %v3257_v28  ;;  %v2992_v59 = vunpack.c.l.bf16 %v3242_v46  ;;  %v2993_v60 = vunpack.c.h.bf16 %v3242_v46 }
   0xb   :  { %v685_v47 = vadd.f32 %v557_v37, %v173_v21  ;;  %v686_v48 = vadd.f32 %v558_v38, %v174_v25  ;;  %v589_v52 = vmul.f32 %v3052_v42, %v3639_v11  ;;  %v576_v2 = vmul.f32 %v3025_v54, %v3639_v11 }
   0xc   :  { %v590_v53 = vmul.f32 %v3053_v43, %v3639_v11  ;;  %v703_v6 = vadd.f32 %v575_v57, %v191_v44  ;;  %v559_v7 = vmul.f32 %v2992_v59, %v3639_v11  ;;  %v560_v8 = vmul.f32 %v2993_v60, %v3639_v11 }
   0xd   :  { %v717_v63 = vadd.f32 %v589_v52, %v205_v33  ;;  %v704_v10 = vadd.f32 %v576_v2, %v192_v49  ;;  %v3088_v12 = vunpack.c.l.bf16 %v3266_v61  ;;  %v3089_v13 = vunpack.c.h.bf16 %v3266_v61  ;;  %v3267_v49 = vld [vmem:[%s6115_s2 + $0xd0] sm:$0xff]  }
   0xe   :  { %v718_v1 = vadd.f32 %v590_v53, %v206_v39  ;;  %v687_v20 = vadd.f32 %v559_v7, %v175_v55  ;;  %v3056_v23 = vunpack.c.l.bf16 %v3258_v5  ;;  %v3057_v28 = vunpack.c.h.bf16 %v3258_v5 }
   0xf   :  { %v607_v26 = vmul.f32 %v3088_v12, %v3639_v11  ;;  %v608_v27 = vmul.f32 %v3089_v13, %v3639_v11  ;;  %v3028_v34 = vunpack.c.l.bf16 %v3251_v17  ;;  %v3029_v46 = vunpack.c.h.bf16 %v3251_v17 }
  0x10   :  { %v1534_v18 = vld [vmem:[%s6118_s8 + $0x80] sm:$0xff]  ;;  %v591_v31 = vmul.f32 %v3056_v23, %v3639_v11  ;;  %v592_v42 = vmul.f32 %v3057_v28, %v3639_v11  ;;  %vm2710_vm7 = vcmask 254976   ;;  %vm2771_vm8 = vcmask 257026  }
  0x11   :  { %v48_v45 = vld [vmem:[%s6116_s3 + $0x18] sm:$0xff]  ;;  %v1535_v19 = vld [vmem:[%s6118_s8 + $0x88] sm:$0xff]  ;;  %v578_v57 = vmul.f32 %v3029_v46, %v3639_v11  ;;  %vm2823_vm10 = vcmask 1041408  }
  0x12   :  { %862 = vst.msk [vmem:[%s6118_s8 + $0x180] sm:$0xff] %vm813_vm0, %v733_v36  ;;  %v176_v58 = vmul.f32 %v48_v45, %v3617_v0  ;;  %v1654_v24 = vpack.c.bf16 %v1535_v19, %v1534_v18  ;;  %v3243_v36 = vld [vmem:[%s6115_s2 + $0x10] sm:$0xff]   ;;  %v3252_v19 = vld [vmem:[%s6115_s2 + $0x58] sm:$0xff]  }
  0x13   :  { %v2996_v53 = vunpack.c.l.bf16 %v3243_v36  ;;  %v2997_v59 = vunpack.c.h.bf16 %v3243_v36  ;;  %v3033_v36 = vunpack.c.h.bf16 %v3252_v19 }
  0x14   :  { %v688_v21 = vadd.f32 %v560_v8, %v176_v58  ;;  %1790 = vrot.lane.b32.xlu0 %v1654_v24, %s3550_s25  ;;  %v3093_v8 = vunpack.c.h.bf16 %v3267_v49 }
  0x15   :  { %v562_v7 = vmul.f32 %v2997_v59, %v3639_v11 }
  0x19   :  { %v95_v51 = vld [vmem:[%s6116_s3 + $0x190] sm:$0xff]  ;;  %v1566_v25 = vld [vmem:[%s6118_s8 + $0x180] sm:$0xff] }
  0x1a   :  { %863 = vst.msk [vmem:[%s6118_s8 + $0x188] sm:$0xff] %vm813_vm0, %v734_v41  ;;  %v223_v3 = vmul.f32 %v95_v51, %v3617_v0 }
  0x1c   :  { %v735_v40 = vadd.f32 %v607_v26, %v223_v3  ;;  %v3092_v3 = vunpack.c.l.bf16 %v3267_v49  ;;  %v3268_v49 = vld [vmem:[%s6115_s2 + $0xd8] sm:$0xff]  }
  0x1e   :  { %v609_v17 = vmul.f32 %v3092_v3, %v3639_v11 }
  0x21   :  { %v96_v56 = vld [vmem:[%s6116_s3 + $0x198] sm:$0xff]  ;;  %v1567_v30 = vld [vmem:[%s6118_s8 + $0x188] sm:$0xff] }
  0x22   :  { %814 = vst.msk [vmem:[%s6118_s8] sm:$0xff] %vm813_vm0, %v685_v47  ;;  %815 = vst.msk [vmem:[%s6118_s8 + $0x8] sm:$0xff] %vm813_vm0, %v686_v48  ;;  %v224_v9 = vmul.f32 %v96_v56, %v3617_v0  ;;  %v1670_v37 = vpack.c.bf16 %v1567_v30, %v1566_v25  ;;  %v577_v47 = vmul.f32 %v3028_v34, %v3639_v11  ;;  %v3244_v30 = vld [vmem:[%s6115_s2 + $0x18] sm:$0xff]  }
  0x24   :  { %v736_v41 = vadd.f32 %v608_v27, %v224_v9  ;;  %1822 = vrot.lane.b32.xlu1 %v1670_v37, %s3550_s25 }
  0x29   :  { %v79_v62 = vld [vmem:[%s6116_s3 + $0x110] sm:$0xff]  ;;  %v80_v4 = vld [vmem:[%s6116_s3 + $0x118] sm:$0xff]  ;;  %v1518_v38 = vld [vmem:[%s6118_s8] sm:$0xff] }
  0x2a   :  { %846 = vst.msk [vmem:[%s6118_s8 + $0x100] sm:$0xff] %vm813_vm0, %v717_v63  ;;  %847 = vst.msk [vmem:[%s6118_s8 + $0x108] sm:$0xff] %vm813_vm0, %v718_v1  ;;  %v207_v14 = vmul.f32 %v79_v62, %v3617_v0  ;;  %v208_v22 = vmul.f32 %v80_v4, %v3617_v0  ;;  %v1519_v39 = vld [vmem:[%s6118_s8 + $0x8] sm:$0xff]  ;;  %v561_v1 = vmul.f32 %v2996_v53, %v3639_v11  ;;  %v3259_v4 = vld [vmem:[%s6115_s2 + $0x90] sm:$0xff]  }
  0x2b   :  { %v1646_v44 = vpack.c.bf16 %v1519_v39, %v1518_v38  ;;  %v3060_v23 = vunpack.c.l.bf16 %v3259_v4  ;;  %v3061_v27 = vunpack.c.h.bf16 %v3259_v4 }
  0x2c   :  { %v719_v45 = vadd.f32 %v591_v31, %v207_v14  ;;  %v720_v50 = vadd.f32 %v592_v42, %v208_v22  ;;  %v610_v22 = vmul.f32 %v3093_v8, %v3639_v11 }
  0x2d   :  { %1774 = vrot.lane.b32.xlu0 %v1646_v44, %s3550_s25  ;;  %v593_v34 = vmul.f32 %v3060_v23, %v3639_v11 }
  0x31   :  { %v65_v15 = vld [vmem:[%s6116_s3 + $0xa0] sm:$0xff]  ;;  %v66_v16 = vld [vmem:[%s6116_s3 + $0xa8] sm:$0xff] }
  0x32   :  { %832 = vst.msk [vmem:[%s6118_s8 + $0x90] sm:$0xff] %vm813_vm0, %v703_v6  ;;  %833 = vst.msk [vmem:[%s6118_s8 + $0x98] sm:$0xff] %vm813_vm0, %v704_v10  ;;  %v193_v32 = vmul.f32 %v65_v15, %v3617_v0  ;;  %v194_v33 = vmul.f32 %v66_v16, %v3617_v0  ;;  %v1550_v55 = vld [vmem:[%s6118_s8 + $0x100] sm:$0xff]  ;;  %v1551_v56 = vld [vmem:[%s6118_s8 + $0x108] sm:$0xff] }
  0x33   :  { %v1662_v62 = vpack.c.bf16 %v1551_v56, %v1550_v55 }
  0x34   :  { %v705_v58 = vadd.f32 %v577_v47, %v193_v32  ;;  %v706_v6 = vadd.f32 %v578_v57, %v194_v33  ;;  %v580_v47 = vmul.f32 %v3033_v36, %v3639_v11  ;;  %v3260_v57 = vld [vmem:[%s6115_s2 + $0x98] sm:$0xff]  }
  0x35   :  { %1806 = vrot.lane.b32.xlu1 %v1662_v62, %s3550_s25 }
  0x39   :  { %v49_v29 = vld [vmem:[%s6116_s3 + $0x20] sm:$0xff]  ;;  %v1536_v63 = vld [vmem:[%s6118_s8 + $0x90] sm:$0xff]  ;;  %v1537_v5 = vld [vmem:[%s6118_s8 + $0x98] sm:$0xff] }
  0x3a   :  { %816 = vst.msk [vmem:[%s6118_s8 + $0x10] sm:$0xff] %vm813_vm0, %v687_v20  ;;  %817 = vst.msk [vmem:[%s6118_s8 + $0x18] sm:$0xff] %vm813_vm0, %v688_v21  ;;  %v177_v51 = vmul.f32 %v49_v29, %v3617_v0  ;;  %v1655_v13 = vpack.c.bf16 %v1537_v5, %v1536_v63 }
  0x3c   :  { %v689_v16 = vadd.f32 %v561_v1, %v177_v51  ;;  %1792 = vrot.lane.b32.xlu0 %v1655_v13, %s3550_s25  ;;  %v3096_v1 = vunpack.c.l.bf16 %v3268_v49 }
  0x41   :  { %v50_v35 = vld [vmem:[%s6116_s3 + $0x28] sm:$0xff]  ;;  %v97_v43 = vld [vmem:[%s6116_s3 + $0x1a0] sm:$0xff]  ;;  %v1520_v14 = vld [vmem:[%s6118_s8 + $0x10] sm:$0xff] }
  0x42   :  { %v98_v48 = vld [vmem:[%s6116_s3 + $0x1a8] sm:$0xff]  ;;  %v178_v52 = vmul.f32 %v50_v35, %v3617_v0  ;;  %v225_v60 = vmul.f32 %v97_v43, %v3617_v0  ;;  %v1521_v15 = vld [vmem:[%s6118_s8 + $0x18] sm:$0xff]  ;;  %v3032_v35 = vunpack.c.l.bf16 %v3252_v19 }
  0x43   :  { %864 = vst.msk [vmem:[%s6118_s8 + $0x190] sm:$0xff] %vm813_vm0, %v735_v40  ;;  %865 = vst.msk [vmem:[%s6118_s8 + $0x198] sm:$0xff] %vm813_vm0, %v736_v41  ;;  %v226_v2 = vmul.f32 %v98_v48, %v3617_v0  ;;  %v1647_v20 = vpack.c.bf16 %v1521_v15, %v1520_v14  ;;  %v594_v40 = vmul.f32 %v3061_v27, %v3639_v11  ;;  %v3000_v48 = vunpack.c.l.bf16 %v3244_v30 }
  0x44   :  { %v690_v21 = vadd.f32 %v562_v7, %v178_v52  ;;  %v737_v26 = vadd.f32 %v609_v17, %v225_v60  ;;  %v579_v46 = vmul.f32 %v3032_v35, %v3639_v11  ;;  %v611_v15 = vmul.f32 %v3096_v1, %v3639_v11 }
  0x45   :  { %v738_v33 = vadd.f32 %v610_v22, %v226_v2  ;;  %1776 = vrot.lane.b32.xlu1 %v1647_v20, %s3550_s25  ;;  %v563_v60 = vmul.f32 %v3000_v48, %v3639_v11  ;;  %v3097_v2 = vunpack.c.h.bf16 %v3268_v49  ;;  %v3065_v17 = vunpack.c.h.bf16 %v3260_v57 }
  0x4a   :  { %v81_v54 = vld [vmem:[%s6116_s3 + $0x120] sm:$0xff]  ;;  %v1568_v31 = vld [vmem:[%s6118_s8 + $0x190] sm:$0xff]  ;;  %v1569_v32 = vld [vmem:[%s6118_s8 + $0x198] sm:$0xff] }
  0x4b   :  { %848 = vst.msk [vmem:[%s6118_s8 + $0x110] sm:$0xff] %vm813_vm0, %v719_v45  ;;  %v209_v9 = vmul.f32 %v81_v54, %v3617_v0  ;;  %v1671_v38 = vpack.c.bf16 %v1569_v32, %v1568_v31  ;;  %v3001_v54 = vunpack.c.h.bf16 %v3244_v30 }
  0x4d   :  { %v721_v45 = vadd.f32 %v593_v34, %v209_v9  ;;  %1824 = vrot.lane.b32.xlu0 %v1671_v38, %s3550_s25  ;;  %v564_v63 = vmul.f32 %v3001_v54, %v3639_v11 }
  0x52   :  { %v82_v61 = vld [vmem:[%s6116_s3 + $0x128] sm:$0xff]  ;;  %v1552_v39 = vld [vmem:[%s6118_s8 + $0x110] sm:$0xff] }
  0x53   :  { %849 = vst.msk [vmem:[%s6118_s8 + $0x118] sm:$0xff] %vm813_vm0, %v720_v50  ;;  %834 = vst.msk [vmem:[%s6118_s8 + $0xa0] sm:$0xff] %vm813_vm0, %v705_v58  ;;  %v210_v18 = vmul.f32 %v82_v61, %v3617_v0 }
  0x55   :  { %v722_v53 = vadd.f32 %v594_v40, %v210_v18 }
  0x5a   :  { %v67_v10 = vld [vmem:[%s6116_s3 + $0xb0] sm:$0xff]  ;;  %v68_v12 = vld [vmem:[%s6116_s3 + $0xb8] sm:$0xff]  ;;  %v1538_v52 = vld [vmem:[%s6118_s8 + $0xa0] sm:$0xff] }
  0x5b   :  { %835 = vst.msk [vmem:[%s6118_s8 + $0xa8] sm:$0xff] %vm813_vm0, %v706_v6  ;;  %v195_v28 = vmul.f32 %v67_v10, %v3617_v0  ;;  %v196_v29 = vmul.f32 %v68_v12, %v3617_v0  ;;  %v1553_v44 = vld [vmem:[%s6118_s8 + $0x118] sm:$0xff]  ;;  %v3064_v10 = vunpack.c.l.bf16 %v3260_v57  ;;  %v3253_v12 = vld [vmem:[%s6115_s2 + $0x60] sm:$0xff]  }
  0x5c   :  { %v1663_v51 = vpack.c.bf16 %v1553_v44, %v1552_v39  ;;  %v3036_v30 = vunpack.c.l.bf16 %v3253_v12  ;;  %v3037_v35 = vunpack.c.h.bf16 %v3253_v12 }
  0x5d   :  { %v707_v58 = vadd.f32 %v579_v46, %v195_v28  ;;  %v708_v59 = vadd.f32 %v580_v47, %v196_v29  ;;  %v596_v29 = vmul.f32 %v3065_v17, %v3639_v11 }
  0x5e   :  { %1808 = vrot.lane.b32.xlu1 %v1663_v51, %s3550_s25  ;;  %v581_v40 = vmul.f32 %v3036_v30, %v3639_v11  ;;  %v582_v44 = vmul.f32 %v3037_v35, %v3639_v11 }
  0x62   :  { %v51_v24 = vld [vmem:[%s6116_s3 + $0x30] sm:$0xff]  ;;  %v52_v25 = vld [vmem:[%s6116_s3 + $0x38] sm:$0xff]  ;;  %v1539_v62 = vld [vmem:[%s6118_s8 + $0xa8] sm:$0xff] }
  0x63   :  { %818 = vst.msk [vmem:[%s6118_s8 + $0x20] sm:$0xff] %vm813_vm0, %v689_v16  ;;  %819 = vst.msk [vmem:[%s6118_s8 + $0x28] sm:$0xff] %vm813_vm0, %v690_v21  ;;  %v179_v41 = vmul.f32 %v51_v24, %v3617_v0  ;;  %v180_v42 = vmul.f32 %v52_v25, %v3617_v0  ;;  %v1656_v6 = vpack.c.bf16 %v1539_v62, %v1538_v52  ;;  %v3245_v25 = vld [vmem:[%s6115_s2 + $0x20] sm:$0xff]  }
  0x64   :  { %v612_v16 = vmul.f32 %v3097_v2, %v3639_v11  ;;  %v595_v21 = vmul.f32 %v3064_v10, %v3639_v11 }
  0x65   :  { %v691_v8 = vadd.f32 %v563_v60, %v179_v41  ;;  %v692_v14 = vadd.f32 %v564_v63, %v180_v42  ;;  %1794 = vrot.lane.b32.xlu0 %v1656_v6, %s3550_s25  ;;  %v3004_v42 = vunpack.c.l.bf16 %v3245_v25 }
  0x67   :  { %v565_v54 = vmul.f32 %v3004_v42, %v3639_v11 }
  0x6a   :  { %v99_v37 = vld [vmem:[%s6116_s3 + $0x1b0] sm:$0xff]  ;;  %v1522_v7 = vld [vmem:[%s6118_s8 + $0x20] sm:$0xff]  ;;  %v1523_v13 = vld [vmem:[%s6118_s8 + $0x28] sm:$0xff] }
  0x6b   :  { %866 = vst.msk [vmem:[%s6118_s8 + $0x1a0] sm:$0xff] %vm813_vm0, %v737_v26  ;;  %v227_v55 = vmul.f32 %v99_v37, %v3617_v0  ;;  %v1648_v19 = vpack.c.bf16 %v1523_v13, %v1522_v7  ;;  %v3269_v37 = vld [vmem:[%s6115_s2 + $0xe0] sm:$0xff]  }
  0x6c   :  { %v3101_v60 = vunpack.c.h.bf16 %v3269_v37 }
  0x6d   :  { %v739_v27 = vadd.f32 %v611_v15, %v227_v55  ;;  %1778 = vrot.lane.b32.xlu1 %v1648_v19, %s3550_s25  ;;  %v3100_v55 = vunpack.c.l.bf16 %v3269_v37 }
  0x6f   :  { %v613_v2 = vmul.f32 %v3100_v55, %v3639_v11 }
  0x72   :  { %v100_v43 = vld [vmem:[%s6116_s3 + $0x1b8] sm:$0xff]  ;;  %v1570_v20 = vld [vmem:[%s6118_s8 + $0x1a0] sm:$0xff] }
  0x73   :  { %867 = vst.msk [vmem:[%s6118_s8 + $0x1a8] sm:$0xff] %vm813_vm0, %v738_v33  ;;  %v228_v61 = vmul.f32 %v100_v43, %v3617_v0 }
  0x75   :  { %v740_v28 = vadd.f32 %v612_v16, %v228_v61 }
  0x7a   :  { %v83_v50 = vld [vmem:[%s6116_s3 + $0x130] sm:$0xff]  ;;  %v84_v56 = vld [vmem:[%s6116_s3 + $0x138] sm:$0xff]  ;;  %v1571_v26 = vld [vmem:[%s6118_s8 + $0x1a8] sm:$0xff] }
  0x7b   :  { %850 = vst.msk [vmem:[%s6118_s8 + $0x120] sm:$0xff] %vm813_vm0, %v721_v45  ;;  %851 = vst.msk [vmem:[%s6118_s8 + $0x128] sm:$0xff] %vm813_vm0, %v722_v53  ;;  %v211_v3 = vmul.f32 %v83_v50, %v3617_v0  ;;  %v212_v9 = vmul.f32 %v84_v56, %v3617_v0  ;;  %v1672_v33 = vpack.c.bf16 %v1571_v26, %v1570_v20  ;;  %v3005_v45 = vunpack.c.h.bf16 %v3245_v25  ;;  %v3261_v56 = vld [vmem:[%s6115_s2 + $0xa0] sm:$0xff]  }
  0x7c   :  { %v3069_v10 = vunpack.c.h.bf16 %v3261_v56 }
  0x7d   :  { %v723_v34 = vadd.f32 %v595_v21, %v211_v3  ;;  %v724_v39 = vadd.f32 %v596_v29, %v212_v9  ;;  %1826 = vrot.lane.b32.xlu0 %v1672_v33, %s3550_s25  ;;  %v3068_v9 = vunpack.c.l.bf16 %v3261_v56 }
  0x82   :  { %v69_v4 = vld [vmem:[%s6116_s3 + $0xc0] sm:$0xff]  ;;  %v70_v5 = vld [vmem:[%s6116_s3 + $0xc8] sm:$0xff] }
  0x83   :  { %836 = vst.msk [vmem:[%s6118_s8 + $0xb0] sm:$0xff] %vm813_vm0, %v707_v58  ;;  %837 = vst.msk [vmem:[%s6118_s8 + $0xb8] sm:$0xff] %vm813_vm0, %v708_v59  ;;  %v197_v22 = vmul.f32 %v69_v4, %v3617_v0  ;;  %v198_v23 = vmul.f32 %v70_v5, %v3617_v0  ;;  %v1554_v38 = vld [vmem:[%s6118_s8 + $0x120] sm:$0xff]  ;;  %v1555_v43 = vld [vmem:[%s6118_s8 + $0x128] sm:$0xff]  ;;  %v566_v59 = vmul.f32 %v3005_v45, %v3639_v11 }
  0x84   :  { %v1664_v50 = vpack.c.bf16 %v1555_v43, %v1554_v38  ;;  %v3254_v5 = vld [vmem:[%s6115_s2 + $0x68] sm:$0xff]  }
  0x85   :  { %v709_v53 = vadd.f32 %v581_v40, %v197_v22  ;;  %v710_v58 = vadd.f32 %v582_v44, %v198_v23  ;;  %v597_v22 = vmul.f32 %v3068_v9, %v3639_v11  ;;  %v598_v23 = vmul.f32 %v3069_v10, %v3639_v11 }
  0x86   :  { %1810 = vrot.lane.b32.xlu1 %v1664_v50, %s3550_s25 }
  0x8a   :  { %v53_v18 = vld [vmem:[%s6116_s3 + $0x40] sm:$0xff]  ;;  %v1540_v51 = vld [vmem:[%s6118_s8 + $0xb0] sm:$0xff]  ;;  %v1541_v52 = vld [vmem:[%s6118_s8 + $0xb8] sm:$0xff] }
  0x8b   :  { %820 = vst.msk [vmem:[%s6118_s8 + $0x30] sm:$0xff] %vm813_vm0, %v691_v8  ;;  %v181_v36 = vmul.f32 %v53_v18, %v3617_v0  ;;  %v1657_v57 = vpack.c.bf16 %v1541_v52, %v1540_v51  ;;  %v614_v8 = vmul.f32 %v3101_v60, %v3639_v11  ;;  %v3246_v18 = vld [vmem:[%s6115_s2 + $0x28] sm:$0xff]  }
  0x8c   :  { %v3008_v37 = vunpack.c.l.bf16 %v3246_v18 }
  0x8d   :  { %v693_v1 = vadd.f32 %v565_v54, %v181_v36  ;;  %1796 = vrot.lane.b32.xlu0 %v1657_v57, %s3550_s25 }
  0x92   :  { %v54_v24 = vld [vmem:[%s6116_s3 + $0x48] sm:$0xff]  ;;  %v1524_v63 = vld [vmem:[%s6118_s8 + $0x30] sm:$0xff] }
  0x93   :  { %821 = vst.msk [vmem:[%s6118_s8 + $0x38] sm:$0xff] %vm813_vm0, %v692_v14  ;;  %v182_v41 = vmul.f32 %v54_v24, %v3617_v0  ;;  %v3040_v24 = vunpack.c.l.bf16 %v3254_v5 }
  0x95   :  { %v694_v7 = vadd.f32 %v566_v59, %v182_v41  ;;  %v583_v36 = vmul.f32 %v3040_v24, %v3639_v11  ;;  %v3009_v41 = vunpack.c.h.bf16 %v3246_v18 }
  0x97   :  { %v568_v52 = vmul.f32 %v3009_v41, %v3639_v11 }
  0x9a   :  { %v101_v31 = vld [vmem:[%s6116_s3 + $0x1c0] sm:$0xff]  ;;  %v102_v32 = vld [vmem:[%s6116_s3 + $0x1c8] sm:$0xff]  ;;  %v1525_v6 = vld [vmem:[%s6118_s8 + $0x38] sm:$0xff] }
  0x9b   :  { %868 = vst.msk [vmem:[%s6118_s8 + $0x1b0] sm:$0xff] %vm813_vm0, %v739_v27  ;;  %869 = vst.msk [vmem:[%s6118_s8 + $0x1b8] sm:$0xff] %vm813_vm0, %v740_v28  ;;  %v229_v46 = vmul.f32 %v101_v31, %v3617_v0  ;;  %v230_v47 = vmul.f32 %v102_v32, %v3617_v0  ;;  %v1649_v14 = vpack.c.bf16 %v1525_v6, %v1524_v63  ;;  %v3041_v28 = vunpack.c.h.bf16 %v3254_v5  ;;  %v3270_v32 = vld [vmem:[%s6115_s2 + $0xe8] sm:$0xff]  }
  0x9c   :  { %852 = vst.msk [vmem:[%s6118_s8 + $0x130] sm:$0xff] %vm813_vm0, %v723_v34 }
  0x9d   :  { %v741_v15 = vadd.f32 %v613_v2, %v229_v46  ;;  %v742_v21 = vadd.f32 %v614_v8, %v230_v47  ;;  %1780 = vrot.lane.b32.xlu1 %v1649_v14, %s3550_s25  ;;  %v584_v40 = vmul.f32 %v3041_v28, %v3639_v11  ;;  %v567_v46 = vmul.f32 %v3008_v37, %v3639_v11 }
  0xa2   :  { %v1572_v19 = vld [vmem:[%s6118_s8 + $0x1b0] sm:$0xff]  ;;  %v1573_v20 = vld [vmem:[%s6118_s8 + $0x1b8] sm:$0xff] }
  0xa3   :  { %v85_v48 = vld [vmem:[%s6116_s3 + $0x140] sm:$0xff]  ;;  %v86_v49 = vld [vmem:[%s6116_s3 + $0x148] sm:$0xff]  ;;  %v1673_v26 = vpack.c.bf16 %v1573_v20, %v1572_v19  ;;  %v1556_v27 = vld [vmem:[%s6118_s8 + $0x130] sm:$0xff] }
  0xa4   :  { %853 = vst.msk [vmem:[%s6118_s8 + $0x138] sm:$0xff] %vm813_vm0, %v724_v39  ;;  %v213_v3 = vmul.f32 %v85_v48, %v3617_v0  ;;  %v214_v4 = vmul.f32 %v86_v49, %v3617_v0  ;;  %v3104_v48 = vunpack.c.l.bf16 %v3270_v32  ;;  %v3262_v49 = vld [vmem:[%s6115_s2 + $0xa8] sm:$0xff]  }
  0xa5   :  { %1828 = vrot.lane.b32.xlu0 %v1673_v26, %s3550_s25 }
  0xa6   :  { %v725_v34 = vadd.f32 %v597_v22, %v213_v3  ;;  %v726_v35 = vadd.f32 %v598_v23, %v214_v4  ;;  %v615_v60 = vmul.f32 %v3104_v48, %v3639_v11  ;;  %v3072_v3 = vunpack.c.l.bf16 %v3262_v49 }
  0xa7   :  { %v3073_v4 = vunpack.c.h.bf16 %v3262_v49 }
  0xab   :  { %v71_v61 = vld [vmem:[%s6116_s3 + $0xd0] sm:$0xff]  ;;  %v72_v62 = vld [vmem:[%s6116_s3 + $0xd8] sm:$0xff] }
  0xac   :  { %838 = vst.msk [vmem:[%s6118_s8 + $0xc0] sm:$0xff] %vm813_vm0, %v709_v53  ;;  %839 = vst.msk [vmem:[%s6118_s8 + $0xc8] sm:$0xff] %vm813_vm0, %v710_v58  ;;  %v199_v16 = vmul.f32 %v71_v61, %v3617_v0  ;;  %v200_v17 = vmul.f32 %v72_v62, %v3617_v0  ;;  %v1557_v33 = vld [vmem:[%s6118_s8 + $0x138] sm:$0xff]  ;;  %v3105_v53 = vunpack.c.h.bf16 %v3270_v32  ;;  %v3255_v62 = vld [vmem:[%s6115_s2 + $0x70] sm:$0xff]  }
  0xad   :  { %v1665_v39 = vpack.c.bf16 %v1557_v33, %v1556_v27  ;;  %v3044_v18 = vunpack.c.l.bf16 %v3255_v62 }
  0xae   :  { %v711_v45 = vadd.f32 %v583_v36, %v199_v16  ;;  %v712_v51 = vadd.f32 %v584_v40, %v200_v17  ;;  %v616_v2 = vmul.f32 %v3105_v53, %v3639_v11  ;;  %v599_v16 = vmul.f32 %v3072_v3, %v3639_v11 }
  0xaf   :  { %1812 = vrot.lane.b32.xlu1 %v1665_v39, %s3550_s25  ;;  %v600_v17 = vmul.f32 %v3073_v4, %v3639_v11 }
  0xb3   :  { %v55_v12 = vld [vmem:[%s6116_s3 + $0x50] sm:$0xff]  ;;  %v56_v13 = vld [vmem:[%s6116_s3 + $0x58] sm:$0xff]  ;;  %v1542_v44 = vld [vmem:[%s6118_s8 + $0xc0] sm:$0xff] }
  0xb4   :  { %822 = vst.msk [vmem:[%s6118_s8 + $0x40] sm:$0xff] %vm813_vm0, %v693_v1  ;;  %823 = vst.msk [vmem:[%s6118_s8 + $0x48] sm:$0xff] %vm813_vm0, %v694_v7  ;;  %v183_v29 = vmul.f32 %v55_v12, %v3617_v0  ;;  %v184_v30 = vmul.f32 %v56_v13, %v3617_v0  ;;  %v1543_v50 = vld [vmem:[%s6118_s8 + $0xc8] sm:$0xff]  ;;  %v3247_v13 = vld [vmem:[%s6115_s2 + $0x30] sm:$0xff]  }
  0xb5   :  { %v1658_v57 = vpack.c.bf16 %v1543_v50, %v1542_v44 }
  0xb6   :  { %v695_v59 = vadd.f32 %v567_v46, %v183_v29  ;;  %v696_v1 = vadd.f32 %v568_v52, %v184_v30  ;;  %v585_v30 = vmul.f32 %v3044_v18, %v3639_v11 }
  0xb7   :  { %1798 = vrot.lane.b32.xlu0 %v1658_v57, %s3550_s25 }
  0xbb   :  { %v103_v25 = vld [vmem:[%s6116_s3 + $0x1d0] sm:$0xff]  ;;  %v1526_v58 = vld [vmem:[%s6118_s8 + $0x40] sm:$0xff]  ;;  %v1527_v63 = vld [vmem:[%s6118_s8 + $0x48] sm:$0xff] }
  0xbc   :  { %870 = vst.msk [vmem:[%s6118_s8 + $0x1c0] sm:$0xff] %vm813_vm0, %v741_v15  ;;  %v231_v42 = vmul.f32 %v103_v25, %v3617_v0  ;;  %v1650_v7 = vpack.c.bf16 %v1527_v63, %v1526_v58  ;;  %v3271_v25 = vld [vmem:[%s6115_s2 + $0xf0] sm:$0xff]  }
  0xbe   :  { %v743_v9 = vadd.f32 %v615_v60, %v231_v42  ;;  %1782 = vrot.lane.b32.xlu1 %v1650_v7, %s3550_s25  ;;  %v3108_v42 = vunpack.c.l.bf16 %v3271_v25 }
  0xc3   :  { %v104_v31 = vld [vmem:[%s6116_s3 + $0x1d8] sm:$0xff]  ;;  %v1574_v8 = vld [vmem:[%s6118_s8 + $0x1c0] sm:$0xff] }
  0xc4   :  { %871 = vst.msk [vmem:[%s6118_s8 + $0x1c8] sm:$0xff] %vm813_vm0, %v742_v21  ;;  %v232_v47 = vmul.f32 %v104_v31, %v3617_v0  ;;  %v3045_v21 = vunpack.c.h.bf16 %v3255_v62  ;;  %v3012_v31 = vunpack.c.l.bf16 %v3247_v13 }
  0xc6   :  { %v744_v15 = vadd.f32 %v616_v2, %v232_v47  ;;  %v569_v40 = vmul.f32 %v3012_v31, %v3639_v11  ;;  %v3109_v47 = vunpack.c.h.bf16 %v3271_v25 }
  0xcb   :  { %v87_v38 = vld [vmem:[%s6116_s3 + $0x150] sm:$0xff]  ;;  %v88_v43 = vld [vmem:[%s6116_s3 + $0x158] sm:$0xff]  ;;  %v1575_v14 = vld [vmem:[%s6118_s8 + $0x1c8] sm:$0xff] }
  0xcc   :  { %854 = vst.msk [vmem:[%s6118_s8 + $0x140] sm:$0xff] %vm813_vm0, %v725_v34  ;;  %855 = vst.msk [vmem:[%s6118_s8 + $0x148] sm:$0xff] %vm813_vm0, %v726_v35  ;;  %v215_v54 = vmul.f32 %v87_v38, %v3617_v0  ;;  %v216_v61 = vmul.f32 %v88_v43, %v3617_v0  ;;  %v1674_v20 = vpack.c.bf16 %v1575_v14, %v1574_v8  ;;  %v3013_v35 = vunpack.c.h.bf16 %v3247_v13  ;;  %v3263_v43 = vld [vmem:[%s6115_s2 + $0xb0] sm:$0xff]  }
  0xcd   :  { %v586_v34 = vmul.f32 %v3045_v21, %v3639_v11  ;;  %v3076_v60 = vunpack.c.l.bf16 %v3263_v43 }
  0xce   :  { %v727_v28 = vadd.f32 %v599_v16, %v215_v54  ;;  %v728_v29 = vadd.f32 %v600_v17, %v216_v61  ;;  %1830 = vrot.lane.b32.xlu0 %v1674_v20, %s3550_s25  ;;  %v570_v46 = vmul.f32 %v3013_v35, %v3639_v11  ;;  %v617_v54 = vmul.f32 %v3108_v42, %v3639_v11 }
  0xcf   :  { %v3077_v61 = vunpack.c.h.bf16 %v3263_v43 }
  0xd3   :  { %v73_v55 = vld [vmem:[%s6116_s3 + $0xe0] sm:$0xff]  ;;  %v74_v56 = vld [vmem:[%s6116_s3 + $0xe8] sm:$0xff] }
  0xd4   :  { %840 = vst.msk [vmem:[%s6118_s8 + $0xd0] sm:$0xff] %vm813_vm0, %v711_v45  ;;  %841 = vst.msk [vmem:[%s6118_s8 + $0xd8] sm:$0xff] %vm813_vm0, %v712_v51  ;;  %v201_v10 = vmul.f32 %v73_v55, %v3617_v0  ;;  %v202_v12 = vmul.f32 %v74_v56, %v3617_v0  ;;  %v1558_v26 = vld [vmem:[%s6118_s8 + $0x140] sm:$0xff]  ;;  %v1559_v27 = vld [vmem:[%s6118_s8 + $0x148] sm:$0xff] }
  0xd5   :  { %v1666_v33 = vpack.c.bf16 %v1559_v27, %v1558_v26  ;;  %v3256_v56 = vld [vmem:[%s6115_s2 + $0x78] sm:$0xff]  }
  0xd6   :  { %v713_v39 = vadd.f32 %v585_v30, %v201_v10  ;;  %v714_v45 = vadd.f32 %v586_v34, %v202_v12  ;;  %v602_v10 = vmul.f32 %v3077_v61, %v3639_v11  ;;  %v3048_v12 = vunpack.c.l.bf16 %v3256_v56 }
  0xd7   :  { %1814 = vrot.lane.b32.xlu1 %v1666_v33, %s3550_s25 }
  0xdb   :  { %v57_v5 = vld [vmem:[%s6116_s3 + $0x60] sm:$0xff]  ;;  %v58_v6 = vld [vmem:[%s6116_s3 + $0x68] sm:$0xff]  ;;  %v1544_v38 = vld [vmem:[%s6118_s8 + $0xd0] sm:$0xff] }
  0xdc   :  { %824 = vst.msk [vmem:[%s6118_s8 + $0x50] sm:$0xff] %vm813_vm0, %v695_v59  ;;  %825 = vst.msk [vmem:[%s6118_s8 + $0x58] sm:$0xff] %vm813_vm0, %v696_v1  ;;  %v185_v22 = vmul.f32 %v57_v5, %v3617_v0  ;;  %v186_v23 = vmul.f32 %v58_v6, %v3617_v0  ;;  %v1545_v44 = vld [vmem:[%s6118_s8 + $0xd8] sm:$0xff]  ;;  %v618_v59 = vmul.f32 %v3109_v47, %v3639_v11 }
  0xdd   :  { %v1659_v51 = vpack.c.bf16 %v1545_v44, %v1544_v38  ;;  %v3248_v6 = vld [vmem:[%s6115_s2 + $0x38] sm:$0xff]  }
  0xde   :  { %v697_v53 = vadd.f32 %v569_v40, %v185_v22  ;;  %v698_v58 = vadd.f32 %v570_v46, %v186_v23  ;;  %v3016_v25 = vunpack.c.l.bf16 %v3248_v6 }
  0xdf   :  { %1800 = vrot.lane.b32.xlu0 %v1659_v51, %s3550_s25 }
  0xe0   :  { %v571_v34 = vmul.f32 %v3016_v25, %v3639_v11 }
  0xe3   :  { %v105_v19 = vld [vmem:[%s6116_s3 + $0x1e0] sm:$0xff]  ;;  %v1528_v52 = vld [vmem:[%s6118_s8 + $0x50] sm:$0xff]  ;;  %v1529_v57 = vld [vmem:[%s6118_s8 + $0x58] sm:$0xff] }
  0xe4   :  { %872 = vst.msk [vmem:[%s6118_s8 + $0x1d0] sm:$0xff] %vm813_vm0, %v743_v9  ;;  %v233_v36 = vmul.f32 %v105_v19, %v3617_v0  ;;  %v1651_v1 = vpack.c.bf16 %v1529_v57, %v1528_v52  ;;  %v601_v9 = vmul.f32 %v3076_v60, %v3639_v11  ;;  %v3272_v19 = vld [vmem:[%s6115_s2 + $0xf8] sm:$0xff]  }
  0xe6   :  { %v745_v3 = vadd.f32 %v617_v54, %v233_v36  ;;  %1784 = vrot.lane.b32.xlu1 %v1651_v1, %s3550_s25  ;;  %v3112_v36 = vunpack.c.l.bf16 %v3272_v19 }
  0xeb   :  { %v106_v24 = vld [vmem:[%s6116_s3 + $0x1e8] sm:$0xff]  ;;  %v1576_v2 = vld [vmem:[%s6118_s8 + $0x1d0] sm:$0xff] }
  0xec   :  { %873 = vst.msk [vmem:[%s6118_s8 + $0x1d8] sm:$0xff] %vm813_vm0, %v744_v15  ;;  %v234_v41 = vmul.f32 %v106_v24, %v3617_v0  ;;  %v3049_v15 = vunpack.c.h.bf16 %v3256_v56  ;;  %v587_v24 = vmul.f32 %v3048_v12, %v3639_v11 }
  0xee   :  { %v746_v8 = vadd.f32 %v618_v59, %v234_v41  ;;  %v3113_v41 = vunpack.c.h.bf16 %v3272_v19 }
  0xf3   :  { %v89_v32 = vld [vmem:[%s6116_s3 + $0x160] sm:$0xff]  ;;  %v90_v37 = vld [vmem:[%s6116_s3 + $0x168] sm:$0xff]  ;;  %v1577_v7 = vld [vmem:[%s6118_s8 + $0x1d8] sm:$0xff] }
  0xf4   :  { %856 = vst.msk [vmem:[%s6118_s8 + $0x150] sm:$0xff] %vm813_vm0, %v727_v28  ;;  %857 = vst.msk [vmem:[%s6118_s8 + $0x158] sm:$0xff] %vm813_vm0, %v728_v29  ;;  %v217_v48 = vmul.f32 %v89_v32, %v3617_v0  ;;  %v218_v55 = vmul.f32 %v90_v37, %v3617_v0  ;;  %v1675_v14 = vpack.c.bf16 %v1577_v7, %v1576_v2  ;;  %v3017_v29 = vunpack.c.h.bf16 %v3248_v6  ;;  %v3264_v37 = vld [vmem:[%s6115_s2 + $0xb8] sm:$0xff]  }
  0xf5   :  { %v588_v28 = vmul.f32 %v3049_v15, %v3639_v11  ;;  %v3080_v54 = vunpack.c.l.bf16 %v3264_v37 }
  0xf6   :  { %v729_v22 = vadd.f32 %v601_v9, %v217_v48  ;;  %v730_v23 = vadd.f32 %v602_v10, %v218_v55  ;;  %1832 = vrot.lane.b32.xlu0 %v1675_v14, %s3550_s25  ;;  %v572_v40 = vmul.f32 %v3017_v29, %v3639_v11  ;;  %v619_v48 = vmul.f32 %v3112_v36, %v3639_v11 }
  0xf7   :  { %v3081_v55 = vunpack.c.h.bf16 %v3264_v37 }
  0xfb   :  { %v75_v49 = vld [vmem:[%s6116_s3 + $0xf0] sm:$0xff]  ;;  %v76_v50 = vld [vmem:[%s6116_s3 + $0xf8] sm:$0xff] }
  0xfc   :  { %842 = vst.msk [vmem:[%s6118_s8 + $0xe0] sm:$0xff] %vm813_vm0, %v713_v39  ;;  %843 = vst.msk [vmem:[%s6118_s8 + $0xe8] sm:$0xff] %vm813_vm0, %v714_v45  ;;  %v203_v4 = vmul.f32 %v75_v49, %v3617_v0  ;;  %v204_v5 = vmul.f32 %v76_v50, %v3617_v0  ;;  %v1560_v20 = vld [vmem:[%s6118_s8 + $0x150] sm:$0xff]  ;;  %v1561_v21 = vld [vmem:[%s6118_s8 + $0x158] sm:$0xff] }
  0xfd   :  { %v1667_v27 = vpack.c.bf16 %v1561_v21, %v1560_v20  ;;  %v3281_v50 = vld [vmem:[%s6115_s2 + $0x140] sm:$0xff]  }
  0xfe   :  { %v715_v33 = vadd.f32 %v587_v24, %v203_v4  ;;  %v716_v39 = vadd.f32 %v588_v28, %v204_v5  ;;  %v604_v4 = vmul.f32 %v3081_v55, %v3639_v11  ;;  %v3148_v5 = vunpack.c.l.bf16 %v3281_v50 }
  0xff   :  { %1816 = vrot.lane.b32.xlu1 %v1667_v27, %s3550_s25 }
 0x103   :  { %v59_v62 = vld [vmem:[%s6116_s3 + $0x70] sm:$0xff]  ;;  %v60_v63 = vld [vmem:[%s6116_s3 + $0x78] sm:$0xff]  ;;  %v1546_v32 = vld [vmem:[%s6118_s8 + $0xe0] sm:$0xff] }
 0x104   :  { %826 = vst.msk [vmem:[%s6118_s8 + $0x60] sm:$0xff] %vm813_vm0, %v697_v53  ;;  %827 = vst.msk [vmem:[%s6118_s8 + $0x68] sm:$0xff] %vm813_vm0, %v698_v58  ;;  %v187_v16 = vmul.f32 %v59_v62, %v3617_v0  ;;  %v188_v17 = vmul.f32 %v60_v63, %v3617_v0  ;;  %v1547_v38 = vld [vmem:[%s6118_s8 + $0xe8] sm:$0xff]  ;;  %v620_v53 = vmul.f32 %v3113_v41, %v3639_v11  ;;  %v3273_v63 = vld [vmem:[%s6115_s2 + $0x100] sm:$0xff]  }
 0x105   :  { %v1660_v45 = vpack.c.bf16 %v1547_v38, %v1546_v32  ;;  %v3116_v19 = vunpack.c.l.bf16 %v3273_v63 }
 0x106   :  { %v699_v47 = vadd.f32 %v571_v34, %v187_v16  ;;  %v700_v52 = vadd.f32 %v572_v40, %v188_v17  ;;  %v3282_v34 = vld [vmem:[%s6115_s2 + $0x148] sm:$0xff]  }
 0x107   :  { %1802 = vrot.lane.b32.xlu0 %v1660_v45, %s3550_s25 }
 0x10b   :  { %v107_v13 = vld [vmem:[%s6116_s3 + $0x1f0] sm:$0xff]  ;;  %v1530_v46 = vld [vmem:[%s6118_s8 + $0x60] sm:$0xff]  ;;  %v1531_v51 = vld [vmem:[%s6118_s8 + $0x68] sm:$0xff] }
 0x10c   :  { %874 = vst.msk [vmem:[%s6118_s8 + $0x1e0] sm:$0xff] %vm813_vm0, %v745_v3  ;;  %v235_v30 = vmul.f32 %v107_v13, %v3617_v0  ;;  %v1652_v58 = vpack.c.bf16 %v1531_v51, %v1530_v46  ;;  %v603_v3 = vmul.f32 %v3080_v54, %v3639_v11  ;;  %v3297_v13 = vld [vmem:[%s6115_s2 + $0x1c0] sm:$0xff]  }
 0x10d   :  { %v3212_v32 = vunpack.c.l.bf16 %v3297_v13  ;;  %v3213_v38 = vunpack.c.h.bf16 %v3297_v13  ;;  %v3456_v54 = vld [vmem:[%s6115_s2 + $0x40] sm:$0xff]  }
 0x10e   :  { %v747_v60 = vadd.f32 %v619_v48, %v235_v30  ;;  %1786 = vrot.lane.b32.xlu1 %v1652_v58, %s3550_s25  ;;  %v621_v30 = vmul.f32 %v3116_v19, %v3639_v11  ;;  %1462 = vst.msk [vmem:[#allocation3 + $0x40] sm:$0xff] %vm813_vm0, %v3456_v54 }
 0x10f   :  { %v669_v45 = vmul.f32 %v3212_v32, %v3639_v11 }
 0x113   :  { %v108_v18 = vld [vmem:[%s6116_s3 + $0x1f8] sm:$0xff]  ;;  %v1578_v59 = vld [vmem:[%s6118_s8 + $0x1e0] sm:$0xff] }
 0x114   :  { %875 = vst.msk [vmem:[%s6118_s8 + $0x1e8] sm:$0xff] %vm813_vm0, %v746_v8  ;;  %v236_v35 = vmul.f32 %v108_v18, %v3617_v0  ;;  %v3149_v8 = vunpack.c.h.bf16 %v3281_v50  ;;  %v637_v18 = vmul.f32 %v3148_v5, %v3639_v11  ;;  %v670_v50 = vmul.f32 %v3213_v38, %v3639_v11 }
 0x115   :  { %v3153_v5 = vunpack.c.h.bf16 %v3282_v34 }
 0x116   :  { %v748_v2 = vadd.f32 %v620_v53, %v236_v35 }
 0x11b   :  { %v91_v26 = vld [vmem:[%s6116_s3 + $0x170] sm:$0xff]  ;;  %v92_v31 = vld [vmem:[%s6116_s3 + $0x178] sm:$0xff]  ;;  %v1579_v1 = vld [vmem:[%s6118_s8 + $0x1e8] sm:$0xff] }
 0x11c   :  { %858 = vst.msk [vmem:[%s6118_s8 + $0x160] sm:$0xff] %vm813_vm0, %v729_v22  ;;  %859 = vst.msk [vmem:[%s6118_s8 + $0x168] sm:$0xff] %vm813_vm0, %v730_v23  ;;  %v219_v42 = vmul.f32 %v91_v26, %v3617_v0  ;;  %v220_v49 = vmul.f32 %v92_v31, %v3617_v0  ;;  %v1676_v7 = vpack.c.bf16 %v1579_v1, %v1578_v59  ;;  %v3117_v23 = vunpack.c.h.bf16 %v3273_v63  ;;  %v3289_v26 = vld [vmem:[%s6115_s2 + $0x180] sm:$0xff]  }
 0x11d   :  { %v638_v22 = vmul.f32 %v3149_v8, %v3639_v11  ;;  %v3180_v51 = vunpack.c.l.bf16 %v3289_v26  ;;  %v3152_v1 = vunpack.c.l.bf16 %v3282_v34  ;;  %v3298_v8 = vld [vmem:[%s6115_s2 + $0x1c8] sm:$0xff]  }
 0x11e   :  { %v731_v16 = vadd.f32 %v603_v3, %v219_v42  ;;  %v732_v17 = vadd.f32 %v604_v4, %v220_v49  ;;  %1834 = vrot.lane.b32.xlu0 %v1676_v7, %s3550_s25  ;;  %v622_v37 = vmul.f32 %v3117_v23, %v3639_v11  ;;  %v3457_v3 = vld [vmem:[%s6115_s2 + $0xc0] sm:$0xff]  }
 0x11f   :  { %1478 = vst.msk [vmem:[#allocation3 + $0xc0] sm:$0xff] %vm813_vm0, %v3457_v3 }
 0x123   :  { %v125_v43 = vld [vmem:[%s6116_s3 + $0x280] sm:$0xff]  ;;  %v126_v44 = vld [vmem:[%s6116_s3 + $0x288] sm:$0xff] }
 0x124   :  { %844 = vst.msk [vmem:[%s6118_s8 + $0xf0] sm:$0xff] %vm813_vm0, %v715_v33  ;;  %845 = vst.msk [vmem:[%s6118_s8 + $0xf8] sm:$0xff] %vm813_vm0, %v716_v39  ;;  %v253_v61 = vmul.f32 %v125_v43, %v3617_v0  ;;  %v254_v62 = vmul.f32 %v126_v44, %v3617_v0  ;;  %v1562_v14 = vld [vmem:[%s6118_s8 + $0x160] sm:$0xff]  ;;  %v1563_v15 = vld [vmem:[%s6118_s8 + $0x168] sm:$0xff] }
 0x125   :  { %v1668_v21 = vpack.c.bf16 %v1563_v15, %v1562_v14 }
 0x126   :  { %v765_v29 = vadd.f32 %v637_v18, %v253_v61  ;;  %v766_v36 = vadd.f32 %v638_v22, %v254_v62  ;;  %v653_v62 = vmul.f32 %v3180_v51, %v3639_v11  ;;  %v3290_v18 = vld [vmem:[%s6115_s2 + $0x188] sm:$0xff]  }
 0x127   :  { %1818 = vrot.lane.b32.xlu1 %v1668_v21, %s3550_s25 }
 0x12b   :  { %v109_v56 = vld [vmem:[%s6116_s3 + $0x200] sm:$0xff]  ;;  %v110_v57 = vld [vmem:[%s6116_s3 + $0x208] sm:$0xff]  ;;  %v1548_v28 = vld [vmem:[%s6118_s8 + $0xf0] sm:$0xff] }
 0x12c   :  { %828 = vst.msk [vmem:[%s6118_s8 + $0x70] sm:$0xff] %vm813_vm0, %v699_v47  ;;  %829 = vst.msk [vmem:[%s6118_s8 + $0x78] sm:$0xff] %vm813_vm0, %v700_v52  ;;  %v237_v9 = vmul.f32 %v109_v56, %v3617_v0  ;;  %v238_v10 = vmul.f32 %v110_v57, %v3617_v0  ;;  %v1549_v35 = vld [vmem:[%s6118_s8 + $0xf8] sm:$0xff]  ;;  %v4569_v47 = vld [vmem:[%s6115_s2 + $0x108] sm:$0xff]   ;;  %v3181_v52 = vunpack.c.h.bf16 %v3289_v26 }
 0x12d   :  { %v1661_v42 = vpack.c.bf16 %v1549_v35, %v1548_v28  ;;  %v3121_v21 = vunpack.c.h.bf16 %v4569_v47  ;;  %v3217_v35 = vunpack.c.h.bf16 %v3298_v8 }
 0x12e   :  { %v749_v44 = vadd.f32 %v621_v30, %v237_v9  ;;  %v750_v49 = vadd.f32 %v622_v37, %v238_v10  ;;  %v654_v63 = vmul.f32 %v3181_v52, %v3639_v11  ;;  %v3283_v30 = vld [vmem:[%s6115_s2 + $0x150] sm:$0xff]   ;;  %v3459_v37 = vld [vmem:[%s6115_s2 + $0x80] sm:$0xff]  }
 0x12f   :  { %1804 = vrot.lane.b32.xlu0 %v1661_v42, %s3550_s25  ;;  %v624_v34 = vmul.f32 %v3121_v21, %v3639_v11  ;;  %1470 = vst.msk [vmem:[#allocation3 + $0x80] sm:$0xff] %vm813_vm0, %v3459_v37  ;;  %v3157_v3 = vunpack.c.h.bf16 %v3283_v30 }
 0x133   :  { %v157_v6 = vld [vmem:[%s6116_s3 + $0x380] sm:$0xff]  ;;  %v1532_v43 = vld [vmem:[%s6118_s8 + $0x70] sm:$0xff]  ;;  %v1533_v48 = vld [vmem:[%s6118_s8 + $0x78] sm:$0xff] }
 0x134   :  { %876 = vst.msk [vmem:[%s6118_s8 + $0x1f0] sm:$0xff] %vm813_vm0, %v747_v60  ;;  %v285_v24 = vmul.f32 %v157_v6, %v3617_v0  ;;  %v1653_v55 = vpack.c.bf16 %v1533_v48, %v1532_v43  ;;  %v3184_v48 = vunpack.c.l.bf16 %v3290_v18 }
 0x136   :  { %v797_v57 = vadd.f32 %v669_v45, %v285_v24  ;;  %1788 = vrot.lane.b32.xlu1 %v1653_v55, %s3550_s25 }
 0x13b   :  { %v158_v12 = vld [vmem:[%s6116_s3 + $0x388] sm:$0xff]  ;;  %v1580_v56 = vld [vmem:[%s6118_s8 + $0x1f0] sm:$0xff] }
 0x13c   :  { %877 = vst.msk [vmem:[%s6118_s8 + $0x1f8] sm:$0xff] %vm813_vm0, %v748_v2  ;;  %v286_v31 = vmul.f32 %v158_v12, %v3617_v0 }
 0x13e   :  { %v798_v61 = vadd.f32 %v670_v50, %v286_v31  ;;  %v3458_v31 = vld [vmem:[%s6115_s2] sm:$0xff]   ;;  %v3275_v50 = vld [vmem:[%s6115_s2 + $0x110] sm:$0xff]  }
 0x13f   :  { %1454 = vst.msk [vmem:[#allocation3] sm:$0xff] %vm813_vm0, %v3458_v31 }
 0x143   :  { %v141_v20 = vld [vmem:[%s6116_s3 + $0x300] sm:$0xff]  ;;  %v142_v25 = vld [vmem:[%s6116_s3 + $0x308] sm:$0xff]  ;;  %v127_v27 = vld [vmem:[%s6116_s3 + $0x290] sm:$0xff] }
 0x144   :  { %860 = vst.msk [vmem:[%s6118_s8 + $0x170] sm:$0xff] %vm813_vm0, %v731_v16  ;;  %861 = vst.msk [vmem:[%s6118_s8 + $0x178] sm:$0xff] %vm813_vm0, %v732_v17  ;;  %v269_v39 = vmul.f32 %v141_v20, %v3617_v0  ;;  %v270_v46 = vmul.f32 %v142_v25, %v3617_v0  ;;  %v255_v58 = vmul.f32 %v127_v27, %v3617_v0  ;;  %v1581_v60 = vld [vmem:[%s6118_s8 + $0x1f8] sm:$0xff]  ;;  %v3120_v17 = vunpack.c.l.bf16 %v4569_v47 }
 0x145   :  { %v1677_v4 = vpack.c.bf16 %v1581_v60, %v1580_v56  ;;  %v639_v16 = vmul.f32 %v3152_v1, %v3639_v11  ;;  %v640_v20 = vmul.f32 %v3153_v5, %v3639_v11  ;;  %v672_v47 = vmul.f32 %v3217_v35, %v3639_v11 }
 0x146   :  { %v781_v14 = vadd.f32 %v653_v62, %v269_v39  ;;  %v782_v15 = vadd.f32 %v654_v63, %v270_v46  ;;  %v623_v27 = vmul.f32 %v3120_v17, %v3639_v11  ;;  %v3156_v63 = vunpack.c.l.bf16 %v3283_v30 }
 0x147   :  { %1836 = vrot.lane.b32.xlu0 %v1677_v4, %s3550_s25  ;;  %v767_v26 = vadd.f32 %v639_v16, %v255_v58  ;;  %v3299_v58 = vld [vmem:[%s6115_s2 + $0x1d0] sm:$0xff]   ;;  %v642_v16 = vmul.f32 %v3157_v3, %v3639_v11  ;;  %v3125_v17 = vunpack.c.h.bf16 %v3275_v50 }
 0x149   :  { %v626_v31 = vmul.f32 %v3125_v17, %v3639_v11 }
 0x14b   :  { %v128_v33 = vld [vmem:[%s6116_s3 + $0x298] sm:$0xff]  ;;  %v111_v40 = vld [vmem:[%s6116_s3 + $0x210] sm:$0xff] }
 0x14c   :  { %v112_v41 = vld [vmem:[%s6116_s3 + $0x218] sm:$0xff]  ;;  %v256_v59 = vmul.f32 %v128_v33, %v3617_v0  ;;  %v239_v6 = vmul.f32 %v111_v40, %v3617_v0  ;;  %v1564_v12 = vld [vmem:[%s6118_s8 + $0x170] sm:$0xff] }
 0x14d   :  { %894 = vst.msk [vmem:[%s6118_s8 + $0x280] sm:$0xff] %vm813_vm0, %v765_v29  ;;  %895 = vst.msk [vmem:[%s6118_s8 + $0x288] sm:$0xff] %vm813_vm0, %v766_v36  ;;  %v240_v7 = vmul.f32 %v112_v41, %v3617_v0  ;;  %v1565_v13 = vld [vmem:[%s6118_s8 + $0x178] sm:$0xff]  ;;  %v3216_v29 = vunpack.c.l.bf16 %v3298_v8 }
 0x14e   :  { %v1669_v19 = vpack.c.bf16 %v1565_v13, %v1564_v12  ;;  %v768_v33 = vadd.f32 %v640_v20, %v256_v59  ;;  %v751_v40 = vadd.f32 %v623_v27, %v239_v6  ;;  %v3460_v6 = vld [vmem:[%s6115_s2 + $0x48] sm:$0xff]   ;;  %v641_v12 = vmul.f32 %v3156_v63, %v3639_v11  ;;  %v3291_v20 = vld [vmem:[%s6115_s2 + $0x190] sm:$0xff]  }
 0x14f   :  { %v671_v41 = vmul.f32 %v3216_v29, %v3639_v11  ;;  %v752_v46 = vadd.f32 %v624_v34, %v240_v7  ;;  %v3124_v13 = vunpack.c.l.bf16 %v3275_v50  ;;  %1463 = vst.msk [vmem:[#allocation3 + $0x48] sm:$0xff] %vm813_vm0, %v3460_v6  ;;  %v3464_v63 = vld [vmem:[%s6115_s2 + $0x50] sm:$0xff]  }
 0x150   :  { %1820 = vrot.lane.b32.xlu1 %v1669_v19, %s3550_s25  ;;  %v3465_v6 = vld [vmem:[%s6115_s2 + $0x10] sm:$0xff]   ;;  %1464 = vst.msk [vmem:[#allocation3 + $0x50] sm:$0xff] %vm813_vm0, %v3464_v63  ;;  %v3470_v63 = vld [vmem:[%s6115_s2 + $0xd8] sm:$0xff]  }
 0x151   :  { %1456 = vst.msk [vmem:[#allocation3 + $0x10] sm:$0xff] %vm813_vm0, %v3465_v6  ;;  %v3471_v6 = vld [vmem:[%s6115_s2 + $0x98] sm:$0xff]   ;;  %1481 = vst.msk [vmem:[#allocation3 + $0xd8] sm:$0xff] %vm813_vm0, %v3470_v63 }
 0x152   :  { %1473 = vst.msk [vmem:[#allocation3 + $0x98] sm:$0xff] %vm813_vm0, %v3471_v6  ;;  %v3477_v6 = vld [vmem:[%s6115_s2 + $0x28] sm:$0xff]  }
 0x153   :  { %1459 = vst.msk [vmem:[#allocation3 + $0x28] sm:$0xff] %vm813_vm0, %v3477_v6 }
 0x154   :  { %v159_v53 = vld [vmem:[%s6116_s3 + $0x390] sm:$0xff]  ;;  %v1598_v25 = vld [vmem:[%s6118_s8 + $0x280] sm:$0xff]  ;;  %v1599_v32 = vld [vmem:[%s6118_s8 + $0x288] sm:$0xff] }
 0x155   :  { %878 = vst.msk [vmem:[%s6118_s8 + $0x200] sm:$0xff] %vm813_vm0, %v749_v44  ;;  %879 = vst.msk [vmem:[%s6118_s8 + $0x208] sm:$0xff] %vm813_vm0, %v750_v49  ;;  %v287_v22 = vmul.f32 %v159_v53, %v3617_v0  ;;  %v1686_v38 = vpack.c.bf16 %v1599_v32, %v1598_v25  ;;  %v3185_v49 = vunpack.c.h.bf16 %v3290_v18  ;;  %v3221_v32 = vunpack.c.h.bf16 %v3299_v58 }
 0x157   :  { %1854 = vrot.lane.b32.xlu0 %v1686_v38, %s3550_s25  ;;  %v799_v54 = vadd.f32 %v671_v41, %v287_v22  ;;  %v656_v62 = vmul.f32 %v3185_v49, %v3639_v11  ;;  %v4823_v41 = vld [vmem:[%s6115_s2 + $0x118] sm:$0xff]  }
 0x158   :  { %v3129_v17 = vunpack.c.h.bf16 %v4823_v41 }
 0x15c   :  { %v160_v2 = vld [vmem:[%s6116_s3 + $0x398] sm:$0xff]  ;;  %v1582_v39 = vld [vmem:[%s6118_s8 + $0x200] sm:$0xff]  ;;  %v1583_v45 = vld [vmem:[%s6118_s8 + $0x208] sm:$0xff] }
 0x15d   :  { %926 = vst.msk [vmem:[%s6118_s8 + $0x380] sm:$0xff] %vm813_vm0, %v797_v57  ;;  %v288_v28 = vmul.f32 %v160_v2, %v3617_v0  ;;  %v1678_v52 = vpack.c.bf16 %v1583_v45, %v1582_v39  ;;  %v674_v45 = vmul.f32 %v3221_v32, %v3639_v11 }
 0x15f   :  { %v800_v60 = vadd.f32 %v672_v47, %v288_v28  ;;  %1838 = vrot.lane.b32.xlu1 %v1678_v52, %s3550_s25  ;;  %v4796_v28 = vld [vmem:[%s6115_s2 + $0x158] sm:$0xff]   ;;  %v3189_v47 = vunpack.c.h.bf16 %v3291_v20 }
 0x164   :  { %v143_v9 = vld [vmem:[%s6116_s3 + $0x310] sm:$0xff]  ;;  %v144_v10 = vld [vmem:[%s6116_s3 + $0x318] sm:$0xff]  ;;  %v1630_v53 = vld [vmem:[%s6118_s8 + $0x380] sm:$0xff] }
 0x165   :  { %927 = vst.msk [vmem:[%s6118_s8 + $0x388] sm:$0xff] %vm813_vm0, %v798_v61  ;;  %v271_v36 = vmul.f32 %v143_v9, %v3617_v0  ;;  %v272_v42 = vmul.f32 %v144_v10, %v3617_v0  ;;  %v655_v61 = vmul.f32 %v3184_v48, %v3639_v11 }
 0x167   :  { %v783_v9 = vadd.f32 %v655_v61, %v271_v36  ;;  %v784_v10 = vadd.f32 %v656_v62, %v272_v42  ;;  %v3462_v42 = vld [vmem:[%s6115_s2 + $0xc8] sm:$0xff]   ;;  %v3160_v61 = vunpack.c.l.bf16 %v4796_v28 }
 0x168   :  { %1479 = vst.msk [vmem:[#allocation3 + $0xc8] sm:$0xff] %vm813_vm0, %v3462_v42  ;;  %v3468_v42 = vld [vmem:[%s6115_s2 + $0x58] sm:$0xff]  }
 0x169   :  { %1465 = vst.msk [vmem:[#allocation3 + $0x58] sm:$0xff] %vm813_vm0, %v3468_v42  ;;  %v5121_v42 = vld [vmem:[%s6115_s2 + $0x128] sm:$0xff]  }
 0x16c   :  { %v129_v23 = vld [vmem:[%s6116_s3 + $0x2a0] sm:$0xff]  ;;  %v130_v24 = vld [vmem:[%s6116_s3 + $0x2a8] sm:$0xff] }
 0x16d   :  { %910 = vst.msk [vmem:[%s6118_s8 + $0x300] sm:$0xff] %vm813_vm0, %v781_v14  ;;  %911 = vst.msk [vmem:[%s6118_s8 + $0x308] sm:$0xff] %vm813_vm0, %v782_v15  ;;  %v257_v55 = vmul.f32 %v129_v23, %v3617_v0  ;;  %v258_v56 = vmul.f32 %v130_v24, %v3617_v0  ;;  %v1631_v59 = vld [vmem:[%s6118_s8 + $0x388] sm:$0xff]  ;;  %v625_v24 = vmul.f32 %v3124_v13, %v3639_v11  ;;  %v3128_v13 = vunpack.c.l.bf16 %v4823_v41  ;;  %v4970_v41 = vld [vmem:[%s6115_s2 + $0x120] sm:$0xff]  }
 0x16e   :  { %896 = vst.msk [vmem:[%s6118_s8 + $0x290] sm:$0xff] %vm813_vm0, %v767_v26  ;;  %v1702_v2 = vpack.c.bf16 %v1631_v59, %v1630_v53  ;;  %v3461_v14 = vld [vmem:[%s6115_s2 + $0x8] sm:$0xff]   ;;  %v3220_v26 = vunpack.c.l.bf16 %v3299_v58 }
 0x16f   :  { %v769_v23 = vadd.f32 %v641_v12, %v257_v55  ;;  %1455 = vst.msk [vmem:[#allocation3 + $0x8] sm:$0xff] %vm813_vm0, %v3461_v14  ;;  %v770_v30 = vadd.f32 %v642_v16, %v258_v56  ;;  %v4855_v55 = vld [vmem:[%s6115_s2 + $0x1d8] sm:$0xff]   ;;  %v3463_v56 = vld [vmem:[%s6115_s2 + $0x88] sm:$0xff]   ;;  %v643_v12 = vmul.f32 %v3160_v61, %v3639_v11 }
 0x170   :  { %1886 = vrot.lane.b32.xlu0 %v1702_v2, %s3550_s25  ;;  %v673_v39 = vmul.f32 %v3220_v26, %v3639_v11  ;;  %v3161_v2 = vunpack.c.h.bf16 %v4796_v28  ;;  %1471 = vst.msk [vmem:[#allocation3 + $0x88] sm:$0xff] %vm813_vm0, %v3463_v56  ;;  %v3292_v14 = vld [vmem:[%s6115_s2 + $0x198] sm:$0xff]   ;;  %v3224_v26 = vunpack.c.l.bf16 %v4855_v55  ;;  %v3467_v28 = vld [vmem:[%s6115_s2 + $0x90] sm:$0xff]   ;;  %v3225_v32 = vunpack.c.h.bf16 %v4855_v55  ;;  %v5006_v56 = vld [vmem:[%s6115_s2 + $0x1e0] sm:$0xff]  }
 0x171   :  { %1472 = vst.msk [vmem:[#allocation3 + $0x90] sm:$0xff] %vm813_vm0, %v3467_v28  ;;  %v3473_v28 = vld [vmem:[%s6115_s2 + $0x20] sm:$0xff]  }
 0x172   :  { %v644_v16 = vmul.f32 %v3161_v2, %v3639_v11  ;;  %1458 = vst.msk [vmem:[#allocation3 + $0x20] sm:$0xff] %vm813_vm0, %v3473_v28  ;;  %v5238_v28 = vld [vmem:[%s6115_s2 + $0x170] sm:$0xff]  }
 0x174   :  { %v1614_v7 = vld [vmem:[%s6118_s8 + $0x300] sm:$0xff]  ;;  %v1615_v8 = vld [vmem:[%s6118_s8 + $0x308] sm:$0xff] }
 0x175   :  { %v113_v43 = vld [vmem:[%s6116_s3 + $0x220] sm:$0xff]  ;;  %v114_v44 = vld [vmem:[%s6116_s3 + $0x228] sm:$0xff]  ;;  %v1694_v15 = vpack.c.bf16 %v1615_v8, %v1614_v7  ;;  %v1600_v22 = vld [vmem:[%s6118_s8 + $0x290] sm:$0xff] }
 0x176   :  { %897 = vst.msk [vmem:[%s6118_s8 + $0x298] sm:$0xff] %vm813_vm0, %v768_v33  ;;  %v241_v4 = vmul.f32 %v113_v43, %v3617_v0  ;;  %v242_v5 = vmul.f32 %v114_v44, %v3617_v0 }
 0x177   :  { %1870 = vrot.lane.b32.xlu1 %v1694_v15, %s3550_s25 }
 0x178   :  { %v753_v38 = vadd.f32 %v625_v24, %v241_v4  ;;  %v754_v44 = vadd.f32 %v626_v31, %v242_v5  ;;  %v627_v24 = vmul.f32 %v3128_v13, %v3639_v11  ;;  %v628_v31 = vmul.f32 %v3129_v17, %v3639_v11 }
 0x179   :  { %v3132_v13 = vunpack.c.l.bf16 %v4970_v41  ;;  %v3133_v17 = vunpack.c.h.bf16 %v4970_v41 }
 0x17d   :  { %v161_v51 = vld [vmem:[%s6116_s3 + $0x3a0] sm:$0xff]  ;;  %v1601_v29 = vld [vmem:[%s6118_s8 + $0x298] sm:$0xff] }
 0x17e   :  { %880 = vst.msk [vmem:[%s6118_s8 + $0x210] sm:$0xff] %vm813_vm0, %v751_v40  ;;  %v289_v18 = vmul.f32 %v161_v51, %v3617_v0  ;;  %v1687_v36 = vpack.c.bf16 %v1601_v29, %v1600_v22 }
 0x180   :  { %1856 = vrot.lane.b32.xlu0 %v1687_v36, %s3550_s25  ;;  %v801_v51 = vadd.f32 %v673_v39, %v289_v18  ;;  %v675_v39 = vmul.f32 %v3224_v26, %v3639_v11  ;;  %v3228_v26 = vunpack.c.l.bf16 %v5006_v56 }
 0x185   :  { %v162_v57 = vld [vmem:[%s6116_s3 + $0x3a8] sm:$0xff]  ;;  %v1584_v37 = vld [vmem:[%s6118_s8 + $0x210] sm:$0xff] }
 0x186   :  { %881 = vst.msk [vmem:[%s6118_s8 + $0x218] sm:$0xff] %vm813_vm0, %v752_v46  ;;  %v290_v25 = vmul.f32 %v162_v57, %v3617_v0  ;;  %v3188_v46 = vunpack.c.l.bf16 %v3291_v20 }
 0x188   :  { %v802_v58 = vadd.f32 %v674_v45, %v290_v25  ;;  %v657_v59 = vmul.f32 %v3188_v46, %v3639_v11  ;;  %v676_v45 = vmul.f32 %v3225_v32, %v3639_v11  ;;  %v3192_v46 = vunpack.c.l.bf16 %v3292_v14 }
 0x189   :  { %v3229_v32 = vunpack.c.h.bf16 %v5006_v56  ;;  %v5155_v56 = vld [vmem:[%s6115_s2 + $0x1e8] sm:$0xff]  }
 0x18d   :  { %v145_v1 = vld [vmem:[%s6116_s3 + $0x320] sm:$0xff]  ;;  %v1585_v43 = vld [vmem:[%s6118_s8 + $0x218] sm:$0xff] }
 0x18e   :  { %928 = vst.msk [vmem:[%s6118_s8 + $0x390] sm:$0xff] %vm813_vm0, %v799_v54  ;;  %929 = vst.msk [vmem:[%s6118_s8 + $0x398] sm:$0xff] %vm813_vm0, %v800_v60  ;;  %v273_v33 = vmul.f32 %v145_v1, %v3617_v0  ;;  %v1679_v49 = vpack.c.bf16 %v1585_v43, %v1584_v37  ;;  %v658_v60 = vmul.f32 %v3189_v47, %v3639_v11  ;;  %v3193_v47 = vunpack.c.h.bf16 %v3292_v14  ;;  %v3293_v14 = vld [vmem:[%s6115_s2 + $0x1a0] sm:$0xff]  }
 0x190   :  { %1840 = vrot.lane.b32.xlu1 %v1679_v49, %s3550_s25  ;;  %v3469_v49 = vld [vmem:[%s6115_s2 + $0x18] sm:$0xff]  }
 0x191   :  { %1457 = vst.msk [vmem:[#allocation3 + $0x18] sm:$0xff] %vm813_vm0, %v3469_v49  ;;  %v3475_v49 = vld [vmem:[%s6115_s2 + $0xa0] sm:$0xff]  }
 0x192   :  { %1474 = vst.msk [vmem:[#allocation3 + $0xa0] sm:$0xff] %vm813_vm0, %v3475_v49 }
 0x195   :  { %v146_v19 = vld [vmem:[%s6116_s3 + $0x328] sm:$0xff]  ;;  %v131_v21 = vld [vmem:[%s6116_s3 + $0x2b0] sm:$0xff]  ;;  %v1633_v57 = vld [vmem:[%s6118_s8 + $0x398] sm:$0xff] }
 0x196   :  { %912 = vst.msk [vmem:[%s6118_s8 + $0x310] sm:$0xff] %vm813_vm0, %v783_v9  ;;  %913 = vst.msk [vmem:[%s6118_s8 + $0x318] sm:$0xff] %vm813_vm0, %v784_v10  ;;  %v274_v40 = vmul.f32 %v146_v19, %v3617_v0  ;;  %v1632_v50 = vld [vmem:[%s6118_s8 + $0x390] sm:$0xff]  ;;  %v259_v52 = vmul.f32 %v131_v21, %v3617_v0  ;;  %v785_v9 = vadd.f32 %v657_v59, %v273_v33 }
 0x197   :  { %v1703_v1 = vpack.c.bf16 %v1633_v57, %v1632_v50  ;;  %v3466_v21 = vld [vmem:[%s6115_s2 + $0xd0] sm:$0xff]   ;;  %v659_v59 = vmul.f32 %v3192_v46, %v3639_v11  ;;  %v3196_v46 = vunpack.c.l.bf16 %v3293_v14 }
 0x198   :  { %v786_v10 = vadd.f32 %v658_v60, %v274_v40  ;;  %1480 = vst.msk [vmem:[#allocation3 + $0xd0] sm:$0xff] %vm813_vm0, %v3466_v21  ;;  %v660_v60 = vmul.f32 %v3193_v47, %v3639_v11  ;;  %v3472_v21 = vld [vmem:[%s6115_s2 + $0x60] sm:$0xff]   ;;  %v3197_v47 = vunpack.c.h.bf16 %v3293_v14  ;;  %v3294_v14 = vld [vmem:[%s6115_s2 + $0x1a8] sm:$0xff]  }
 0x199   :  { %1888 = vrot.lane.b32.xlu0 %v1703_v1, %s3550_s25  ;;  %1466 = vst.msk [vmem:[#allocation3 + $0x60] sm:$0xff] %vm813_vm0, %v3472_v21 }
 0x19d   :  { %v132_v27 = vld [vmem:[%s6116_s3 + $0x2b8] sm:$0xff]  ;;  %v115_v34 = vld [vmem:[%s6116_s3 + $0x230] sm:$0xff] }
 0x19e   :  { %v116_v35 = vld [vmem:[%s6116_s3 + $0x238] sm:$0xff]  ;;  %v260_v53 = vmul.f32 %v132_v27, %v3617_v0  ;;  %v243_v3 = vmul.f32 %v115_v34, %v3617_v0  ;;  %v1616_v7 = vld [vmem:[%s6118_s8 + $0x310] sm:$0xff]  ;;  %v4939_v27 = vld [vmem:[%s6115_s2 + $0x160] sm:$0xff]  }
 0x19f   :  { %898 = vst.msk [vmem:[%s6118_s8 + $0x2a0] sm:$0xff] %vm813_vm0, %v769_v23  ;;  %899 = vst.msk [vmem:[%s6118_s8 + $0x2a8] sm:$0xff] %vm813_vm0, %v770_v30  ;;  %v244_v4 = vmul.f32 %v116_v35, %v3617_v0  ;;  %v1617_v8 = vld [vmem:[%s6118_s8 + $0x318] sm:$0xff]  ;;  %v771_v23 = vadd.f32 %v643_v12, %v259_v52  ;;  %v3164_v61 = vunpack.c.l.bf16 %v4939_v27  ;;  %v3165_v2 = vunpack.c.h.bf16 %v4939_v27  ;;  %v5087_v27 = vld [vmem:[%s6115_s2 + $0x168] sm:$0xff]  }
 0x1a0   :  { %v1695_v15 = vpack.c.bf16 %v1617_v8, %v1616_v7  ;;  %v772_v30 = vadd.f32 %v644_v16, %v260_v53 }
 0x1a1   :  { %v645_v12 = vmul.f32 %v3164_v61, %v3639_v11  ;;  %v646_v16 = vmul.f32 %v3165_v2, %v3639_v11  ;;  %v662_v61 = vmul.f32 %v3197_v47, %v3639_v11  ;;  %v3169_v2 = vunpack.c.h.bf16 %v5087_v27 }
 0x1a2   :  { %1872 = vrot.lane.b32.xlu1 %v1695_v15, %s3550_s25  ;;  %v3200_v47 = vunpack.c.l.bf16 %v3294_v14 }
 0x1a6   :  { %v163_v48 = vld [vmem:[%s6116_s3 + $0x3b0] sm:$0xff]  ;;  %v1602_v22 = vld [vmem:[%s6118_s8 + $0x2a0] sm:$0xff]  ;;  %v1603_v29 = vld [vmem:[%s6118_s8 + $0x2a8] sm:$0xff] }
 0x1a7   :  { %882 = vst.msk [vmem:[%s6118_s8 + $0x220] sm:$0xff] %vm813_vm0, %v753_v38  ;;  %v291_v18 = vmul.f32 %v163_v48, %v3617_v0  ;;  %v1688_v36 = vpack.c.bf16 %v1603_v29, %v1602_v22  ;;  %v755_v38 = vadd.f32 %v627_v24, %v243_v3  ;;  %v629_v24 = vmul.f32 %v3132_v13, %v3639_v11 }
 0x1a8   :  { %v3136_v13 = vunpack.c.l.bf16 %v5121_v42 }
 0x1a9   :  { %1858 = vrot.lane.b32.xlu0 %v1688_v36, %s3550_s25  ;;  %v803_v52 = vadd.f32 %v675_v39, %v291_v18  ;;  %v3474_v36 = vld [vmem:[%s6115_s2 + $0xe0] sm:$0xff]  }
 0x1aa   :  { %1482 = vst.msk [vmem:[#allocation3 + $0xe0] sm:$0xff] %vm813_vm0, %v3474_v36  ;;  %v3480_v36 = vld [vmem:[%s6115_s2 + $0x70] sm:$0xff]  }
 0x1ab   :  { %1468 = vst.msk [vmem:[#allocation3 + $0x70] sm:$0xff] %vm813_vm0, %v3480_v36 }
 0x1ae   :  { %v164_v54 = vld [vmem:[%s6116_s3 + $0x3b8] sm:$0xff]  ;;  %v1586_v37 = vld [vmem:[%s6118_s8 + $0x220] sm:$0xff] }
 0x1af   :  { %883 = vst.msk [vmem:[%s6118_s8 + $0x228] sm:$0xff] %vm813_vm0, %v754_v44  ;;  %v292_v25 = vmul.f32 %v164_v54, %v3617_v0  ;;  %v756_v44 = vadd.f32 %v628_v31, %v244_v4  ;;  %v630_v31 = vmul.f32 %v3133_v17, %v3639_v11  ;;  %v648_v17 = vmul.f32 %v3169_v2, %v3639_v11 }
 0x1b0   :  { %v3173_v2 = vunpack.c.h.bf16 %v5238_v28 }
 0x1b6   :  { %v147_v62 = vld [vmem:[%s6116_s3 + $0x330] sm:$0xff]  ;;  %v1587_v43 = vld [vmem:[%s6118_s8 + $0x228] sm:$0xff] }
 0x1b7   :  { %930 = vst.msk [vmem:[%s6118_s8 + $0x3a0] sm:$0xff] %vm813_vm0, %v801_v51  ;;  %v275_v33 = vmul.f32 %v147_v62, %v3617_v0  ;;  %v1680_v50 = vpack.c.bf16 %v1587_v43, %v1586_v37 }
 0x1b9   :  { %1842 = vrot.lane.b32.xlu1 %v1680_v50, %s3550_s25 }
 0x1be   :  { %v148_v5 = vld [vmem:[%s6116_s3 + $0x338] sm:$0xff]  ;;  %v1634_v51 = vld [vmem:[%s6118_s8 + $0x3a0] sm:$0xff] }
 0x1bf   :  { %931 = vst.msk [vmem:[%s6118_s8 + $0x3a8] sm:$0xff] %vm813_vm0, %v802_v58  ;;  %v276_v40 = vmul.f32 %v148_v5, %v3617_v0  ;;  %v804_v58 = vadd.f32 %v676_v45, %v292_v25  ;;  %v678_v45 = vmul.f32 %v3229_v32, %v3639_v11  ;;  %v3233_v32 = vunpack.c.h.bf16 %v5155_v56 }
 0x1c6   :  { %v133_v19 = vld [vmem:[%s6116_s3 + $0x2c0] sm:$0xff]  ;;  %v134_v20 = vld [vmem:[%s6116_s3 + $0x2c8] sm:$0xff] }
 0x1c7   :  { %914 = vst.msk [vmem:[%s6118_s8 + $0x320] sm:$0xff] %vm813_vm0, %v785_v9  ;;  %915 = vst.msk [vmem:[%s6118_s8 + $0x328] sm:$0xff] %vm813_vm0, %v786_v10  ;;  %v261_v53 = vmul.f32 %v133_v19, %v3617_v0  ;;  %v262_v54 = vmul.f32 %v134_v20, %v3617_v0  ;;  %v1635_v57 = vld [vmem:[%s6118_s8 + $0x3a8] sm:$0xff]  ;;  %v787_v9 = vadd.f32 %v659_v59, %v275_v33 }
 0x1c8   :  { %v1704_v1 = vpack.c.bf16 %v1635_v57, %v1634_v51  ;;  %v788_v10 = vadd.f32 %v660_v60, %v276_v40  ;;  %v677_v40 = vmul.f32 %v3228_v26, %v3639_v11  ;;  %v3476_v57 = vld [vmem:[%s6115_s2 + $0x68] sm:$0xff]   ;;  %v661_v60 = vmul.f32 %v3196_v46, %v3639_v11 }
 0x1c9   :  { %1467 = vst.msk [vmem:[#allocation3 + $0x68] sm:$0xff] %vm813_vm0, %v3476_v57  ;;  %v680_v46 = vmul.f32 %v3233_v32, %v3639_v11 }
 0x1ca   :  { %1890 = vrot.lane.b32.xlu0 %v1704_v1, %s3550_s25 }
 0x1ce   :  { %v117_v34 = vld [vmem:[%s6116_s3 + $0x240] sm:$0xff]  ;;  %v118_v35 = vld [vmem:[%s6116_s3 + $0x248] sm:$0xff] }
 0x1cf   :  { %900 = vst.msk [vmem:[%s6118_s8 + $0x2b0] sm:$0xff] %vm813_vm0, %v771_v23  ;;  %901 = vst.msk [vmem:[%s6118_s8 + $0x2b8] sm:$0xff] %vm813_vm0, %v772_v30  ;;  %v245_v3 = vmul.f32 %v117_v34, %v3617_v0  ;;  %v246_v4 = vmul.f32 %v118_v35, %v3617_v0  ;;  %v1618_v7 = vld [vmem:[%s6118_s8 + $0x320] sm:$0xff]  ;;  %v1619_v8 = vld [vmem:[%s6118_s8 + $0x328] sm:$0xff]  ;;  %v773_v23 = vadd.f32 %v645_v12, %v261_v53 }
 0x1d0   :  { %v1696_v15 = vpack.c.bf16 %v1619_v8, %v1618_v7  ;;  %v774_v30 = vadd.f32 %v646_v16, %v262_v54 }
 0x1d1   :  { %v757_v39 = vadd.f32 %v629_v24, %v245_v3 }
 0x1d2   :  { %1874 = vrot.lane.b32.xlu1 %v1696_v15, %s3550_s25  ;;  %v3478_v15 = vld [vmem:[%s6115_s2 + $0xe8] sm:$0xff]  }
 0x1d3   :  { %1483 = vst.msk [vmem:[#allocation3 + $0xe8] sm:$0xff] %vm813_vm0, %v3478_v15  ;;  %v5355_v15 = vld [vmem:[%s6115_s2 + $0x1b0] sm:$0xff]  }
 0x1d6   :  { %v165_v48 = vld [vmem:[%s6116_s3 + $0x3c0] sm:$0xff]  ;;  %v1604_v22 = vld [vmem:[%s6118_s8 + $0x2b0] sm:$0xff]  ;;  %v1605_v29 = vld [vmem:[%s6118_s8 + $0x2b8] sm:$0xff] }
 0x1d7   :  { %884 = vst.msk [vmem:[%s6118_s8 + $0x230] sm:$0xff] %vm813_vm0, %v755_v38  ;;  %v293_v18 = vmul.f32 %v165_v48, %v3617_v0  ;;  %v1689_v37 = vpack.c.bf16 %v1605_v29, %v1604_v22  ;;  %v3479_v22 = vld [vmem:[%s6115_s2 + $0xa8] sm:$0xff]  }
 0x1d8   :  { %1475 = vst.msk [vmem:[#allocation3 + $0xa8] sm:$0xff] %vm813_vm0, %v3479_v22 }
 0x1d9   :  { %1860 = vrot.lane.b32.xlu0 %v1689_v37, %s3550_s25 }
 0x1de   :  { %v166_v55 = vld [vmem:[%s6116_s3 + $0x3c8] sm:$0xff]  ;;  %v1588_v38 = vld [vmem:[%s6118_s8 + $0x230] sm:$0xff] }
 0x1df   :  { %885 = vst.msk [vmem:[%s6118_s8 + $0x238] sm:$0xff] %vm813_vm0, %v756_v44  ;;  %v294_v25 = vmul.f32 %v166_v55, %v3617_v0  ;;  %v758_v44 = vadd.f32 %v630_v31, %v246_v4 }
 0x1e1   :  { %v806_v59 = vadd.f32 %v678_v45, %v294_v25  ;;  %v631_v25 = vmul.f32 %v3136_v13, %v3639_v11 }
 0x1e6   :  { %v149_v62 = vld [vmem:[%s6116_s3 + $0x340] sm:$0xff]  ;;  %v1589_v43 = vld [vmem:[%s6118_s8 + $0x238] sm:$0xff] }
 0x1e7   :  { %932 = vst.msk [vmem:[%s6118_s8 + $0x3b0] sm:$0xff] %vm813_vm0, %v803_v52  ;;  %v277_v33 = vmul.f32 %v149_v62, %v3617_v0  ;;  %v1681_v50 = vpack.c.bf16 %v1589_v43, %v1588_v38  ;;  %v805_v52 = vadd.f32 %v677_v40, %v293_v18  ;;  %v3168_v62 = vunpack.c.l.bf16 %v5087_v27  ;;  %v3481_v43 = vld [vmem:[%s6115_s2 + $0x30] sm:$0xff]  }
 0x1e8   :  { %v3137_v18 = vunpack.c.h.bf16 %v5121_v42  ;;  %v3232_v27 = vunpack.c.l.bf16 %v5155_v56  ;;  %v5270_v42 = vld [vmem:[%s6115_s2 + $0x130] sm:$0xff]   ;;  %1460 = vst.msk [vmem:[#allocation3 + $0x30] sm:$0xff] %vm813_vm0, %v3481_v43  ;;  %v3487_v43 = vld [vmem:[%s6115_s2 + $0xb8] sm:$0xff]  }
 0x1e9   :  { %1844 = vrot.lane.b32.xlu1 %v1681_v50, %s3550_s25  ;;  %v647_v12 = vmul.f32 %v3168_v62, %v3639_v11  ;;  %v3482_v56 = vld [vmem:[%s6115_s2 + $0xf0] sm:$0xff]   ;;  %1477 = vst.msk [vmem:[#allocation3 + $0xb8] sm:$0xff] %vm813_vm0, %v3487_v43  ;;  %v2095_v43 = vld [vmem:[%s6119_s0] sm:$0xff] }
 0x1ea   :  { %v632_v31 = vmul.f32 %v3137_v18, %v3639_v11  ;;  %v679_v40 = vmul.f32 %v3232_v27, %v3639_v11  ;;  %v5317_v62 = vld [vmem:[%s6115_s2 + $0x1f0] sm:$0xff]   ;;  %1484 = vst.msk [vmem:[#allocation3 + $0xf0] sm:$0xff] %vm813_vm0, %v3482_v56  ;;  %v3141_v18 = vunpack.c.h.bf16 %v5270_v42  ;;  %v5388_v27 = vld [vmem:[%s6115_s2 + $0x178] sm:$0xff]  }
 0x1eb   :  { %v3236_v32 = vunpack.c.l.bf16 %v5317_v62  ;;  %2976 = vst.sshfl [vmem:[#allocation2] sm:$0xf pattern:$0x76325410] %v2095_v43 }
 0x1ee   :  { %v150_v5 = vld [vmem:[%s6116_s3 + $0x348] sm:$0xff]  ;;  %v1636_v51 = vld [vmem:[%s6118_s8 + $0x3b0] sm:$0xff] }
 0x1ef   :  { %933 = vst.msk [vmem:[%s6118_s8 + $0x3b8] sm:$0xff] %vm813_vm0, %v804_v58  ;;  %v278_v41 = vmul.f32 %v150_v5, %v3617_v0 }
 0x1f6   :  { %v135_v19 = vld [vmem:[%s6116_s3 + $0x2d0] sm:$0xff]  ;;  %v136_v20 = vld [vmem:[%s6116_s3 + $0x2d8] sm:$0xff] }
 0x1f7   :  { %916 = vst.msk [vmem:[%s6118_s8 + $0x330] sm:$0xff] %vm813_vm0, %v787_v9  ;;  %917 = vst.msk [vmem:[%s6118_s8 + $0x338] sm:$0xff] %vm813_vm0, %v788_v10  ;;  %v263_v53 = vmul.f32 %v135_v19, %v3617_v0  ;;  %v264_v54 = vmul.f32 %v136_v20, %v3617_v0  ;;  %v1637_v58 = vld [vmem:[%s6118_s8 + $0x3b8] sm:$0xff]  ;;  %v789_v9 = vadd.f32 %v661_v60, %v277_v33 }
 0x1f8   :  { %v1705_v1 = vpack.c.bf16 %v1637_v58, %v1636_v51  ;;  %v790_v10 = vadd.f32 %v662_v61, %v278_v41  ;;  %v3172_v61 = vunpack.c.l.bf16 %v5238_v28  ;;  %v3486_v28 = vld [vmem:[%s6115_s2 + $0xf8] sm:$0xff]  }
 0x1f9   :  { %v775_v24 = vadd.f32 %v647_v12, %v263_v53  ;;  %1485 = vst.msk [vmem:[#allocation3 + $0xf8] sm:$0xff] %vm813_vm0, %v3486_v28 }
 0x1fa   :  { %1892 = vrot.lane.b32.xlu0 %v1705_v1, %s3550_s25  ;;  %v649_v13 = vmul.f32 %v3172_v61, %v3639_v11 }
 0x1fe   :  { %v119_v34 = vld [vmem:[%s6116_s3 + $0x250] sm:$0xff]  ;;  %v120_v35 = vld [vmem:[%s6116_s3 + $0x258] sm:$0xff] }
 0x1ff   :  { %902 = vst.msk [vmem:[%s6118_s8 + $0x2c0] sm:$0xff] %vm813_vm0, %v773_v23  ;;  %903 = vst.msk [vmem:[%s6118_s8 + $0x2c8] sm:$0xff] %vm813_vm0, %v774_v30  ;;  %v247_v3 = vmul.f32 %v119_v34, %v3617_v0  ;;  %v248_v4 = vmul.f32 %v120_v35, %v3617_v0  ;;  %v1620_v7 = vld [vmem:[%s6118_s8 + $0x330] sm:$0xff]  ;;  %v1621_v8 = vld [vmem:[%s6118_s8 + $0x338] sm:$0xff]  ;;  %v776_v30 = vadd.f32 %v648_v17, %v264_v54 }
 0x200   :  { %v1697_v16 = vpack.c.bf16 %v1621_v8, %v1620_v7  ;;  %v3484_v7 = vld [vmem:[%s6115_s2 + $0x78] sm:$0xff]   ;;  %v650_v17 = vmul.f32 %v3173_v2, %v3639_v11 }
 0x201   :  { %v760_v45 = vadd.f32 %v632_v31, %v248_v4  ;;  %1469 = vst.msk [vmem:[#allocation3 + $0x78] sm:$0xff] %vm813_vm0, %v3484_v7  ;;  %v634_v31 = vmul.f32 %v3141_v18, %v3639_v11 }
 0x202   :  { %1876 = vrot.lane.b32.xlu1 %v1697_v16, %s3550_s25 }
 0x206   :  { %v167_v48 = vld [vmem:[%s6116_s3 + $0x3d0] sm:$0xff]  ;;  %v1606_v23 = vld [vmem:[%s6118_s8 + $0x2c0] sm:$0xff]  ;;  %v1607_v29 = vld [vmem:[%s6118_s8 + $0x2c8] sm:$0xff] }
 0x207   :  { %886 = vst.msk [vmem:[%s6118_s8 + $0x240] sm:$0xff] %vm813_vm0, %v757_v39  ;;  %v295_v19 = vmul.f32 %v167_v48, %v3617_v0  ;;  %v1690_v37 = vpack.c.bf16 %v1607_v29, %v1606_v23  ;;  %v759_v39 = vadd.f32 %v631_v25, %v247_v3  ;;  %v3201_v48 = vunpack.c.h.bf16 %v3294_v14 }
 0x208   :  { %v3140_v14 = vunpack.c.l.bf16 %v5270_v42  ;;  %v5419_v42 = vld [vmem:[%s6115_s2 + $0x138] sm:$0xff]  }
 0x209   :  { %1862 = vrot.lane.b32.xlu0 %v1690_v37, %s3550_s25  ;;  %v807_v51 = vadd.f32 %v679_v40, %v295_v19  ;;  %v664_v60 = vmul.f32 %v3201_v48, %v3639_v11  ;;  %v3204_v48 = vunpack.c.l.bf16 %v5355_v15 }
 0x20b   :  { %v665_v61 = vmul.f32 %v3204_v48, %v3639_v11 }
 0x20e   :  { %v168_v55 = vld [vmem:[%s6116_s3 + $0x3d8] sm:$0xff]  ;;  %v1590_v38 = vld [vmem:[%s6118_s8 + $0x240] sm:$0xff] }
 0x20f   :  { %887 = vst.msk [vmem:[%s6118_s8 + $0x248] sm:$0xff] %vm813_vm0, %v758_v44  ;;  %v296_v26 = vmul.f32 %v168_v55, %v3617_v0 }
 0x211   :  { %v808_v58 = vadd.f32 %v680_v46, %v296_v26  ;;  %v681_v46 = vmul.f32 %v3236_v32, %v3639_v11 }
 0x216   :  { %v151_v63 = vld [vmem:[%s6116_s3 + $0x350] sm:$0xff]  ;;  %v1591_v44 = vld [vmem:[%s6118_s8 + $0x248] sm:$0xff] }
 0x217   :  { %934 = vst.msk [vmem:[%s6118_s8 + $0x3c0] sm:$0xff] %vm813_vm0, %v805_v52  ;;  %v279_v33 = vmul.f32 %v151_v63, %v3617_v0  ;;  %v1682_v49 = vpack.c.bf16 %v1591_v44, %v1590_v38  ;;  %v3483_v63 = vld [vmem:[%s6115_s2 + $0xb0] sm:$0xff]   ;;  %v1791_v38 = vpop.permute.xlu0 %1790 }
 0x218   :  { %1476 = vst.msk [vmem:[#allocation3 + $0xb0] sm:$0xff] %vm813_vm0, %v3483_v63  ;;  %v5470_v63 = vld [vmem:[%s6115_s2 + $0x1f8] sm:$0xff]  }
 0x219   :  { %1846 = vrot.lane.b32.xlu1 %v1682_v49, %s3550_s25  ;;  %1975 = vst.msk [vmem:[#allocation3 + $0x40] sm:$0xff] %vm1966_vm1, %v1791_v38  ;;  %v3488_v49 = vld [vmem:[%s6115_s2 + $0x140] sm:$0xff]  }
 0x21a   :  { %1494 = vst.msk [vmem:[#allocation3 + $0x140] sm:$0xff] %vm813_vm0, %v3488_v49 }
 0x21e   :  { %v152_v5 = vld [vmem:[%s6116_s3 + $0x358] sm:$0xff]  ;;  %v1638_v50 = vld [vmem:[%s6118_s8 + $0x3c0] sm:$0xff] }
 0x21f   :  { %935 = vst.msk [vmem:[%s6118_s8 + $0x3c8] sm:$0xff] %vm813_vm0, %v806_v59  ;;  %v280_v41 = vmul.f32 %v152_v5, %v3617_v0  ;;  %v663_v59 = vmul.f32 %v3200_v47, %v3639_v11 }
 0x221   :  { %v792_v12 = vadd.f32 %v664_v60, %v280_v41 }
 0x226   :  { %v137_v20 = vld [vmem:[%s6116_s3 + $0x2e0] sm:$0xff]  ;;  %v138_v21 = vld [vmem:[%s6116_s3 + $0x2e8] sm:$0xff] }
 0x227   :  { %918 = vst.msk [vmem:[%s6118_s8 + $0x340] sm:$0xff] %vm813_vm0, %v789_v9  ;;  %919 = vst.msk [vmem:[%s6118_s8 + $0x348] sm:$0xff] %vm813_vm0, %v790_v10  ;;  %v265_v52 = vmul.f32 %v137_v20, %v3617_v0  ;;  %v266_v53 = vmul.f32 %v138_v21, %v3617_v0  ;;  %v1639_v57 = vld [vmem:[%s6118_s8 + $0x3c8] sm:$0xff]  ;;  %v791_v10 = vadd.f32 %v663_v59, %v279_v33  ;;  %v3485_v21 = vld [vmem:[%s6115_s2 + $0x38] sm:$0xff]   ;;  %v3237_v33 = vunpack.c.h.bf16 %v5317_v62 }
 0x228   :  { %v1706_v1 = vpack.c.bf16 %v1639_v57, %v1638_v50  ;;  %1461 = vst.msk [vmem:[#allocation3 + $0x38] sm:$0xff] %vm813_vm0, %v3485_v21  ;;  %v3176_v62 = vunpack.c.l.bf16 %v5388_v27 }
 0x229   :  { %v777_v23 = vadd.f32 %v649_v13, %v265_v52  ;;  %v682_v47 = vmul.f32 %v3237_v33, %v3639_v11  ;;  %v1823_v52 = vpop.permute.xlu1 %1822 }
 0x22a   :  { %1894 = vrot.lane.b32.xlu0 %v1706_v1, %s3550_s25  ;;  %1991 = vst.msk [vmem:[#allocation3 + $0xc0] sm:$0xff] %vm1966_vm1, %v1823_v52  ;;  %v3489_v1 = vld [vmem:[%s6115_s2 + $0x100] sm:$0xff]  }
 0x22b   :  { %1486 = vst.msk [vmem:[#allocation3 + $0x100] sm:$0xff] %vm813_vm0, %v3489_v1 }
 0x22e   :  { %v121_v34 = vld [vmem:[%s6116_s3 + $0x260] sm:$0xff]  ;;  %v122_v35 = vld [vmem:[%s6116_s3 + $0x268] sm:$0xff] }
 0x22f   :  { %904 = vst.msk [vmem:[%s6118_s8 + $0x2d0] sm:$0xff] %vm813_vm0, %v775_v24  ;;  %905 = vst.msk [vmem:[%s6118_s8 + $0x2d8] sm:$0xff] %vm813_vm0, %v776_v30  ;;  %v249_v3 = vmul.f32 %v121_v34, %v3617_v0  ;;  %v250_v4 = vmul.f32 %v122_v35, %v3617_v0  ;;  %v1622_v8 = vld [vmem:[%s6118_s8 + $0x340] sm:$0xff]  ;;  %v1623_v9 = vld [vmem:[%s6118_s8 + $0x348] sm:$0xff]  ;;  %v633_v24 = vmul.f32 %v3140_v14, %v3639_v11 }
 0x230   :  { %888 = vst.msk [vmem:[%s6118_s8 + $0x250] sm:$0xff] %vm813_vm0, %v759_v39  ;;  %v1698_v16 = vpack.c.bf16 %v1623_v9, %v1622_v8  ;;  %v778_v30 = vadd.f32 %v650_v17, %v266_v53  ;;  %v3205_v53 = vunpack.c.h.bf16 %v5355_v15  ;;  %v3490_v9 = vld [vmem:[%s6115_s2 + $0x1c0] sm:$0xff]   ;;  %v651_v14 = vmul.f32 %v3176_v62, %v3639_v11  ;;  %v5510_v17 = vld [vmem:[%s6115_s2 + $0x1b8] sm:$0xff]  }
 0x231   :  { %v761_v37 = vadd.f32 %v633_v24, %v249_v3  ;;  %1510 = vst.msk [vmem:[#allocation3 + $0x1c0] sm:$0xff] %vm813_vm0, %v3490_v9 }
 0x232   :  { %1878 = vrot.lane.b32.xlu1 %v1698_v16, %s3550_s25  ;;  %v666_v3 = vmul.f32 %v3205_v53, %v3639_v11  ;;  %v3144_v16 = vunpack.c.l.bf16 %v5419_v42  ;;  %v3209_v53 = vunpack.c.h.bf16 %v5510_v17 }
 0x236   :  { %v1608_v22 = vld [vmem:[%s6118_s8 + $0x2d0] sm:$0xff]  ;;  %v1609_v29 = vld [vmem:[%s6118_s8 + $0x2d8] sm:$0xff] }
 0x237   :  { %v169_v54 = vld [vmem:[%s6116_s3 + $0x3e0] sm:$0xff]  ;;  %v170_v55 = vld [vmem:[%s6116_s3 + $0x3e8] sm:$0xff]  ;;  %v1691_v35 = vpack.c.bf16 %v1609_v29, %v1608_v22  ;;  %v1592_v36 = vld [vmem:[%s6118_s8 + $0x250] sm:$0xff]  ;;  %v3145_v22 = vunpack.c.h.bf16 %v5419_v42 }
 0x238   :  { %889 = vst.msk [vmem:[%s6118_s8 + $0x258] sm:$0xff] %vm813_vm0, %v760_v45  ;;  %936 = vst.msk [vmem:[%s6118_s8 + $0x3d0] sm:$0xff] %vm813_vm0, %v807_v51  ;;  %v297_v25 = vmul.f32 %v169_v54, %v3617_v0  ;;  %v298_v26 = vmul.f32 %v170_v55, %v3617_v0  ;;  %v762_v45 = vadd.f32 %v634_v31, %v250_v4  ;;  %v1775_v4 = vpop.permute.xlu0 %1774  ;;  %v3492_v29 = vld [vmem:[%s6115_s2 + $0x148] sm:$0xff]  }
 0x239   :  { %1864 = vrot.lane.b32.xlu0 %v1691_v35, %s3550_s25  ;;  %1967 = vst.msk [vmem:[#allocation3] sm:$0xff] %vm1966_vm1, %v1775_v4  ;;  %v636_v32 = vmul.f32 %v3145_v22, %v3639_v11  ;;  %v3240_v35 = vunpack.c.l.bf16 %v5470_v63  ;;  %v3493_v42 = vld [vmem:[%s6115_s2 + $0x108] sm:$0xff]   ;;  %v668_v4 = vmul.f32 %v3209_v53, %v3639_v11 }
 0x23a   :  { %v809_v59 = vadd.f32 %v681_v46, %v297_v25  ;;  %v810_v60 = vadd.f32 %v682_v47, %v298_v26  ;;  %v635_v26 = vmul.f32 %v3144_v16, %v3639_v11  ;;  %1495 = vst.msk [vmem:[#allocation3 + $0x148] sm:$0xff] %vm813_vm0, %v3492_v29  ;;  %v2227_v47 = vld [vmem:[#allocation3 + $0xc0] sm:$0xff]  ;;  %1487 = vst.msk [vmem:[#allocation3 + $0x108] sm:$0xff] %vm813_vm0, %v3493_v42 }
 0x23b   :  { %v683_v48 = vmul.f32 %v3240_v35, %v3639_v11  ;;  %3327 = vmatprep.subr.bf16.mxu1 %v2227_v47 }
 0x23c   :  { %v1793_v33 = vpop.permute.xlu0 %1792 }
 0x23d   :  { %1976 = vst.msk [vmem:[#allocation3 + $0x48] sm:$0xff] %vm1966_vm1, %v1793_v33 }
 0x23f   :  { %v153_v5 = vld [vmem:[%s6116_s3 + $0x360] sm:$0xff]  ;;  %v154_v6 = vld [vmem:[%s6116_s3 + $0x368] sm:$0xff]  ;;  %v1593_v44 = vld [vmem:[%s6118_s8 + $0x258] sm:$0xff] }
 0x240   :  { %937 = vst.msk [vmem:[%s6118_s8 + $0x3d8] sm:$0xff] %vm813_vm0, %v808_v58  ;;  %v281_v39 = vmul.f32 %v153_v5, %v3617_v0  ;;  %v282_v40 = vmul.f32 %v154_v6, %v3617_v0  ;;  %v1683_v50 = vpack.c.bf16 %v1593_v44, %v1592_v36  ;;  %v1640_v51 = vld [vmem:[%s6118_s8 + $0x3d0] sm:$0xff]  ;;  %v3177_v5 = vunpack.c.h.bf16 %v5388_v27  ;;  %v2203_v1 = vld [vmem:[#allocation3] sm:$0xff] }
 0x241   :  { %v3241_v36 = vunpack.c.h.bf16 %v5470_v63  ;;  %v1825_v63 = vpop.permute.xlu0 %1824 }
 0x242   :  { %1848 = vrot.lane.b32.xlu1 %v1683_v50, %s3550_s25  ;;  %v793_v13 = vadd.f32 %v665_v61, %v281_v39  ;;  %v652_v21 = vmul.f32 %v3177_v5, %v3639_v11  ;;  %v3208_v50 = vunpack.c.l.bf16 %v5510_v17  ;;  %1992 = vst.msk [vmem:[#allocation3 + $0xc8] sm:$0xff] %vm1966_vm1, %v1825_v63  ;;  %v3497_v5 = vld [vmem:[%s6115_s2 + $0x1c8] sm:$0xff]   ;;  %v3511_v63 = vld [vmem:[%s6115_s2 + $0x1a0] sm:$0xff]  }
 0x243   :  { %v684_v49 = vmul.f32 %v3241_v36, %v3639_v11  ;;  %1511 = vst.msk [vmem:[#allocation3 + $0x1c8] sm:$0xff] %vm813_vm0, %v3497_v5  ;;  %1506 = vst.msk [vmem:[#allocation3 + $0x1a0] sm:$0xff] %vm813_vm0, %v3511_v63 }
 0x244   :  { %v667_v62 = vmul.f32 %v3208_v50, %v3639_v11  ;;  %v2212_v17 = vld [vmem:[#allocation3 + $0x48] sm:$0xff]  ;;  %v3551_v50 = vmov 0  }
 0x245   :  { %2449 = vst.msk [vmem:[#allocation4] sm:$0xff] %vm813_vm0, %v3551_v50  ;;  %2450 = vst.msk [vmem:[#allocation4 + $0x8] sm:$0xff] %vm813_vm0, %v3551_v50 }
 0x246   :  { %2451 = vst.msk [vmem:[#allocation4 + $0x10] sm:$0xff] %vm813_vm0, %v3551_v50  ;;  %2452 = vst.msk [vmem:[#allocation4 + $0x18] sm:$0xff] %vm813_vm0, %v3551_v50 }
 0x247   :  { %v139_v19 = vld [vmem:[%s6116_s3 + $0x2f0] sm:$0xff]  ;;  %v140_v20 = vld [vmem:[%s6116_s3 + $0x2f8] sm:$0xff]  ;;  %2453 = vst.msk [vmem:[#allocation4 + $0x20] sm:$0xff] %vm813_vm0, %v3551_v50  ;;  %2454 = vst.msk [vmem:[#allocation4 + $0x28] sm:$0xff] %vm813_vm0, %v3551_v50 }
 0x248   :  { %920 = vst.msk [vmem:[%s6118_s8 + $0x350] sm:$0xff] %vm813_vm0, %v791_v10  ;;  %921 = vst.msk [vmem:[%s6118_s8 + $0x358] sm:$0xff] %vm813_vm0, %v792_v12  ;;  %v267_v54 = vmul.f32 %v139_v19, %v3617_v0  ;;  %v268_v55 = vmul.f32 %v140_v20, %v3617_v0  ;;  %v1641_v58 = vld [vmem:[%s6118_s8 + $0x3d8] sm:$0xff]  ;;  %v794_v19 = vadd.f32 %v666_v3, %v282_v40  ;;  %v1807_v20 = vpop.permute.xlu1 %1806 }
 0x249   :  { %v1707_v2 = vpack.c.bf16 %v1641_v58, %v1640_v51  ;;  %1983 = vst.msk [vmem:[#allocation3 + $0x80] sm:$0xff] %vm1966_vm1, %v1807_v20  ;;  %v2096_v51 = vld [vmem:[%s6119_s0 + $0x8] sm:$0xff]  ;;  %v3500_v20 = vld [vmem:[%s6115_s2 + $0x150] sm:$0xff]  }
 0x24a   :  { %v779_v25 = vadd.f32 %v651_v14, %v267_v54  ;;  %v780_v31 = vadd.f32 %v652_v21, %v268_v55  ;;  %v2114_v54 = vcombine.high %v2096_v51, %v2096_v51  ;;  %v2137_v55 = vld [vmem:[%s6120_s1] sm:$0xff]  ;;  %2978 = vst.sshfl [vmem:[#allocation2 + $0x10] sm:$0xf pattern:$0x76325410] %v2096_v51  ;;  %v3498_v14 = vld [vmem:[%s6115_s2 + $0x188] sm:$0xff]  }
 0x24b   :  { %1896 = vrot.lane.b32.xlu0 %v1707_v2, %s3550_s25  ;;  %v2141_v2 = vcombine.low %v2137_v55, %v2137_v55  ;;  %2981 = vst.sshfl [vmem:[#allocation2 + $0x8] sm:$0xf0 pattern:$0x76325410] %v2137_v55  ;;  %1503 = vst.msk [vmem:[#allocation3 + $0x188] sm:$0xff] %vm813_vm0, %v3498_v14 }
 0x24c   :  { %v1777_v46 = vpop.permute.xlu1 %1776  ;;  %2979 = vst.sshfl [vmem:[#allocation2 + $0x18] sm:$0xf pattern:$0x76325410] %v2114_v54  ;;  %1496 = vst.msk [vmem:[#allocation3 + $0x150] sm:$0xff] %vm813_vm0, %v3500_v20  ;;  %v3507_v54 = vld [vmem:[%s6115_s2 + $0x198] sm:$0xff]  }
 0x24d   :  { %1968 = vst.msk [vmem:[#allocation3 + $0x8] sm:$0xff] %vm1966_vm1, %v1777_v46  ;;  %2980 = vst.sshfl [vmem:[#allocation2] sm:$0xf0 pattern:$0x76325410] %v2141_v2  ;;  %v3520_v20 = vld [vmem:[%s6115_s2 + $0x178] sm:$0xff]  }
 0x24e   :  { %2455 = vst.msk [vmem:[#allocation4 + $0x30] sm:$0xff] %vm813_vm0, %v3551_v50  ;;  %2456 = vst.msk [vmem:[#allocation4 + $0x38] sm:$0xff] %vm813_vm0, %v3551_v50 }
 0x24f   :  { %v123_v34 = vld [vmem:[%s6116_s3 + $0x270] sm:$0xff]  ;;  %v1625_v12 = vld [vmem:[%s6118_s8 + $0x358] sm:$0xff]  ;;  %1505 = vst.msk [vmem:[#allocation3 + $0x198] sm:$0xff] %vm813_vm0, %v3507_v54  ;;  %1501 = vst.msk [vmem:[#allocation3 + $0x178] sm:$0xff] %vm813_vm0, %v3520_v20 }
 0x250   :  { %906 = vst.msk [vmem:[%s6118_s8 + $0x2e0] sm:$0xff] %vm813_vm0, %v777_v23  ;;  %v251_v6 = vmul.f32 %v123_v34, %v3617_v0  ;;  %v1624_v10 = vld [vmem:[%s6118_s8 + $0x350] sm:$0xff]  ;;  %v3491_v23 = vld [vmem:[%s6115_s2 + $0x180] sm:$0xff]   ;;  %v1809_v9 = vpop.permute.xlu1 %1808 }
 0x251   :  { %v1699_v18 = vpack.c.bf16 %v1625_v12, %v1624_v10  ;;  %v2211_v34 = vld [vmem:[#allocation3 + $0x40] sm:$0xff]  ;;  %1502 = vst.msk [vmem:[#allocation3 + $0x180] sm:$0xff] %vm813_vm0, %v3491_v23 }
 0x252   :  { %v763_v39 = vadd.f32 %v635_v26, %v251_v6  ;;  %3305 = vmatprep.subr.bf16.mxu0 %v2211_v34  ;;  %v2219_v10 = vld [vmem:[#allocation3 + $0x80] sm:$0xff]  ;;  %1984 = vst.msk [vmem:[#allocation3 + $0x88] sm:$0xff] %vm1966_vm1, %v1809_v9  ;;  %v3501_v26 = vld [vmem:[%s6115_s2 + $0x110] sm:$0xff]  }
 0x253   :  { %1880 = vrot.lane.b32.xlu1 %v1699_v18, %s3550_s25  ;;  %3306 = vmatpush3.bf16.msra.mxu0 %v2203_v1  ;;  %1488 = vst.msk [vmem:[#allocation3 + $0x110] sm:$0xff] %vm813_vm0, %v3501_v26  ;;  %v3512_v1 = vld [vmem:[%s6115_s2 + $0x168] sm:$0xff]   ;;  %v3523_v26 = vld [vmem:[%s6115_s2 + $0x1b8] sm:$0xff]   ;;  %v2035_v54 = vld [vmem:[%s6121_s4 + $0x20] sm:$0xff] }
 0x254   :  { %3328 = vmatpush3.bf16.msra.mxu1 %v2219_v10  ;;  %3307 = vmatprep.subr.bf16.mxu0 %v2212_v17  ;;  %v2204_v23 = vld [vmem:[#allocation3 + $0x8] sm:$0xff]  ;;  %v5667_v33 = vld [vmem:[#allocation2] sm:$0xff]  ;;  %1499 = vst.msk [vmem:[#allocation3 + $0x168] sm:$0xff] %vm813_vm0, %v3512_v1  ;;  %v3516_v10 = vld [vmem:[%s6115_s2 + $0x170] sm:$0xff]  }
 0x255   :  { %1500 = vst.msk [vmem:[#allocation3 + $0x170] sm:$0xff] %vm813_vm0, %v3516_v10  ;;  %1509 = vst.msk [vmem:[#allocation3 + $0x1b8] sm:$0xff] %vm813_vm0, %v3523_v26 }
 0x257   :  { %v124_v41 = vld [vmem:[%s6116_s3 + $0x278] sm:$0xff]  ;;  %v1610_v24 = vld [vmem:[%s6118_s8 + $0x2e0] sm:$0xff]  ;;  %3308 = vmatpush3.bf16.msra.mxu0 %v2204_v23 }
 0x258   :  { %907 = vst.msk [vmem:[%s6118_s8 + $0x2e8] sm:$0xff] %vm813_vm0, %v778_v30  ;;  %890 = vst.msk [vmem:[%s6118_s8 + $0x260] sm:$0xff] %vm813_vm0, %v761_v37  ;;  %v252_v15 = vmul.f32 %v124_v41, %v3617_v0 }
 0x259   :  { %v2220_v36 = vld [vmem:[#allocation3 + $0x88] sm:$0xff] }
 0x25f   :  { %v171_v56 = vld [vmem:[%s6116_s3 + $0x3f0] sm:$0xff]  ;;  %v172_v57 = vld [vmem:[%s6116_s3 + $0x3f8] sm:$0xff]  ;;  %v1611_v30 = vld [vmem:[%s6118_s8 + $0x2e8] sm:$0xff] }
 0x260   :  { %891 = vst.msk [vmem:[%s6118_s8 + $0x268] sm:$0xff] %vm813_vm0, %v762_v45  ;;  %v299_v27 = vmul.f32 %v171_v56, %v3617_v0  ;;  %v300_v28 = vmul.f32 %v172_v57, %v3617_v0  ;;  %v1692_v37 = vpack.c.bf16 %v1611_v30, %v1610_v24  ;;  %v1594_v38 = vld [vmem:[%s6118_s8 + $0x260] sm:$0xff]  ;;  %v764_v45 = vadd.f32 %v636_v32, %v252_v15  ;;  %v2138_v56 = vld [vmem:[%s6120_s1 + $0x8] sm:$0xff] }
 0x261   :  { %v2099_v57 = vcombine.high %v2095_v43, %v2095_v43  ;;  %2983 = vst.sshfl [vmem:[#allocation2 + $0x18] sm:$0xf0 pattern:$0x76325410] %v2138_v56  ;;  %v2156_v6 = vcombine.low %v2138_v56, %v2138_v56 }
 0x262   :  { %1866 = vrot.lane.b32.xlu0 %v1692_v37, %s3550_s25  ;;  %v812_v61 = vadd.f32 %v684_v49, %v300_v28  ;;  %v2228_v28 = vld [vmem:[#allocation3 + $0xc8] sm:$0xff]  ;;  %v2187_v37 = vcombine.high %v5667_v33, %v5667_v33  ;;  %v3505_v49 = vld [vmem:[%s6115_s2 + $0x118] sm:$0xff]  }
 0x263   :  { %2977 = vst.sshfl [vmem:[#allocation2 + $0x8] sm:$0xf pattern:$0x76325410] %v2099_v57  ;;  %3329 = vmatprep.subr.bf16.mxu1 %v2228_v28  ;;  %1489 = vst.msk [vmem:[#allocation3 + $0x118] sm:$0xff] %vm813_vm0, %v3505_v49  ;;  %v3508_v57 = vld [vmem:[%s6115_s2 + $0x160] sm:$0xff]  }
 0x264   :  { %2982 = vst.sshfl [vmem:[#allocation2 + $0x10] sm:$0xf0 pattern:$0x76325410] %v2156_v6  ;;  %3330 = vmatpush3.bf16.msra.mxu1 %v2220_v36  ;;  %1498 = vst.msk [vmem:[#allocation3 + $0x160] sm:$0xff] %vm813_vm0, %v3508_v57  ;;  %v3514_v6 = vld [vmem:[%s6115_s2 + $0x1e8] sm:$0xff]  }
 0x265   :  { %1515 = vst.msk [vmem:[#allocation3 + $0x1e8] sm:$0xff] %vm813_vm0, %v3514_v6  ;;  %v2052_v36 = vld [vmem:[%s6122_s5 + $0x8] sm:$0xff] }
 0x267   :  { %v155_v7 = vld [vmem:[%s6116_s3 + $0x370] sm:$0xff]  ;;  %v156_v8 = vld [vmem:[%s6116_s3 + $0x378] sm:$0xff]  ;;  %v1595_v44 = vld [vmem:[%s6118_s8 + $0x268] sm:$0xff] }
 0x268   :  { %938 = vst.msk [vmem:[%s6118_s8 + $0x3e0] sm:$0xff] %vm813_vm0, %v809_v59  ;;  %939 = vst.msk [vmem:[%s6118_s8 + $0x3e8] sm:$0xff] %vm813_vm0, %v810_v60  ;;  %v283_v40 = vmul.f32 %v155_v7, %v3617_v0  ;;  %v284_v41 = vmul.f32 %v156_v8, %v3617_v0  ;;  %v1684_v52 = vpack.c.bf16 %v1595_v44, %v1594_v38  ;;  %v3502_v38 = vld [vmem:[%s6115_s2 + $0x1d0] sm:$0xff]  }
 0x269   :  { %922 = vst.msk [vmem:[%s6118_s8 + $0x360] sm:$0xff] %vm813_vm0, %v793_v13  ;;  %923 = vst.msk [vmem:[%s6118_s8 + $0x368] sm:$0xff] %vm813_vm0, %v794_v19  ;;  %v811_v60 = vadd.f32 %v683_v48, %v299_v27  ;;  %v1795_v19 = vpop.permute.xlu0 %1794  ;;  %v2196_v44 = vpack.c.bf16 %v2187_v37, %v2187_v37  ;;  %v3504_v48 = vld [vmem:[%s6115_s2 + $0x158] sm:$0xff]  }
 0x26a   :  { %908 = vst.msk [vmem:[%s6118_s8 + $0x2f0] sm:$0xff] %vm813_vm0, %v779_v25  ;;  %909 = vst.msk [vmem:[%s6118_s8 + $0x2f8] sm:$0xff] %vm813_vm0, %v780_v31  ;;  %1850 = vrot.lane.b32.xlu1 %v1684_v52, %s3550_s25  ;;  %v795_v8 = vadd.f32 %v667_v62, %v283_v40  ;;  %v796_v13 = vadd.f32 %v668_v4, %v284_v41  ;;  %v1779_v25 = vpop.permute.xlu1 %1778  ;;  %v5659_v29 = vld [vmem:[#allocation2 + $0x8] sm:$0xff]  ;;  %v3503_v41 = vld [vmem:[%s6115_s2 + $0x190] sm:$0xff]  }
 0x26b   :  { %892 = vst.msk [vmem:[%s6118_s8 + $0x270] sm:$0xff] %vm813_vm0, %v763_v39  ;;  %893 = vst.msk [vmem:[%s6118_s8 + $0x278] sm:$0xff] %vm813_vm0, %v764_v45  ;;  %v2188_v34 = vcombine.high %v5659_v29, %v5659_v29  ;;  %2299 = vmatprep.mubr.bf16.mxu0 %v2196_v44  ;;  %v3506_v52 = vld [vmem:[%s6115_s2 + $0x1d8] sm:$0xff]   ;;  %v2053_v44 = vld [vmem:[%s6122_s5 + $0x10] sm:$0xff] }
 0x26c   :  { %940 = vst.msk [vmem:[%s6118_s8 + $0x3f0] sm:$0xff] %vm813_vm0, %v811_v60  ;;  %941 = vst.msk [vmem:[%s6118_s8 + $0x3f8] sm:$0xff] %vm813_vm0, %v812_v61  ;;  %v3510_v61 = vld [vmem:[%s6115_s2 + $0x1e0] sm:$0xff]  }
 0x26d   :  { %924 = vst.msk [vmem:[%s6118_s8 + $0x370] sm:$0xff] %vm813_vm0, %v795_v8  ;;  %925 = vst.msk [vmem:[%s6118_s8 + $0x378] sm:$0xff] %vm813_vm0, %v796_v13  ;;  %v1827_v32 = vpop.permute.xlu0 %1826  ;;  %v2198_v40 = vpack.c.bf16 %v2188_v34, %v2188_v34  ;;  %v3515_v8 = vld [vmem:[%s6115_s2 + $0x1a8] sm:$0xff]   ;;  %v3517_v13 = vld [vmem:[%s6115_s2 + $0x130] sm:$0xff]  }
 0x26e   :  { %1977 = vst.msk [vmem:[#allocation3 + $0x50] sm:$0xff] %vm1966_vm1, %v1795_v19  ;;  %1969 = vst.msk [vmem:[#allocation3 + $0x10] sm:$0xff] %vm1966_vm1, %v1779_v25  ;;  %v1811_v43 = vpop.permute.xlu1 %1810  ;;  %v2051_v34 = vld [vmem:[%s6122_s5] sm:$0xff] }
 0x26f   :  { %v1642_v58 = vld [vmem:[%s6118_s8 + $0x3e0] sm:$0xff]  ;;  %v1643_v59 = vld [vmem:[%s6118_s8 + $0x3e8] sm:$0xff]  ;;  %1993 = vst.msk [vmem:[#allocation3 + $0xd0] sm:$0xff] %vm1966_vm1, %v1827_v32  ;;  %1985 = vst.msk [vmem:[#allocation3 + $0x90] sm:$0xff] %vm1966_vm1, %v1811_v43  ;;  %2339 = vmatprep.mubr.bf16.mxu1 %v2198_v40  ;;  %v2059_v37 = vmul.f32 %v2051_v34, %v3617_v0  ;;  %v2060_v43 = vmul.f32 %v2052_v36, %v3617_v0 }
 0x270   :  { %v1708_v3 = vpack.c.bf16 %v1643_v59, %v1642_v58  ;;  %v1626_v7 = vld [vmem:[%s6118_s8 + $0x360] sm:$0xff]  ;;  %v1627_v12 = vld [vmem:[%s6118_s8 + $0x368] sm:$0xff]  ;;  %1512 = vst.msk [vmem:[#allocation3 + $0x1d0] sm:$0xff] %vm813_vm0, %v3502_v38  ;;  %1504 = vst.msk [vmem:[#allocation3 + $0x190] sm:$0xff] %vm813_vm0, %v3503_v41 }
 0x271   :  { %v1700_v15 = vpack.c.bf16 %v1627_v12, %v1626_v7  ;;  %v1612_v16 = vld [vmem:[%s6118_s8 + $0x2f0] sm:$0xff]  ;;  %v1613_v18 = vld [vmem:[%s6118_s8 + $0x2f8] sm:$0xff]  ;;  %v1797_v46 = vpop.permute.xlu0 %1796  ;;  %1497 = vst.msk [vmem:[#allocation3 + $0x158] sm:$0xff] %vm813_vm0, %v3504_v48  ;;  %1513 = vst.msk [vmem:[#allocation3 + $0x1d8] sm:$0xff] %vm813_vm0, %v3506_v52 }
 0x272   :  { %1898 = vrot.lane.b32.xlu0 %v1708_v3, %s3550_s25  ;;  %v1693_v21 = vpack.c.bf16 %v1613_v18, %v1612_v16  ;;  %v1596_v22 = vld [vmem:[%s6118_s8 + $0x270] sm:$0xff]  ;;  %v1597_v24 = vld [vmem:[%s6118_s8 + $0x278] sm:$0xff]  ;;  %1978 = vst.msk [vmem:[#allocation3 + $0x58] sm:$0xff] %vm1966_vm1, %v1797_v46  ;;  %v1781_v53 = vpop.permute.xlu1 %1780  ;;  %v3509_v58 = vld [vmem:[%s6115_s2 + $0x120] sm:$0xff]   ;;  %v2427_v18 = vlaneseq }
 0x273   :  { %1882 = vrot.lane.b32.xlu1 %v1700_v15, %s3550_s25  ;;  %v1685_v27 = vpack.c.bf16 %v1597_v24, %v1596_v22  ;;  %v1644_v30 = vld [vmem:[%s6118_s8 + $0x3f0] sm:$0xff]  ;;  %v1645_v31 = vld [vmem:[%s6118_s8 + $0x3f8] sm:$0xff]  ;;  %1970 = vst.msk [vmem:[#allocation3 + $0x18] sm:$0xff] %vm1966_vm1, %v1781_v53  ;;  %v3513_v3 = vld [vmem:[%s6115_s2 + $0x128] sm:$0xff]  }
 0x274   :  { %v1709_v35 = vpack.c.bf16 %v1645_v31, %v1644_v30  ;;  %v1628_v39 = vld [vmem:[%s6118_s8 + $0x370] sm:$0xff]  ;;  %v1629_v42 = vld [vmem:[%s6118_s8 + $0x378] sm:$0xff]  ;;  %1490 = vst.msk [vmem:[#allocation3 + $0x120] sm:$0xff] %vm813_vm0, %v3509_v58  ;;  %1514 = vst.msk [vmem:[#allocation3 + $0x1e0] sm:$0xff] %vm813_vm0, %v3510_v61 }
 0x275   :  { %v1701_v45 = vpack.c.bf16 %v1629_v42, %v1628_v39  ;;  %v2213_v47 = vld [vmem:[#allocation3 + $0x50] sm:$0xff]  ;;  %v1829_v56 = vpop.permute.xlu0 %1828  ;;  %1491 = vst.msk [vmem:[#allocation3 + $0x128] sm:$0xff] %vm813_vm0, %v3513_v3  ;;  %1507 = vst.msk [vmem:[#allocation3 + $0x1a8] sm:$0xff] %vm813_vm0, %v3515_v8  ;;  %v3521_v22 = vld [vmem:[%s6115_s2 + $0x138] sm:$0xff]  }
 0x276   :  { %1868 = vrot.lane.b32.xlu0 %v1693_v21, %s3550_s25  ;;  %3309 = vmatprep.subr.bf16.mxu0 %v2213_v47  ;;  %v2205_v51 = vld [vmem:[#allocation3 + $0x10] sm:$0xff]  ;;  %1994 = vst.msk [vmem:[#allocation3 + $0xd8] sm:$0xff] %vm1966_vm1, %v1829_v56  ;;  %v1813_v59 = vpop.permute.xlu1 %1812  ;;  %v3522_v24 = vld [vmem:[%s6115_s2 + $0x1f8] sm:$0xff]   ;;  %v2031_v30 = vld [vmem:[%s6121_s4] sm:$0xff] }
 0x277   :  { %1852 = vrot.lane.b32.xlu1 %v1685_v27, %s3550_s25  ;;  %3310 = vmatpush3.bf16.msra.mxu0 %v2205_v51  ;;  %v2229_v55 = vld [vmem:[#allocation3 + $0xd0] sm:$0xff]  ;;  %1986 = vst.msk [vmem:[#allocation3 + $0x98] sm:$0xff] %vm1966_vm1, %v1813_v59  ;;  %v5789_v27 = vshrl.u32 %v2427_v18, 7  ;;  %v2032_v32 = vld [vmem:[%s6121_s4 + $0x8] sm:$0xff]  ;;  %v2067_v38 = vmul.f32 %v2031_v30, %v3639_v11  ;;  %v2034_v42 = vld [vmem:[%s6121_s4 + $0x18] sm:$0xff]  ;;  %v2061_v51 = vmul.f32 %v2053_v44, %v3617_v0 }
 0x278   :  { %3331 = vmatprep.subr.bf16.mxu1 %v2229_v55  ;;  %v2221_v60 = vld [vmem:[#allocation3 + $0x90] sm:$0xff]  ;;  %1492 = vst.msk [vmem:[#allocation3 + $0x130] sm:$0xff] %vm813_vm0, %v3517_v13  ;;  %1493 = vst.msk [vmem:[#allocation3 + $0x138] sm:$0xff] %vm813_vm0, %v3521_v22  ;;  %v2068_v39 = vmul.f32 %v2032_v32, %v3639_v11  ;;  %v2457_v40 = vpack.c.bf16 %v2032_v32, %v2031_v30  ;;  %v5827_v47 = vld [vmem:[%s6123_s6] sm:$0xff]  ;;  %v2070_v53 = vmul.f32 %v2034_v42, %v3639_v11 }
 0x279   :  { %3332 = vmatpush3.bf16.msra.mxu1 %v2221_v60  ;;  %v2214_v62 = vld [vmem:[#allocation3 + $0x58] sm:$0xff]  ;;  %v1799_v2 = vpop.permute.xlu0 %1798  ;;  %v3518_v15 = vld [vmem:[%s6115_s2 + $0x1f0] sm:$0xff]   ;;  %1517 = vst.msk [vmem:[#allocation3 + $0x1f8] sm:$0xff] %vm813_vm0, %v3522_v24  ;;  %v2435_v48 = vsub.s32 2, %v5789_v27  ;;  %v2075_v50 = vadd.f32 %v2067_v38, %v2059_v37  ;;  %v2036_v55 = vld [vmem:[%s6121_s4 + $0x28] sm:$0xff]  ;;  %v38_v59 = vmul.f32 %v3617_v0, %v5827_v47  ;;  %v40_v60 = vmul.f32 %v3639_v11, %v5827_v47 }
 0x27a   :  { %1900 = vrot.lane.b32.xlu0 %v1709_v35, %s3550_s25  ;;  %3311 = vmatprep.subr.bf16.mxu0 %v2214_v62  ;;  %1979 = vst.msk [vmem:[#allocation3 + $0x60] sm:$0xff] %vm1966_vm1, %v1799_v2  ;;  %v2206_v4 = vld [vmem:[#allocation3 + $0x18] sm:$0xff]  ;;  %v1783_v5 = vpop.permute.xlu1 %1782  ;;  %v3519_v16 = vld [vmem:[%s6115_s2 + $0x1b0] sm:$0xff]   ;;  %v2076_v57 = vadd.f32 %v2068_v39, %v2060_v43  ;;  %v2055_v61 = vld [vmem:[%s6122_s5 + $0x20] sm:$0xff]  ;;  %v2072_v10 = vmul.f32 %v2036_v55, %v3639_v11  ;;  %s3555_s2 = smov 96   ;;  %vm2644_vm9 = vcmp.lt.s32.totalorder %v5789_v27, 2 }
 0x27b   :  { %1884 = vrot.lane.b32.xlu1 %v1701_v45, %s3550_s25  ;;  %3312 = vmatpush3.bf16.msra.mxu0 %v2206_v4  ;;  %1971 = vst.msk [vmem:[#allocation3 + $0x20] sm:$0xff] %vm1966_vm1, %v1783_v5  ;;  %v2033_v41 = vld [vmem:[%s6121_s4 + $0x10] sm:$0xff]  ;;  %v2054_v45 = vld [vmem:[%s6122_s5 + $0x18] sm:$0xff]  ;;  %v2056_v62 = vld [vmem:[%s6122_s5 + $0x28] sm:$0xff]  ;;  %v2063_v3 = vmul.f32 %v2055_v61, %v3617_v0  ;;  %v42_v8 = vrot.slane %v40_v60, 6 }
 0x27c   :  { %1516 = vst.msk [vmem:[#allocation3 + $0x1f0] sm:$0xff] %vm813_vm0, %v3518_v15  ;;  %1508 = vst.msk [vmem:[#allocation3 + $0x1b0] sm:$0xff] %vm813_vm0, %v3519_v16  ;;  %v2069_v46 = vmul.f32 %v2033_v41, %v3639_v11  ;;  %v2062_v52 = vmul.f32 %v2054_v45, %v3617_v0  ;;  %v2458_v58 = vpack.c.bf16 %v2034_v42, %v2033_v41  ;;  %v2038_v13 = vld [vmem:[%s6121_s4 + $0x38] sm:$0xff]  ;;  %v5921_v41 = vld [vmem:[#allocation2 + $0x10] sm:$0xff] }
 0x27d   :  { %v2230_v7 = vld [vmem:[#allocation3 + $0xd8] sm:$0xff]  ;;  %v1831_v9 = vpop.permute.xlu0 %1830  ;;  %2461 = vst.msk [vmem:[#allocation4] sm:$0xff] %vm2083_vm2, %v2457_v40  ;;  %2084 = vst.msk [vmem:[%s6124_s9] sm:$0xff] %vm2083_vm2, %v2075_v50  ;;  %v2064_v4 = vmul.f32 %v2056_v62, %v3617_v0  ;;  %v2189_v44 = vcombine.high %v5921_v41, %v5921_v41 }
 0x27e   :  { %3333 = vmatprep.subr.bf16.mxu1 %v2230_v7  ;;  %1995 = vst.msk [vmem:[#allocation3 + $0xe0] sm:$0xff] %vm1966_vm1, %v1831_v9  ;;  %v2222_v12 = vld [vmem:[#allocation3 + $0x98] sm:$0xff]  ;;  %v1815_v14 = vpop.permute.xlu1 %1814  ;;  %v2077_v1 = vadd.f32 %v2069_v46, %v2061_v51  ;;  %v2078_v2 = vadd.f32 %v2070_v53, %v2062_v52  ;;  %v2465_v7 = vpack.c.bf16 %v2076_v57, %v2075_v50  ;;  %2092 = vst [vmem:[%s6125_s10] sm:$0xff] %v5827_v47 }
 0x27f   :  { %3334 = vmatpush3.bf16.msra.mxu1 %v2222_v12  ;;  %1987 = vst.msk [vmem:[#allocation3 + $0xa0] sm:$0xff] %vm1966_vm1, %v1815_v14  ;;  %v2071_v9 = vmul.f32 %v2035_v54, %v3639_v11  ;;  %v2037_v12 = vld [vmem:[%s6121_s4 + $0x30] sm:$0xff]  ;;  %v5927_v46 = vld [vmem:[#allocation2 + $0x18] sm:$0xff]  ;;  %v2195_v51 = vpack.c.bf16 %v5667_v33, %v5667_v33  ;;  %v2200_v53 = vpack.c.bf16 %v2189_v44, %v2189_v44 }
 0x280   :  { %2462 = vst.msk [vmem:[#allocation4 + $0x8] sm:$0xff] %vm2083_vm2, %v2458_v58  ;;  %v2466_v16 = vpack.c.bf16 %v2078_v2, %v2077_v1  ;;  %v2460_v26 = vpack.c.bf16 %v2038_v13, %v2037_v12  ;;  %v2197_v58 = vpack.c.bf16 %v5659_v29, %v5659_v29 }
 0x281   :  { %v2215_v17 = vld [vmem:[#allocation3 + $0x60] sm:$0xff]  ;;  %v1801_v19 = vpop.permute.xlu0 %1800  ;;  %v2079_v22 = vadd.f32 %v2071_v9, %v2063_v3 }
 0x282   :  { %3313 = vmatprep.subr.bf16.mxu0 %v2215_v17  ;;  %1980 = vst.msk [vmem:[#allocation3 + $0x68] sm:$0xff] %vm1966_vm1, %v1801_v19  ;;  %v2207_v21 = vld [vmem:[#allocation3 + $0x20] sm:$0xff]  ;;  %v1785_v23 = vpop.permute.xlu1 %1784  ;;  %v2459_v17 = vpack.c.bf16 %v2036_v55, %v2035_v54  ;;  %v2190_v54 = vcombine.high %v5927_v46, %v5927_v46 }
 0x283   :  { %3314 = vmatpush3.bf16.msra.mxu0 %v2207_v21  ;;  %1972 = vst.msk [vmem:[#allocation3 + $0x28] sm:$0xff] %vm1966_vm1, %v1785_v23  ;;  %v5888_v21 = vadd.f32 %v42_v8, %v38_v59  ;;  %v2080_v23 = vadd.f32 %v2072_v10, %v2064_v4 }
 0x284   :  { %v2057_v5 = vld [vmem:[%s6122_s5 + $0x30] sm:$0xff]  ;;  %2463 = vst.msk [vmem:[#allocation4 + $0x10] sm:$0xff] %vm2083_vm2, %v2459_v17  ;;  %2464 = vst.msk [vmem:[#allocation4 + $0x18] sm:$0xff] %vm2083_vm2, %v2460_v26  ;;  %v2202_v33 = vpack.c.bf16 %v2190_v54, %v2190_v54 }
 0x285   :  { %v2231_v25 = vld [vmem:[#allocation3 + $0xe0] sm:$0xff]  ;;  %v1833_v28 = vpop.permute.xlu0 %1832  ;;  %2085 = vst.msk [vmem:[%s6124_s9 + $0x8] sm:$0xff] %vm2083_vm2, %v2076_v57  ;;  %v2065_v18 = vmul.f32 %v2057_v5, %v3617_v0  ;;  %v2436_v30 = vrot.slane %v5888_v21, %v2435_v48  ;;  %2093 = vst [vmem:[%s6125_s10] sm:$0xc] %v5888_v21  }
 0x286   :  { %3335 = vmatprep.subr.bf16.mxu1 %v2231_v25  ;;  %1996 = vst.msk [vmem:[#allocation3 + $0xe8] sm:$0xff] %vm1966_vm1, %v1833_v28  ;;  %v2223_v31 = vld [vmem:[#allocation3 + $0xa0] sm:$0xff]  ;;  %v1817_v35 = vpop.permute.xlu1 %1816  ;;  %v2073_v25 = vmul.f32 %v2037_v12, %v3639_v11 }
 0x287   :  { %3336 = vmatpush3.bf16.msra.mxu1 %v2223_v31  ;;  %1988 = vst.msk [vmem:[#allocation3 + $0xa8] sm:$0xff] %vm1966_vm1, %v1817_v35  ;;  %v2467_v31 = vpack.c.bf16 %v2080_v23, %v2079_v22 }
 0x289   :  { %v2216_v49 = vld [vmem:[#allocation3 + $0x68] sm:$0xff]  ;;  %v1803_v56 = vpop.permute.xlu0 %1802 }
 0x28a   :  { %3315 = vmatprep.subr.bf16.mxu0 %v2216_v49  ;;  %1981 = vst.msk [vmem:[#allocation3 + $0x70] sm:$0xff] %vm1966_vm1, %v1803_v56  ;;  %v2208_v63 = vld [vmem:[#allocation3 + $0x28] sm:$0xff]  ;;  %v1787_v6 = vpop.permute.xlu1 %1786 }
 0x28b   :  { %3316 = vmatpush3.bf16.msra.mxu0 %v2208_v63  ;;  %1973 = vst.msk [vmem:[#allocation3 + $0x30] sm:$0xff] %vm1966_vm1, %v1787_v6 }
 0x28c   :  { %v2058_v14 = vld [vmem:[%s6122_s5 + $0x38] sm:$0xff]  ;;  %s3552_s5 = smov 32  }
 0x28d   :  { %v2232_v15 = vld [vmem:[#allocation3 + $0xe8] sm:$0xff]  ;;  %2086 = vst.msk [vmem:[%s6124_s9 + $0x10] sm:$0xff] %vm2083_vm2, %v2077_v1  ;;  %2087 = vst.msk [vmem:[%s6124_s9 + $0x18] sm:$0xff] %vm2083_vm2, %v2078_v2  ;;  %v2066_v19 = vmul.f32 %v2058_v14, %v3617_v0  ;;  %v1835_v20 = vpop.permute.xlu0 %1834  ;;  %2473 = vrot.lane.b32.xlu0 %v2465_v7, %s3552_s5  ;;  %2475 = vrot.lane.b32.xlu1 %v2466_v16, %s3552_s5  ;;  %v2074_v0 = vmul.f32 %v2038_v13, %v3639_v11 }
 0x28e   :  { %3337 = vmatprep.subr.bf16.mxu1 %v2232_v15  ;;  %1997 = vst.msk [vmem:[#allocation3 + $0xf0] sm:$0xff] %vm1966_vm1, %v1835_v20  ;;  %v2224_v24 = vld [vmem:[#allocation3 + $0xa8] sm:$0xff]  ;;  %v1819_v28 = vpop.permute.xlu1 %1818  ;;  %v2081_v11 = vadd.f32 %v2073_v25, %v2065_v18 }
 0x28f   :  { %3338 = vmatpush3.bf16.msra.mxu1 %v2224_v24  ;;  %2088 = vst.msk [vmem:[%s6124_s9 + $0x20] sm:$0xff] %vm2083_vm2, %v2079_v22  ;;  %2089 = vst.msk [vmem:[%s6124_s9 + $0x28] sm:$0xff] %vm2083_vm2, %v2080_v23  ;;  %v2082_v32 = vadd.f32 %v2074_v0, %v2066_v19 }
 0x290   :  { %1989 = vst.msk [vmem:[#allocation3 + $0xb0] sm:$0xff] %vm1966_vm1, %v1819_v28 }
 0x291   :  { %v2217_v34 = vld [vmem:[#allocation3 + $0x70] sm:$0xff]  ;;  %2477 = vrot.lane.b32.xlu0 %v2467_v31, %s3552_s5  ;;  %v1805_v35 = vpop.permute.xlu0 %1804  ;;  %2438 = vrot.lane.b32.xlu1 %v2436_v30, %s3550_s25  ;;  %2090 = vst.msk [vmem:[%s6124_s9 + $0x30] sm:$0xff] %vm2083_vm2, %v2081_v11  ;;  %2091 = vst.msk [vmem:[%s6124_s9 + $0x38] sm:$0xff] %vm2083_vm2, %v2082_v32  ;;  %v2468_v36 = vpack.c.bf16 %v2082_v32, %v2081_v11 }
 0x292   :  { %3317 = vmatprep.subr.bf16.mxu0 %v2217_v34  ;;  %1982 = vst.msk [vmem:[#allocation3 + $0x78] sm:$0xff] %vm1966_vm1, %v1805_v35  ;;  %v2209_v37 = vld [vmem:[#allocation3 + $0x30] sm:$0xff]  ;;  %v1789_v38 = vpop.permute.xlu1 %1788 }
 0x293   :  { %3318 = vmatpush3.bf16.msra.mxu0 %v2209_v37  ;;  %1974 = vst.msk [vmem:[#allocation3 + $0x38] sm:$0xff] %vm1966_vm1, %v1789_v38 }
 0x295   :  { %v2233_v39 = vld [vmem:[#allocation3 + $0xf0] sm:$0xff]  ;;  %2479 = vrot.lane.b32.xlu0 %v2468_v36, %s3552_s5  ;;  %v1837_v40 = vpop.permute.xlu0 %1836 }
 0x296   :  { %3339 = vmatprep.subr.bf16.mxu1 %v2233_v39  ;;  %1998 = vst.msk [vmem:[#allocation3 + $0xf8] sm:$0xff] %vm1966_vm1, %v1837_v40  ;;  %v1821_v43 = vpop.permute.xlu1 %1820 }
 0x297   :  { %v2225_v42 = vld [vmem:[#allocation3 + $0xb0] sm:$0xff]  ;;  %1990 = vst.msk [vmem:[#allocation3 + $0xb8] sm:$0xff] %vm1966_vm1, %v1821_v43 }
 0x298   :  { %3340 = vmatpush3.bf16.msra.mxu1 %v2225_v42 }
 0x299   :  { %v2218_v45 = vld [vmem:[#allocation3 + $0x78] sm:$0xff]  ;;  %v1855_v49 = vpop.permute.xlu0 %1854 }
 0x29a   :  { %3319 = vmatprep.subr.bf16.mxu0 %v2218_v45  ;;  %2007 = vst.msk [vmem:[#allocation3 + $0x140] sm:$0xff] %vm1966_vm1, %v1855_v49  ;;  %v2210_v50 = vld [vmem:[#allocation3 + $0x38] sm:$0xff]  ;;  %v1839_v52 = vpop.permute.xlu1 %1838 }
 0x29b   :  { %3320 = vmatpush3.bf16.msra.mxu0 %v2210_v50  ;;  %1999 = vst.msk [vmem:[#allocation3 + $0x100] sm:$0xff] %vm1966_vm1, %v1839_v52 }
 0x29d   :  { %v2234_v55 = vld [vmem:[#allocation3 + $0xf8] sm:$0xff]  ;;  %v1887_v56 = vpop.permute.xlu0 %1886 }
 0x29e   :  { %3341 = vmatprep.subr.bf16.mxu1 %v2234_v55  ;;  %2023 = vst.msk [vmem:[#allocation3 + $0x1c0] sm:$0xff] %vm1966_vm1, %v1887_v56  ;;  %v2226_v57 = vld [vmem:[#allocation3 + $0xb8] sm:$0xff]  ;;  %2300 = vmatmul.mubr.bf16.vlgmr.msra.gmra.mrb[0].mxu0 %v2195_v51  ;;  %v1871_v59 = vpop.permute.xlu1 %1870 }
 0x29f   :  { %3342 = vmatpush3.bf16.msra.mxu1 %v2226_v57  ;;  %2379 = vmatprep.mubr.bf16.mxu0 %v2200_v53  ;;  %2015 = vst.msk [vmem:[#allocation3 + $0x180] sm:$0xff] %vm1966_vm1, %v1871_v59 }
 0x2a1   :  { %v2243_v60 = vld [vmem:[#allocation3 + $0x140] sm:$0xff]  ;;  %v1857_v61 = vpop.permute.xlu0 %1856 }
 0x2a2   :  { %3349 = vmatprep.subr.bf16.mxu0 %v2243_v60  ;;  %2340 = vmatmul.mubr.bf16.vlgmr.msra.gmra.mrb[0].mxu1 %v2197_v58  ;;  %2008 = vst.msk [vmem:[#allocation3 + $0x148] sm:$0xff] %vm1966_vm1, %v1857_v61  ;;  %v2235_v62 = vld [vmem:[#allocation3 + $0x100] sm:$0xff]  ;;  %v1841_v63 = vpop.permute.xlu1 %1840  ;;  %v2199_v60 = vpack.c.bf16 %v5921_v41, %v5921_v41  ;;  %v2492_v41 = vld [vmem:[#allocation4 + $0x8] sm:$0xff] }
 0x2a3   :  { %2419 = vmatprep.mubr.bf16.mxu1 %v2202_v33  ;;  %3350 = vmatpush3.bf16.msra.mxu0 %v2235_v62  ;;  %2000 = vst.msk [vmem:[#allocation3 + $0x108] sm:$0xff] %vm1966_vm1, %v1841_v63  ;;  %v2201_v63 = vpack.c.bf16 %v5927_v46, %v5927_v46  ;;  %v2493_v46 = vld [vmem:[#allocation4 + $0x10] sm:$0xff] }
 0x2a5   :  { %v2259_v1 = vld [vmem:[#allocation3 + $0x1c0] sm:$0xff]  ;;  %v1889_v29 = vpop.permute.xlu0 %1888 }
 0x2a6   :  { %3371 = vmatprep.subr.bf16.mxu1 %v2259_v1  ;;  %2024 = vst.msk [vmem:[#allocation3 + $0x1c8] sm:$0xff] %vm1966_vm1, %v1889_v29  ;;  %v2251_v2 = vld [vmem:[#allocation3 + $0x180] sm:$0xff]  ;;  %v1873_v3 = vpop.permute.xlu1 %1872  ;;  %v3553_v29 = vmov 0.0  }
 0x2a7   :  { %3372 = vmatpush3.bf16.msra.mxu1 %v2251_v2  ;;  %2016 = vst.msk [vmem:[#allocation3 + $0x188] sm:$0xff] %vm1966_vm1, %v1873_v3  ;;  %v2491_v1 = vld [vmem:[#allocation4] sm:$0xff] }
 0x2a9   :  { %v2244_v4 = vld [vmem:[#allocation3 + $0x148] sm:$0xff]  ;;  %v1859_v5 = vpop.permute.xlu0 %1858 }
 0x2aa   :  { %3351 = vmatprep.subr.bf16.mxu0 %v2244_v4  ;;  %2009 = vst.msk [vmem:[#allocation3 + $0x150] sm:$0xff] %vm1966_vm1, %v1859_v5  ;;  %v2236_v6 = vld [vmem:[#allocation3 + $0x108] sm:$0xff]  ;;  %v1843_v7 = vpop.permute.xlu1 %1842  ;;  %v2494_v4 = vld [vmem:[#allocation4 + $0x18] sm:$0xff] }
 0x2ab   :  { %3352 = vmatpush3.bf16.msra.mxu0 %v2236_v6  ;;  %2001 = vst.msk [vmem:[#allocation3 + $0x110] sm:$0xff] %vm1966_vm1, %v1843_v7 }
 0x2ad   :  { %v2260_v8 = vld [vmem:[#allocation3 + $0x1c8] sm:$0xff]  ;;  %v1891_v9 = vpop.permute.xlu0 %1890 }
 0x2ae   :  { %3373 = vmatprep.subr.bf16.mxu1 %v2260_v8  ;;  %2025 = vst.msk [vmem:[#allocation3 + $0x1d0] sm:$0xff] %vm1966_vm1, %v1891_v9  ;;  %v2252_v10 = vld [vmem:[#allocation3 + $0x188] sm:$0xff]  ;;  %v1875_v12 = vpop.permute.xlu1 %1874 }
 0x2af   :  { %3374 = vmatpush3.bf16.msra.mxu1 %v2252_v10  ;;  %2017 = vst.msk [vmem:[#allocation3 + $0x190] sm:$0xff] %vm1966_vm1, %v1875_v12  ;;  %v2546_v12 = vsub.s32 3, %v5789_v27 }
 0x2b1   :  { %v2245_v13 = vld [vmem:[#allocation3 + $0x150] sm:$0xff]  ;;  %v1861_v14 = vpop.permute.xlu0 %1860 }
 0x2b2   :  { %3353 = vmatprep.subr.bf16.mxu0 %v2245_v13  ;;  %2010 = vst.msk [vmem:[#allocation3 + $0x158] sm:$0xff] %vm1966_vm1, %v1861_v14  ;;  %v2237_v15 = vld [vmem:[#allocation3 + $0x110] sm:$0xff]  ;;  %v1845_v16 = vpop.permute.xlu1 %1844  ;;  %v2039_v13 = vld [vmem:[%s6121_s4 + $0x40] sm:$0xff]  ;;  %v2040_v14 = vld [vmem:[%s6121_s4 + $0x48] sm:$0xff] }
 0x2b3   :  { %3354 = vmatpush3.bf16.msra.mxu0 %v2237_v15  ;;  %2002 = vst.msk [vmem:[#allocation3 + $0x118] sm:$0xff] %vm1966_vm1, %v1845_v16  ;;  %v2554_v15 = vpack.c.bf16 %v2040_v14, %v2039_v13  ;;  %v2547_v16 = vrot.slane %v5888_v21, %v2546_v12  ;;  %v2046_v13 = vld [vmem:[%s6121_s4 + $0x78] sm:$0xff] }
 0x2b5   :  { %v2261_v17 = vld [vmem:[#allocation3 + $0x1d0] sm:$0xff]  ;;  %v1893_v18 = vpop.permute.xlu0 %1892  ;;  %2549 = vrot.lane.b32.xlu1 %v2547_v16, %s3552_s5  ;;  %v2048_v16 = vld [vmem:[%s6121_s4 + $0x88] sm:$0xff] }
 0x2b6   :  { %3375 = vmatprep.subr.bf16.mxu1 %v2261_v17  ;;  %2026 = vst.msk [vmem:[#allocation3 + $0x1d8] sm:$0xff] %vm1966_vm1, %v1893_v18  ;;  %v2253_v19 = vld [vmem:[#allocation3 + $0x190] sm:$0xff]  ;;  %v1877_v20 = vpop.permute.xlu1 %1876 }
 0x2b7   :  { %3376 = vmatpush3.bf16.msra.mxu1 %v2253_v19  ;;  %2018 = vst.msk [vmem:[#allocation3 + $0x198] sm:$0xff] %vm1966_vm1, %v1877_v20 }
 0x2b9   :  { %v2246_v22 = vld [vmem:[#allocation3 + $0x158] sm:$0xff]  ;;  %v1863_v23 = vpop.permute.xlu0 %1862 }
 0x2ba   :  { %3355 = vmatprep.subr.bf16.mxu0 %v2246_v22  ;;  %2011 = vst.msk [vmem:[#allocation3 + $0x160] sm:$0xff] %vm1966_vm1, %v1863_v23  ;;  %v2238_v24 = vld [vmem:[#allocation3 + $0x118] sm:$0xff]  ;;  %v1847_v25 = vpop.permute.xlu1 %1846 }
 0x2bb   :  { %3356 = vmatpush3.bf16.msra.mxu0 %v2238_v24  ;;  %2003 = vst.msk [vmem:[#allocation3 + $0x120] sm:$0xff] %vm1966_vm1, %v1847_v25 }
 0x2bd   :  { %v2262_v0 = vld [vmem:[#allocation3 + $0x1d8] sm:$0xff]  ;;  %v1895_v26 = vpop.permute.xlu0 %1894 }
 0x2be   :  { %3377 = vmatprep.subr.bf16.mxu1 %v2262_v0  ;;  %2027 = vst.msk [vmem:[#allocation3 + $0x1e0] sm:$0xff] %vm1966_vm1, %v1895_v26  ;;  %v2254_v28 = vld [vmem:[#allocation3 + $0x198] sm:$0xff]  ;;  %v1879_v30 = vpop.permute.xlu1 %1878 }
 0x2bf   :  { %3378 = vmatpush3.bf16.msra.mxu1 %v2254_v28  ;;  %2019 = vst.msk [vmem:[#allocation3 + $0x1a0] sm:$0xff] %vm1966_vm1, %v1879_v30 }
 0x2c1   :  { %v2247_v31 = vld [vmem:[#allocation3 + $0x160] sm:$0xff]  ;;  %v1865_v11 = vpop.permute.xlu0 %1864 }
 0x2c2   :  { %3357 = vmatprep.subr.bf16.mxu0 %v2247_v31  ;;  %2012 = vst.msk [vmem:[#allocation3 + $0x168] sm:$0xff] %vm1966_vm1, %v1865_v11  ;;  %v2239_v32 = vld [vmem:[#allocation3 + $0x120] sm:$0xff]  ;;  %v1849_v34 = vpop.permute.xlu1 %1848 }
 0x2c3   :  { %3358 = vmatpush3.bf16.msra.mxu0 %v2239_v32  ;;  %2004 = vst.msk [vmem:[#allocation3 + $0x128] sm:$0xff] %vm1966_vm1, %v1849_v34 }
 0x2c5   :  { %v2263_v35 = vld [vmem:[#allocation3 + $0x1e0] sm:$0xff]  ;;  %v1897_v36 = vpop.permute.xlu0 %1896 }
 0x2c6   :  { %3379 = vmatprep.subr.bf16.mxu1 %v2263_v35  ;;  %2028 = vst.msk [vmem:[#allocation3 + $0x1e8] sm:$0xff] %vm1966_vm1, %v1897_v36  ;;  %v2255_v37 = vld [vmem:[#allocation3 + $0x1a0] sm:$0xff]  ;;  %v1881_v38 = vpop.permute.xlu1 %1880  ;;  %v2429_v35 = vsub.s32 0, %v5789_v27 }
 0x2c7   :  { %3380 = vmatpush3.bf16.msra.mxu1 %v2255_v37  ;;  %2020 = vst.msk [vmem:[#allocation3 + $0x1a8] sm:$0xff] %vm1966_vm1, %v1881_v38 }
 0x2c9   :  { %v2248_v39 = vld [vmem:[#allocation3 + $0x168] sm:$0xff] }
 0x2ca   :  { %3359 = vmatprep.subr.bf16.mxu0 %v2248_v39  ;;  %v2240_v42 = vld [vmem:[#allocation3 + $0x128] sm:$0xff] }
 0x2cb   :  { %3360 = vmatpush3.bf16.msra.mxu0 %v2240_v42  ;;  %v2430_v42 = vrot.slane %v5827_v47, %v2429_v35 }
 0x2cd   :  { %v2264_v44 = vld [vmem:[#allocation3 + $0x1e8] sm:$0xff] }
 0x2ce   :  { %3381 = vmatprep.subr.bf16.mxu1 %v2264_v44  ;;  %v2256_v49 = vld [vmem:[#allocation3 + $0x1a8] sm:$0xff] }
 0x2cf   :  { %3382 = vmatpush3.bf16.msra.mxu1 %v2256_v49 }
 0x2d4   :  { %v1867_v40 = vpop.permute.xlu0 %1866 }
 0x2d5   :  { %2013 = vst.msk [vmem:[#allocation3 + $0x170] sm:$0xff] %vm1966_vm1, %v1867_v40 }
 0x2dc   :  { %v1851_v43 = vpop.permute.xlu1 %1850  ;;  %v2249_v51 = vld [vmem:[#allocation3 + $0x170] sm:$0xff] }
 0x2dd   :  { %2005 = vst.msk [vmem:[#allocation3 + $0x130] sm:$0xff] %vm1966_vm1, %v1851_v43  ;;  %3361 = vmatprep.subr.bf16.mxu0 %v2249_v51 }
 0x2e4   :  { %v1899_v45 = vpop.permute.xlu0 %1898  ;;  %v2241_v53 = vld [vmem:[#allocation3 + $0x130] sm:$0xff] }
 0x2e5   :  { %2029 = vst.msk [vmem:[#allocation3 + $0x1f0] sm:$0xff] %vm1966_vm1, %v1899_v45  ;;  %v1883_v50 = vpop.permute.xlu1 %1882  ;;  %3362 = vmatpush3.bf16.msra.mxu0 %v2241_v53 }
 0x2e6   :  { %2021 = vst.msk [vmem:[#allocation3 + $0x1b0] sm:$0xff] %vm1966_vm1, %v1883_v50 }
 0x2e8   :  { %v1869_v52 = vpop.permute.xlu0 %1868 }
 0x2e9   :  { %2014 = vst.msk [vmem:[#allocation3 + $0x178] sm:$0xff] %vm1966_vm1, %v1869_v52  ;;  %v1853_v54 = vpop.permute.xlu1 %1852 }
 0x2ea   :  { %2006 = vst.msk [vmem:[#allocation3 + $0x138] sm:$0xff] %vm1966_vm1, %v1853_v54 }
 0x2ec   :  { %v2265_v55 = vld [vmem:[#allocation3 + $0x1f0] sm:$0xff]  ;;  %v1901_v56 = vpop.permute.xlu0 %1900 }
 0x2ed   :  { %3383 = vmatprep.subr.bf16.mxu1 %v2265_v55  ;;  %2030 = vst.msk [vmem:[#allocation3 + $0x1f8] sm:$0xff] %vm1966_vm1, %v1901_v56  ;;  %v2257_v57 = vld [vmem:[#allocation3 + $0x1b0] sm:$0xff]  ;;  %v1885_v58 = vpop.permute.xlu1 %1884 }
 0x2ee   :  { %3384 = vmatpush3.bf16.msra.mxu1 %v2257_v57  ;;  %2022 = vst.msk [vmem:[#allocation3 + $0x1b8] sm:$0xff] %vm1966_vm1, %v1885_v58  ;;  %v2041_v56 = vld [vmem:[%s6121_s4 + $0x50] sm:$0xff]  ;;  %v2042_v57 = vld [vmem:[%s6121_s4 + $0x58] sm:$0xff] }
 0x2ef   :  { %v2555_v58 = vpack.c.bf16 %v2042_v57, %v2041_v56 }
 0x2f0   :  { %v2250_v59 = vld [vmem:[#allocation3 + $0x178] sm:$0xff] }
 0x2f1   :  { %3363 = vmatprep.subr.bf16.mxu0 %v2250_v59  ;;  %v2242_v33 = vld [vmem:[#allocation3 + $0x138] sm:$0xff]  ;;  %v2541_v59 = vsub.s32 1, %v5789_v27 }
 0x2f2   :  { %3364 = vmatpush3.bf16.msra.mxu0 %v2242_v33 }
 0x2f3   :  { %3410 = vmatprep.subr.bf16.mxu0 %v3553_v29  ;;  %v2542_v33 = vrot.slane %v5827_v47, %v2541_v59 }
 0x2f4   :  { %v2266_v61 = vld [vmem:[#allocation3 + $0x1f8] sm:$0xff] }
 0x2f5   :  { %3385 = vmatprep.subr.bf16.mxu1 %v2266_v61  ;;  %2380 = vmatmul.mubr.bf16.vlgmr.msra.gmra.mrb[4].mxu0 %v2199_v60  ;;  %v2258_v62 = vld [vmem:[#allocation3 + $0x1b8] sm:$0xff] }
 0x2f6   :  { %3386 = vmatpush3.bf16.msra.mxu1 %v2258_v62  ;;  %3411 = vmatpush3.bf16.msra.mxu0 %v2491_v1 }
 0x2f7   :  { %3430 = vmatprep.subr.bf16.mxu1 %v3553_v29  ;;  %3412 = vmatprep.subr.bf16.mxu0 %v3553_v29 }
 0x2f8   :  { %3426 = vmatprep.mubr.msk.bf16.mxu0 %vm3554_vm4, %v3553_v29 }
 0x2f9   :  { %2420 = vmatmul.mubr.bf16.vlgmr.msra.gmra.mrb[4].mxu1 %v2201_v63 }
 0x2fa   :  { %3413 = vmatpush3.bf16.msra.mxu0 %v2492_v41  ;;  %3434 = vmatprep.mubr.msk.bf16.mxu1 %vm3554_vm4, %v3553_v29 }
 0x2fb   :  { %3414 = vmatprep.subr.bf16.mxu0 %v3553_v29  ;;  %3431 = vmatpush3.bf16.msra.mxu1 %v2554_v15  ;;  %v2047_v15 = vld [vmem:[%s6121_s4 + $0x80] sm:$0xff] }
 0x2fc   :  { %3432 = vmatprep.subr.bf16.mxu1 %v3553_v29 }
 0x2fe   :  { %3415 = vmatpush3.bf16.msra.mxu0 %v2493_v46 }
 0x2ff   :  { %v2474_v2 = vpop.permute.xlu0 %2473  ;;  %3416 = vmatprep.subr.bf16.mxu0 %v3553_v29  ;;  %v2476_v3 = vpop.permute.xlu1 %2475  ;;  %3433 = vmatpush3.bf16.msra.mxu1 %v2555_v58 }
 0x300   :  { %2486 = vst.msk [vmem:[#allocation4 + $0x20] sm:$0xff] %vm2485_vm3, %v2474_v2  ;;  %2487 = vst.msk [vmem:[#allocation4 + $0x28] sm:$0xff] %vm2485_vm3, %v2476_v3  ;;  %3438 = vmatprep.subr.bf16.mxu1 %v3553_v29 }
 0x302   :  { %3417 = vmatpush3.bf16.msra.mxu0 %v2494_v4 }
 0x303   :  { %3418 = vmatprep.subr.bf16.mxu0 %v3553_v29  ;;  %v2478_v5 = vpop.permute.xlu0 %2477  ;;  %v2439_v44 = vpop.permute.xlu1 %2438 }
 0x304   :  { %2488 = vst.msk [vmem:[#allocation4 + $0x30] sm:$0xff] %vm2485_vm3, %v2478_v5 }
 0x307   :  { %v2495_v6 = vld [vmem:[#allocation4 + $0x20] sm:$0xff]  ;;  %v2480_v7 = vpop.permute.xlu0 %2479  ;;  %v2496_v8 = vld [vmem:[#allocation4 + $0x28] sm:$0xff] }
 0x308   :  { %3419 = vmatpush3.bf16.msra.mxu0 %v2495_v6  ;;  %2489 = vst.msk [vmem:[#allocation4 + $0x38] sm:$0xff] %vm2485_vm3, %v2480_v7  ;;  %v2043_v7 = vld [vmem:[%s6121_s4 + $0x60] sm:$0xff] }
 0x309   :  { %3420 = vmatprep.subr.bf16.mxu0 %v3553_v29 }
 0x30b   :  { %v2497_v9 = vld [vmem:[#allocation4 + $0x30] sm:$0xff] }
 0x30c   :  { %3421 = vmatpush3.bf16.msra.mxu0 %v2496_v8  ;;  %v2044_v8 = vld [vmem:[%s6121_s4 + $0x68] sm:$0xff] }
 0x30d   :  { %3422 = vmatprep.subr.bf16.mxu0 %v3553_v29 }
 0x30f   :  { %v2498_v10 = vld [vmem:[#allocation4 + $0x38] sm:$0xff] }
 0x310   :  { %3423 = vmatpush3.bf16.msra.mxu0 %v2497_v9  ;;  %v2663_v9 = vpack.c.bf16 %v2044_v8, %v2043_v7  ;;  %v2653_v8 = vsub.s32 4, %v5789_v27 }
 0x311   :  { %3424 = vmatprep.subr.bf16.mxu0 %v3553_v29 }
 0x314   :  { %3425 = vmatpush3.bf16.msra.mxu0 %v2498_v10  ;;  %v2045_v10 = vld [vmem:[%s6121_s4 + $0x70] sm:$0xff] }
 0x315   :  { %v2664_v14 = vpack.c.bf16 %v2046_v13, %v2045_v10  ;;  %v2658_v13 = vsub.s32 5, %v5789_v27 }
 0x327   :  { %v2550_v60 = vpop.permute.xlu1 %2549 }
 0x371   :  { %v3321_v17 = vpop.f32.mrb[0].mxu0 }
 0x372   :  { %v3322_v18 = vpop.f32.mrb[1].mxu0 }
 0x373   :  { %v3323_v19 = vadd.f32 %v3322_v18, %v3321_v17  ;;  %v3324_v20 = vpop.f32.mrb[2].mxu0  ;;  %v2665_v17 = vpack.c.bf16 %v2048_v16, %v2047_v15  ;;  %v2049_v18 = vld [vmem:[%s6121_s4 + $0x90] sm:$0xff]  ;;  %v2654_v15 = vrot.slane %v5827_v47, %v2653_v8 }
 0x374   :  { %v3325_v22 = vpop.f32.mrb[3].mxu0 }
 0x375   :  { %v3343_v23 = vpop.f32.mrb[0].mxu1 }
 0x376   :  { %v3344_v24 = vpop.f32.mrb[1].mxu1 }
 0x377   :  { %v3345_v25 = vadd.f32 %v3344_v24, %v3343_v23  ;;  %v3346_v0 = vpop.f32.mrb[2].mxu1 }
 0x378   :  { %v3347_v26 = vpop.f32.mrb[3].mxu1 }
 0x379   :  { %v2342_v28 = vadd.f32 %v3345_v25, %v3323_v19  ;;  %v2050_v19 = vld [vmem:[%s6121_s4 + $0x98] sm:$0xff] }
 0x37a   :  { %v2666_v20 = vpack.c.bf16 %v2050_v19, %v2049_v18  ;;  %v2659_v18 = vrot.slane %v5827_v47, %v2658_v13 }
 0x3c8   :  { %v3365_v30 = vpop.f32.mrb[4].mxu0 }
 0x3c9   :  { %v3366_v31 = vpop.f32.mrb[5].mxu0 }
 0x3ca   :  { %v3367_v11 = vadd.f32 %v3366_v31, %v3365_v30  ;;  %v3368_v32 = vpop.f32.mrb[6].mxu0 }
 0x3cb   :  { %v3369_v34 = vpop.f32.mrb[7].mxu0 }
 0x3cc   :  { %v2382_v36 = vadd.f32 %v3367_v11, %v2342_v28  ;;  %v3387_v37 = vpop.f32.mrb[4].mxu1 }
 0x3cd   :  { %v3388_v38 = vpop.f32.mrb[5].mxu1 }
 0x3ce   :  { %v3389_v39 = vadd.f32 %v3388_v38, %v3387_v37  ;;  %v3390_v40 = vpop.f32.mrb[6].mxu1 }
 0x3cf   :  { %v3391_v43 = vpop.f32.mrb[7].mxu1 }
 0x3d0   :  { %v2422_v45 = vadd.f32 %v3389_v39, %v2382_v36 }
 0x3d2   :  { %v2431_v49 = vadd.f32 %v2430_v42, %v2422_v45  ;;  %v2441_v50 = vadd.f32 %v2439_v44, %v2422_v45 }
 0x3d4   :  { %v2432_v51 = vmax.f32 %v2431_v49, 0.0  ;;  %v2442_v52 = vmax.f32 %v2441_v50, 0.0 }
 0x3d6   :  { %v2443_v53 = vpack.c.bf16 %v2432_v51, %v2432_v51  ;;  %v2446_v54 = vpack.c.bf16 %v2442_v52, %v2442_v52 }
 0x3d8   :  { %2445 = vst.msk [vmem:[#allocation5] sm:$0x3] %vm2444_vm5, %v2443_v53 }
 0x3d9   :  { %2448 = vst.msk [vmem:[#allocation5] sm:$0x3] %vm2447_vm6, %v2446_v54 }
 0x3e0   :  { %v2490_v55 = vld [vmem:[#allocation5] sm:$0x3] }
 0x3e1   :  { %3427 = vmatmul.mubr.bf16.vlgmr.msra.gmra.mrb[8].mxu0 %v2490_v55 }
 0x4b4   :  { %v2533_v61 = vpop.f32.mrb[8].mxu0 }
 0x4b5   :  { %v2543_v62 = vadd.f32 %v2542_v33, %v2533_v61  ;;  %v6016_v63 = vadd.f32 %v2550_v60, %v2533_v61  ;;  %v3428_v1 = vpop.f32.mrb[9].mxu0 }
 0x4b6   :  { %v2536_v41 = vpop.f32.mrb[10].mxu0 }
 0x4b7   :  { %v2553_v2 = vpack.c.bf16 %v2543_v62, %v2543_v62  ;;  %v3429_v46 = vpop.f32.mrb[11].mxu0  ;;  %v2766_v3 = vmul.f32 %v6016_v63, %v6016_v63 }
 0x4b9   :  { %2768 = vrot.lane.b32.xlu0 %v2766_v3, %s3555_s2  ;;  %3435 = vmatmul.mubr.msk.bf16.vlgmr.msra.gmra.mrb[8].mxu1 %vm2083_vm2, %v2553_v2 }
 0x4ba   :  { %3446 = vmatprep.mubr.msk.bf16.mxu1 %vm3554_vm4, %v3553_v29  ;;  %3439 = vmatpush3.bf16.msra.mxu1 %v2663_v9 }
 0x4bb   :  { %3440 = vmatprep.subr.bf16.mxu1 %v3553_v29 }
 0x4be   :  { %3441 = vmatpush3.bf16.msra.mxu1 %v2664_v14 }
 0x4bf   :  { %3442 = vmatprep.subr.bf16.mxu1 %v3553_v29 }
 0x4c2   :  { %3443 = vmatpush3.bf16.msra.mxu1 %v2665_v17 }
 0x4c3   :  { %3444 = vmatprep.subr.bf16.mxu1 %v3553_v29 }
 0x4c6   :  { %3445 = vmatpush3.bf16.msra.mxu1 %v2666_v20 }
 0x52b   :  { %v2769_v4 = vpop.permute.xlu0 %2768 }
 0x52c   :  { %v2837_v5 = vsel %vm2710_vm7, %v2769_v4, 0.0  ;;  %v2772_v6 = vsel %vm2771_vm8, %v2769_v4, 0.0 }
 0x52d   :  { %2838 = vadd.xlane.f32.xlu1 %v2837_v5  ;;  %2773 = vadd.xlane.f32.xlu0 %v2772_v6 }
 0x58c   :  { %v2593_v22 = vpop.f32.mrb[8].mxu1 }
 0x58d   :  { %v2599_v23 = vsel %vm2444_vm5, %v2593_v22, 0.0  ;;  %v2619_v24 = vrot.slane %v2593_v22, 2  ;;  %v3436_v25 = vpop.f32.mrb[9].mxu1 }
 0x58e   :  { %v2600_v0 = vrot.slane %v2599_v23, 4  ;;  %v2596_v26 = vpop.f32.mrb[10].mxu1 }
 0x58f   :  { %v2621_v28 = vsel %vm2444_vm5, %v2619_v24, 0.0  ;;  %v3437_v30 = vpop.f32.mrb[11].mxu1 }
 0x590   :  { %v2601_v31 = vadd.f32 %v2600_v0, %v2599_v23  ;;  %v2622_v11 = vrot.slane %v2621_v28, 4 }
 0x592   :  { %v2602_v32 = vrot.slane %v2601_v31, 2  ;;  %v2623_v34 = vadd.f32 %v2622_v11, %v2621_v28 }
 0x594   :  { %v2603_v36 = vadd.f32 %v2602_v32, %v2601_v31  ;;  %v2624_v37 = vrot.slane %v2623_v34, 2 }
 0x596   :  { %v2604_v38 = vrot.slane %v2603_v36, 1  ;;  %v2625_v39 = vadd.f32 %v2624_v37, %v2623_v34 }
 0x598   :  { %v2605_v29 = vadd.f32 %v2604_v38, %v2603_v36  ;;  %v2626_v40 = vrot.slane %v2625_v39, 1 }
 0x59a   :  { %v2607_v42 = vmul.f32 0.5, %v2605_v29  ;;  %v2627_v43 = vadd.f32 %v2626_v40, %v2625_v39 }
 0x59c   :  { %v2608_v44 = vsub.f32 %v2593_v22, %v2607_v42  ;;  %v2628_v45 = vmul.f32 0.5, %v2627_v43 }
 0x59e   :  { %v2609_v49 = vmul.f32 %v2608_v44, %v2608_v44  ;;  %v2629_v50 = vsub.f32 %v2593_v22, %v2628_v45  ;;  %v2645_v10 = vsel %vm2644_vm9, %v2607_v42, %v2628_v45 }
 0x59f   :  { %v2647_v14 = vsub.f32 %v2593_v22, %v2645_v10 }
 0x5a0   :  { %v2610_v51 = vsel %vm2444_vm5, %v2609_v49, 0.0  ;;  %v2630_v52 = vmul.f32 %v2629_v50, %v2629_v50 }
 0x5a1   :  { %v2611_v53 = vrot.slane %v2610_v51, 4 }
 0x5a2   :  { %v2632_v54 = vrot.slane %v2630_v52, 2 }
 0x5a3   :  { %v2612_v55 = vadd.f32 %v2611_v53, %v2610_v51 }
 0x5a4   :  { %v2634_v56 = vsel %vm2444_vm5, %v2632_v54, 0.0 }
 0x5a5   :  { %v2613_v57 = vrot.slane %v2612_v55, 2  ;;  %v2635_v58 = vrot.slane %v2634_v56, 4 }
 0x5a7   :  { %v2614_v33 = vadd.f32 %v2613_v57, %v2612_v55  ;;  %v2636_v60 = vadd.f32 %v2635_v58, %v2634_v56 }
 0x5a9   :  { %v2615_v61 = vrot.slane %v2614_v33, 1  ;;  %v2637_v62 = vrot.slane %v2636_v60, 2 }
 0x5ab   :  { %v2638_v1 = vadd.f32 %v2637_v62, %v2636_v60  ;;  %v2616_v41 = vadd.f32 %v2615_v61, %v2614_v33 }
 0x5ad   :  { %v2639_v2 = vrot.slane %v2638_v1, 1  ;;  %v2617_v3 = vmul.f32 0.5, %v2616_v41 }
 0x5af   :  { %v2640_v46 = vadd.f32 %v2639_v2, %v2638_v1 }
 0x5b1   :  { %v2641_v4 = vmul.f32 0.5, %v2640_v46 }
 0x5b3   :  { %v2646_v5 = vsel %vm2644_vm9, %v2617_v3, %v2641_v4 }
 0x5b4   :  { %v2648_v6 = vadd.f32 1e-05, %v2646_v5 }
 0x5b6   :  { %3526 = vrsqrt.f32 %v2648_v6 }
 0x5ba   :  { %v2839_v7 = vpop.xlane.xlu1 %2838 }
 0x5bb   :  { %v2840_v9 = vmax.f32 %v2839_v7, 1e-24 }
 0x5bd   :  { %3528 = vrsqrt.f32 %v2840_v9 }
 0x5c0   :  { %v3527_v16 = vpop.eup %3526 }
 0x5c1   :  { %v2650_v17 = vmul.f32 %v3527_v16, %v2647_v14  ;;  %v2774_v14 = vpop.xlane.xlu0 %2773 }
 0x5c3   :  { %v2655_v19 = vmul.f32 %v2654_v15, %v2650_v17  ;;  %v2775_v17 = vmax.f32 %v2774_v14, 1e-24 }
 0x5c5   :  { %v2660_v20 = vadd.f32 %v2659_v18, %v2655_v19 }
 0x5c7   :  { %v3529_v23 = vpop.eup %3528  ;;  %v2661_v24 = vmax.f32 %v2660_v20, 0.0 }
 0x5c8   :  { %v6067_v25 = vmul.f32 %v3529_v23, %v6016_v63 }
 0x5c9   :  { %v2662_v0 = vpack.c.bf16 %v2661_v24, %v2661_v24 }
 0x5ca   :  { %v2858_v26 = vrot.slane %v6067_v25, %v2541_v59  ;;  %v2846_v22 = vrot.slane %v6067_v25, %v2429_v35 }
 0x5cb   :  { %3447 = vmatmul.mubr.msk.bf16.vlgmr.msra.gmra.mrb[12].mxu1 %vm813_vm0, %v2662_v0 }
 0x5cc   :  { %2860 = vrot.lane.b32.xlu1 %v2858_v26, %s3555_s2  ;;  %2848 = vrot.lane.b32.xlu0 %v2846_v22, %s3555_s2 }
 0x69e   :  { %v2704_v28 = vpop.f32.mrb[12].mxu1 }
 0x69f   :  { %v2711_v30 = vsel %vm2710_vm7, %v2704_v28, 0.0  ;;  %v2730_v31 = vrot.slane %v2704_v28, 2  ;;  %v3448_v11 = vpop.f32.mrb[13].mxu1 }
 0x6a0   :  { %v2712_v32 = vrot.slane %v2711_v30, 4  ;;  %v2707_v34 = vpop.f32.mrb[14].mxu1  ;;  %v2849_v11 = vpop.permute.xlu0 %2848 }
 0x6a1   :  { %v2732_v36 = vsel %vm2710_vm7, %v2730_v31, 0.0  ;;  %v3449_v59 = vpop.f32.mrb[15].mxu1  ;;  %v2861_v31 = vpop.permute.xlu1 %2860 }
 0x6a2   :  { %v2713_v37 = vadd.f32 %v2712_v32, %v2711_v30  ;;  %v2733_v38 = vrot.slane %v2732_v36, 4 }
 0x6a4   :  { %v2714_v39 = vrot.slane %v2713_v37, 2  ;;  %v2734_v35 = vadd.f32 %v2733_v38, %v2732_v36 }
 0x6a6   :  { %v2715_v29 = vadd.f32 %v2714_v39, %v2713_v37  ;;  %v2735_v40 = vrot.slane %v2734_v35, 2 }
 0x6a8   :  { %v2716_v42 = vrot.slane %v2715_v29, 1  ;;  %v2736_v43 = vadd.f32 %v2735_v40, %v2734_v35 }
 0x6aa   :  { %v2717_v44 = vadd.f32 %v2716_v42, %v2715_v29  ;;  %v2737_v45 = vrot.slane %v2736_v43, 1 }
 0x6ac   :  { %v2718_v49 = vmul.f32 0.5, %v2717_v44  ;;  %v2738_v50 = vadd.f32 %v2737_v45, %v2736_v43 }
 0x6ae   :  { %v2719_v51 = vsub.f32 %v2704_v28, %v2718_v49  ;;  %v2739_v52 = vmul.f32 0.5, %v2738_v50 }
 0x6b0   :  { %v2720_v53 = vmul.f32 %v2719_v51, %v2719_v51  ;;  %v2740_v54 = vsub.f32 %v2704_v28, %v2739_v52  ;;  %v2753_v13 = vsel %vm2644_vm9, %v2718_v49, %v2739_v52 }
 0x6b1   :  { %v2755_v15 = vsub.f32 %v2704_v28, %v2753_v13  ;;  %v2879_v28 = vrot.slane %v6067_v25, 6 }
 0x6b2   :  { %v2721_v55 = vsel %vm2710_vm7, %v2720_v53, 0.0  ;;  %v2741_v56 = vmul.f32 %v2740_v54, %v2740_v54 }
 0x6b3   :  { %v2722_v57 = vrot.slane %v2721_v55, 4 }
 0x6b4   :  { %v2743_v58 = vrot.slane %v2741_v56, 2 }
 0x6b5   :  { %v2723_v33 = vadd.f32 %v2722_v57, %v2721_v55 }
 0x6b6   :  { %v2745_v60 = vsel %vm2710_vm7, %v2743_v58, 0.0 }
 0x6b7   :  { %v2724_v61 = vrot.slane %v2723_v33, 2  ;;  %v2746_v62 = vrot.slane %v2745_v60, 4 }
 0x6b9   :  { %v2725_v1 = vadd.f32 %v2724_v61, %v2723_v33  ;;  %v2747_v41 = vadd.f32 %v2746_v62, %v2745_v60 }
 0x6bb   :  { %v2726_v2 = vrot.slane %v2725_v1, 1  ;;  %v2748_v46 = vrot.slane %v2747_v41, 2 }
 0x6bd   :  { %v2749_v3 = vadd.f32 %v2748_v46, %v2747_v41  ;;  %v2727_v4 = vadd.f32 %v2726_v2, %v2725_v1 }
 0x6bf   :  { %v2750_v5 = vrot.slane %v2749_v3, 1  ;;  %v2728_v7 = vmul.f32 0.5, %v2727_v4 }
 0x6c1   :  { %v2751_v6 = vadd.f32 %v2750_v5, %v2749_v3 }
 0x6c3   :  { %v2752_v8 = vmul.f32 0.5, %v2751_v6 }
 0x6c5   :  { %v2754_v9 = vsel %vm2644_vm9, %v2728_v7, %v2752_v8 }
 0x6c6   :  { %v2756_v10 = vadd.f32 1e-05, %v2754_v9 }
 0x6c8   :  { %3530 = vrsqrt.f32 %v2756_v10 }
 0x6c9   :  { %3532 = vrsqrt.f32 %v2775_v17 }
 0x6d2   :  { %v3531_v16 = vpop.eup %3530 }
 0x6d3   :  { %v2758_v18 = vmul.f32 %v3531_v16, %v2755_v15  ;;  %v3533_v24 = vpop.eup %3532 }
 0x6d4   :  { %v2777_v0 = vmul.f32 %v3533_v24, %v6016_v63 }
 0x6d5   :  { %v2759_v19 = vmul.f32 %v2758_v18, %v2758_v18 }
 0x6d6   :  { %v2781_v26 = vrot.slane %v2777_v0, %v2435_v48  ;;  %v2793_v22 = vrot.slane %v2777_v0, %v2546_v12  ;;  %v2814_v30 = vrot.slane %v2777_v0, 2 }
 0x6d7   :  { %v2831_v20 = vsel %vm2771_vm8, %v2759_v19, 0.0  ;;  %v2760_v23 = vsel %vm2710_vm7, %v2759_v19, 0.0 }
 0x6d8   :  { %2832 = vadd.xlane.f32.xlu0 %v2831_v20  ;;  %2761 = vadd.xlane.f32.xlu1 %v2760_v23 }
 0x6e9   :  { %2783 = vrot.lane.b32.xlu1 %v2781_v26, %s3555_s2 }
 0x6ee   :  { %2795 = vrot.lane.b32.xlu0 %v2793_v22, %s3555_s2 }
 0x6f2   :  { %2880 = vrot.lane.b32.xlu0 %v2879_v28, %s3555_s2 }
 0x6f6   :  { %2815 = vrot.lane.b32.xlu0 %v2814_v30, %s3555_s2 }
 0x765   :  { %v2833_v63 = vpop.xlane.xlu0 %2832  ;;  %v2762_v32 = vpop.xlane.xlu1 %2761 }
 0x766   :  { %v2834_v34 = vmax.f32 %v2833_v63, 1e-24  ;;  %v2763_v48 = vmax.f32 %v2762_v32, 1e-24 }
 0x768   :  { %3534 = vrsqrt.f32 %v2834_v34 }
 0x769   :  { %3536 = vrsqrt.f32 %v2763_v48  ;;  %v2796_v36 = vpop.permute.xlu0 %2795  ;;  %v2784_v25 = vpop.permute.xlu1 %2783 }
 0x76d   :  { %v2881_v27 = vpop.permute.xlu0 %2880 }
 0x771   :  { %v2816_v29 = vpop.permute.xlu0 %2815 }
 0x772   :  { %v3535_v12 = vpop.eup %3534 }
 0x773   :  { %v3537_v59 = vpop.eup %3536  ;;  %v2836_v38 = vmul.f32 %v3535_v12, %v2758_v18 }
 0x774   :  { %v2765_v37 = vmul.f32 %v3537_v59, %v2758_v18 }
 0x775   :  { %v2851_v44 = vmul.f32 %v2849_v11, %v2836_v38  ;;  %v2863_v50 = vmul.f32 %v2861_v31, %v2836_v38  ;;  %v2883_v51 = vmul.f32 %v2881_v27, %v2836_v38 }
 0x776   :  { %v2798_v39 = vmul.f32 %v2796_v36, %v2765_v37  ;;  %v2786_v35 = vmul.f32 %v2784_v25, %v2765_v37  ;;  %v2818_v40 = vmul.f32 %v2816_v29, %v2765_v37 }
 0x777   :  { %v2852_v49 = vsel %vm2771_vm8, %v2851_v44, 0.0  ;;  %v2864_v52 = vsel %vm2771_vm8, %v2863_v50, 0.0  ;;  %v2884_v53 = vsel %vm2771_vm8, %v2883_v51, 0.0 }
 0x778   :  { %v2799_v42 = vsel %vm2710_vm7, %v2798_v39, 0.0  ;;  %v2787_v43 = vsel %vm2710_vm7, %v2786_v35, 0.0  ;;  %v2819_v45 = vsel %vm2710_vm7, %v2818_v40, 0.0 }
 0x779   :  { %2800 = vadd.xlane.f32.xlu0 %v2799_v42  ;;  %2788 = vadd.xlane.f32.xlu1 %v2787_v43 }
 0x77d   :  { %2820 = vadd.xlane.f32.xlu0 %v2819_v45  ;;  %2853 = vadd.xlane.f32.xlu1 %v2852_v49 }
 0x781   :  { %2865 = vadd.xlane.f32.xlu1 %v2864_v52 }
 0x785   :  { %2885 = vadd.xlane.f32.xlu1 %v2884_v53 }
 0x806   :  { %v2801_v54 = vpop.xlane.xlu0 %2800  ;;  %v2789_v55 = vpop.xlane.xlu1 %2788 }
 0x807   :  { %v2802_v56 = vmax.f32 %v2789_v55, %v2801_v54 }
 0x809   :  { %v2803_v57 = vsub.f32 %v2789_v55, %v2802_v56  ;;  %v2806_v58 = vsub.f32 %v2801_v54, %v2802_v56 }
 0x80a   :  { %v2854_v33 = vpop.xlane.xlu1 %2853  ;;  %v2821_v13 = vpop.xlane.xlu0 %2820 }
 0x80b   :  { %v2804_v60 = vmul.f32 1.442695, %v2803_v57  ;;  %v2807_v61 = vmul.f32 1.442695, %v2806_v58 }
 0x80d   :  { %3538 = vpow2.f32 %v2804_v60 }
 0x80e   :  { %3540 = vpow2.f32 %v2807_v61  ;;  %v2866_v62 = vpop.xlane.xlu1 %2865 }
 0x80f   :  { %v2867_v1 = vmax.f32 %v2854_v33, %v2866_v62 }
 0x811   :  { %v2868_v41 = vsub.f32 %v2854_v33, %v2867_v1  ;;  %v2871_v2 = vsub.f32 %v2866_v62, %v2867_v1 }
 0x812   :  { %v2886_v23 = vpop.xlane.xlu1 %2885 }
 0x813   :  { %v2869_v47 = vmul.f32 1.442695, %v2868_v41  ;;  %v2872_v46 = vmul.f32 1.442695, %v2871_v2 }
 0x815   :  { %3542 = vpow2.f32 %v2869_v47 }
 0x816   :  { %3544 = vpow2.f32 %v2872_v46 }
 0x817   :  { %v3539_v3 = vpop.eup %3538 }
 0x818   :  { %v3541_v21 = vpop.eup %3540 }
 0x819   :  { %v2809_v4 = vadd.f32 %v3541_v21, %v3539_v3 }
 0x81b   :  { %3546 = vlog2.f32 %v2809_v4 }
 0x81f   :  { %v3543_v5 = vpop.eup %3542 }
 0x820   :  { %v3545_v6 = vpop.eup %3544 }
 0x821   :  { %v2874_v7 = vadd.f32 %v3545_v6, %v3543_v5 }
 0x823   :  { %3548 = vlog2.f32 %v2874_v7 }
 0x825   :  { %v3547_v8 = vpop.eup %3546 }
 0x826   :  { %v2811_v9 = vmul.f32 0.6931472, %v3547_v8 }
 0x828   :  { %v2812_v10 = vadd.f32 %v2811_v9, %v2802_v56 }
 0x82a   :  { %v2822_v14 = vsub.f32 %v2812_v10, %v2821_v13 }
 0x82c   :  { %v2824_v15 = vsel %vm2823_vm10, %v2822_v14, 0.0 }
 0x82d   :  { %v3549_v16 = vpop.eup %3548  ;;  %v2825_v17 = vrot.slane %v2824_v15, 4 }
 0x82e   :  { %v2876_v18 = vmul.f32 0.6931472, %v3549_v16 }
 0x82f   :  { %v2826_v20 = vadd.f32 %v2825_v17, %v2824_v15 }
 0x830   :  { %v2877_v19 = vadd.f32 %v2876_v18, %v2867_v1 }
 0x831   :  { %v2827_v26 = vrot.slane %v2826_v20, 2 }
 0x832   :  { %v2887_v24 = vsub.f32 %v2877_v19, %v2886_v23 }
 0x833   :  { %v2828_v30 = vadd.f32 %v2827_v26, %v2826_v20 }
 0x834   :  { %v2889_v0 = vrot.slane %v2887_v24, 2 }
 0x835   :  { %v2829_v63 = vrot.slane %v2828_v30, 1 }
 0x836   :  { %v2891_v22 = vsel %vm2823_vm10, %v2889_v0, 0.0 }
 0x837   :  { %v2892_v28 = vrot.slane %v2891_v22, 4  ;;  %v2830_v48 = vadd.f32 %v2829_v63, %v2828_v30 }
 0x839   :  { %v2893_v31 = vadd.f32 %v2892_v28, %v2891_v22 }
 0x83b   :  { %v2894_v11 = vrot.slane %v2893_v31, 2 }
 0x83d   :  { %v2895_v32 = vadd.f32 %v2894_v11, %v2893_v31 }
 0x83f   :  { %v2896_v34 = vrot.slane %v2895_v32, 1 }
 0x841   :  { %v2897_v36 = vadd.f32 %v2896_v34, %v2895_v32 }
 0x843   :  { %v2898_v27 = vadd.f32 %v2897_v36, %v2830_v48 }
 0x845   :  { %2899 = vst [vmem:[%s6125_s10 + $0x7] sm:$0x1] %v2898_v27 }

</bundles_post_ra>
